<compile_context>
chip_gen: v7x
topology: tpu7x:2x2x1
jax: 0.10.0
libtpu: 0.0.40
codegen_flags: <defaults>
</compile_context>

<pallas_src>
import functools
import math

import jax
import jax.numpy as jnp
from jax import lax
from jax.experimental import pallas as pl
from jax.experimental.pallas import tpu as pltpu

F32 = jnp.float32
BF16 = jnp.bfloat16
BN_EPS = 1e-5
ATTN_EPS = 1e-6
VMEM_LIMIT = 32 * 1024 * 1024  # fits v7x (64 MiB phys) with headroom


# ----------------------------------------------------------------------------
# Kernels
# ----------------------------------------------------------------------------
def _node_proj_kernel(h_ref, scale_ref, shift_ref, wq_ref, wk_ref, wv_ref,
                      hn_ref, q_ref, k_ref, v_ref):
    # BN1h folded to a per-channel affine (stats from the XLA prepass).
    hn = h_ref[...] * scale_ref[...] + shift_ref[...]
    hn_ref[...] = hn
    hb = hn.astype(BF16)
    q_ref[...] = jnp.dot(hb, wq_ref[...], preferred_element_type=F32)
    k_ref[...] = jnp.dot(hb, wk_ref[...], preferred_element_type=F32)
    v_ref[...] = jnp.dot(hb, wv_ref[...], preferred_element_type=F32)


def _edge_attn_kernel(src_ref, dst_ref,                # scalar prefetch (SMEM)
                      q_ref, k_ref, v_ref, hmask_ref,  # VMEM-resident
                      score_ref, wv_ref, zb_ref,       # outputs
                      vg_scr, sb_scr,                  # VMEM scratch [TE, D]
                      *, te, inv_scale):
    t = pl.program_id(0)

    @pl.when(t == 0)
    def _init():
        wv_ref[...] = jnp.zeros_like(wv_ref)
        zb_ref[...] = jnp.zeros_like(zb_ref)

    base = t * te

    # Row gather of K[src], Q[dst], V[src] via dynamic-index loads (replaces
    # the [E, N] one-hot matmuls).  score = K*Q * (1/sqrt(d_head)) is also the
    # e_out stream, so it is written straight to its output tile.
    def gather_body(i, carry):
        s = src_ref[base + i]
        d = dst_ref[base + i]
        k_row = k_ref[pl.ds(s, 1), :]
        q_row = q_ref[pl.ds(d, 1), :]
        score_ref[pl.ds(i, 1), :] = k_row * q_row * inv_scale
        vg_scr[pl.ds(i, 1), :] = v_ref[pl.ds(s, 1), :]
        return carry

    lax.fori_loop(0, te, gather_body, 0)

    # Per-head sum of scores, broadcast back across that head's d_head lanes
    # in one lane-dense [TE,D]@[D,D] matmul (hmask = block-diagonal 0/1 head
    # membership), then clamp/exp in f32.
    s_sum = jnp.dot(score_ref[...], hmask_ref[...], preferred_element_type=F32)
    sb = jnp.exp(jnp.clip(s_sum, -5.0, 5.0))
    sb_scr[...] = sb
    vg_scr[...] = vg_scr[...] * sb                       # per-edge weighted V

    # Scatter-add segment sums over destination nodes (edges are dst-sorted).
    def scatter_body(i, carry):
        d = dst_ref[base + i]
        wv_ref[pl.ds(d, 1), :] = wv_ref[pl.ds(d, 1), :] + vg_scr[pl.ds(i, 1), :]
        zb_ref[pl.ds(d, 1), :] = zb_ref[pl.ds(d, 1), :] + sb_scr[pl.ds(i, 1), :]
        return carry

    lax.fori_loop(0, te, scatter_body, 0)


def _h_post_kernel(hn_ref, wv_ref, zb_ref, wo_ref, bo_ref, out_ref):
    # h_attn = wV / (z + 1e-6), then O_h projection + residual.
    h_attn = wv_ref[...] * pl.reciprocal(zb_ref[...] + ATTN_EPS, approx=True)
    proj = jnp.dot(h_attn.astype(BF16), wo_ref[...], preferred_element_type=F32)
    out_ref[...] = hn_ref[...] + proj + bo_ref[...]


def _e_post_kernel(e_ref, scale_ref, shift_ref, score_ref, wo_ref, bo_ref,
                   out_ref):
    en = e_ref[...] * scale_ref[...] + shift_ref[...]    # BN1e (folded affine)
    proj = jnp.dot(score_ref[...].astype(BF16), wo_ref[...],
                   preferred_element_type=F32)
    out_ref[...] = en + proj + bo_ref[...]


def _bn_ffn_kernel(x_ref, scale_ref, shift_ref, w1_ref, b1_ref, w2_ref, b2_ref,
                   out_ref):
    # BN2 (folded affine) -> FFN(relu) -> residual.  Shared by h and e streams.
    xn = x_ref[...] * scale_ref[...] + shift_ref[...]
    mid = jnp.dot(xn.astype(BF16), w1_ref[...], preferred_element_type=F32)
    mid = jnp.maximum(mid + b1_ref[...], 0.0)
    out_ref[...] = xn + jnp.dot(mid.astype(BF16), w2_ref[...],
                                preferred_element_type=F32) + b2_ref[...]


# ----------------------------------------------------------------------------
# pallas_call wrappers
# ----------------------------------------------------------------------------
def _cparams(semantics):
    return pltpu.CompilerParams(dimension_semantics=semantics,
                                vmem_limit_bytes=VMEM_LIMIT)


def _row_spec(tile, d):
    return pl.BlockSpec((tile, d), lambda i: (i, 0))


def _full_spec(shape):
    return pl.BlockSpec(shape, lambda i: (0, 0))


def _node_proj(h, scale, shift, wq, wk, wv, *, tn):
    n, d = h.shape
    flops = 2 * n * d * d * 3
    bytes_acc = 4 * n * d * 5 + 2 * d * d * 3
    return pl.pallas_call(
        _node_proj_kernel,
        grid=(n // tn,),
        in_specs=[_row_spec(tn, d), _full_spec((1, d)), _full_spec((1, d)),
                  _full_spec((d, d)), _full_spec((d, d)), _full_spec((d, d))],
        out_specs=[_row_spec(tn, d)] * 4,
        out_shape=[jax.ShapeDtypeStruct((n, d), F32)] * 4,
        compiler_params=_cparams(("parallel",)),
        cost_estimate=pl.CostEstimate(flops=flops, transcendentals=0,
                                      bytes_accessed=bytes_acc),
    )(h, scale, shift, wq, wk, wv)


def _edge_attention(src_s, dst_s, q, k, v, head_mask, *, te, d_head):
    n, d = q.shape
    n_edges = src_s.shape[0]
    inv_scale = 1.0 / math.sqrt(float(d_head))
    kernel = functools.partial(_edge_attn_kernel, te=te, inv_scale=inv_scale)

    grid_spec = pltpu.PrefetchScalarGridSpec(
        num_scalar_prefetch=2,
        grid=(n_edges // te,),
        in_specs=[
            pl.BlockSpec((n, d), lambda t, s, dd: (0, 0)),   # q  (resident)
            pl.BlockSpec((n, d), lambda t, s, dd: (0, 0)),   # k
            pl.BlockSpec((n, d), lambda t, s, dd: (0, 0)),   # v
            pl.BlockSpec((d, d), lambda t, s, dd: (0, 0)),   # head mask
        ],
        out_specs=[
            pl.BlockSpec((te, d), lambda t, s, dd: (t, 0)),  # score (= e_attn)
            pl.BlockSpec((n, d), lambda t, s, dd: (0, 0)),   # wV accumulator
            pl.BlockSpec((n, d), lambda t, s, dd: (0, 0)),   # z  accumulator
        ],
        scratch_shapes=[pltpu.VMEM((te, d), F32), pltpu.VMEM((te, d), F32)],
    )
    return pl.pallas_call(
        kernel,
        grid_spec=grid_spec,
        out_shape=[jax.ShapeDtypeStruct((n_edges, d), F32),
                   jax.ShapeDtypeStruct((n, d), F32),
                   jax.ShapeDtypeStruct((n, d), F32)],
        compiler_params=_cparams(("arbitrary",)),
    )(src_s, dst_s, q, k, v, head_mask)


def _h_post(hn, wv, zb, wo, bo, *, tn):
    n, d = hn.shape
    return pl.pallas_call(
        _h_post_kernel,
        grid=(n // tn,),
        in_specs=[_row_spec(tn, d), _row_spec(tn, d), _row_spec(tn, d),
                  _full_spec((d, d)), _full_spec((1, d))],
        out_specs=_row_spec(tn, d),
        out_shape=jax.ShapeDtypeStruct((n, d), F32),
        compiler_params=_cparams(("parallel",)),
    )(hn, wv, zb, wo, bo)


def _e_post(e_s, scale, shift, score, wo, bo, *, te):
    m, d = e_s.shape
    return pl.pallas_call(
        _e_post_kernel,
        grid=(m // te,),
        in_specs=[_row_spec(te, d), _full_spec((1, d)), _full_spec((1, d)),
                  _row_spec(te, d), _full_spec((d, d)), _full_spec((1, d))],
        out_specs=_row_spec(te, d),
        out_shape=jax.ShapeDtypeStruct((m, d), F32),
        compiler_params=_cparams(("parallel",)),
    )(e_s, scale, shift, score, wo, bo)


def _bn_ffn(x, scale, shift, w1, b1, w2, b2, *, tile):
    m, d = x.shape
    dh = w1.shape[1]
    flops = 2 * m * d * dh * 2
    bytes_acc = 4 * m * d * 2 + 2 * d * dh * 2
    return pl.pallas_call(
        _bn_ffn_kernel,
        grid=(m // tile,),
        in_specs=[_row_spec(tile, d), _full_spec((1, d)), _full_spec((1, d)),
                  _full_spec((d, dh)), _full_spec((1, dh)),
                  _full_spec((dh, d)), _full_spec((1, d))],
        out_specs=_row_spec(tile, d),
        out_shape=jax.ShapeDtypeStruct((m, d), F32),
        compiler_params=_cparams(("parallel",)),
        cost_estimate=pl.CostEstimate(flops=flops, transcendentals=0,
                                      bytes_accessed=bytes_acc),
    )(x, scale, shift, w1, b1, w2, b2)


# ----------------------------------------------------------------------------
# Layer / stack wrappers
# ----------------------------------------------------------------------------
def _bn_affine(x, gamma, beta, eps=BN_EPS):
    # Training-mode BatchNorm1d statistics (biased variance), hoisted out of
    # the row-tiled kernels (global over rows) and folded to scale/shift.
    mean = jnp.mean(x, axis=0, keepdims=True)
    var = jnp.mean(jnp.square(x - mean), axis=0, keepdims=True)
    scale = gamma * lax.rsqrt(var + eps)
    shift = beta - mean * scale
    return scale.astype(F32), shift.astype(F32)


def _gt_layer_sorted(h, e_s, src_s, dst_s, head_mask, p, *, num_heads, tn, te):
    n, d = h.shape
    d_head = d // num_heads

    # --- BN1 statistics prepass (cheap XLA reductions) ---
    sc1h, sh1h = _bn_affine(h, p["g1h"], p["b1h"])
    sc1e, sh1e = _bn_affine(e_s, p["g1e"], p["b1e"])

    hn, q, k, v = _node_proj(h, sc1h, sh1h,
                             p["wq"].astype(BF16), p["wk"].astype(BF16),
                             p["wv"].astype(BF16), tn=tn)

    score, wv_sum, zb_sum = _edge_attention(src_s, dst_s, q, k, v, head_mask,
                                            te=te, d_head=d_head)

    h2 = _h_post(hn, wv_sum, zb_sum, p["woh"].astype(BF16), p["boh"], tn=tn)
    e2 = _e_post(e_s, sc1e, sh1e, score, p["woe"].astype(BF16), p["boe"], te=te)

    # --- BN2 statistics prepass ---
    sc2h, sh2h = _bn_affine(h2, p["g2h"], p["b2h"])
    sc2e, sh2e = _bn_affine(e2, p["g2e"], p["b2e"])

    h_out = _bn_ffn(h2, sc2h, sh2h, p["wh1"].astype(BF16), p["bh1"],
                    p["wh2"].astype(BF16), p["bh2"], tile=tn)
    e_out = _bn_ffn(e2, sc2e, sh2e, p["we1"].astype(BF16), p["be1"],
                    p["we2"].astype(BF16), p["be2"], tile=te)
    return h_out, e_out


def graph_transformer_stack(h, e, src, dst, params_list, *, num_heads, tn, te):
    n, d = h.shape
    n_edges = e.shape[0]
    assert n % tn == 0 and n_edges % te == 0 and d % num_heads == 0
    assert d % 128 == 0, "keep the feature dim lane-dense"

    # Sort edges by destination once for the whole stack (scatter locality);
    # the e-stream is permutation-equivariant so we un-permute at the end.
    perm = jnp.argsort(dst)
    src_s = jnp.take(src, perm).astype(jnp.int32)
    dst_s = jnp.take(dst, perm).astype(jnp.int32)
    e_s = jnp.take(e, perm, axis=0)

    d_head = d // num_heads
    head_ids = jnp.arange(d, dtype=jnp.int32) // d_head
    head_mask = (head_ids[:, None] == head_ids[None, :]).astype(F32)  # [D, D]

    for p in params_list:
        h, e_s = _gt_layer_sorted(h, e_s, src_s, dst_s, head_mask, p,
                                  num_heads=num_heads, tn=tn, te=te)

    e_out = jnp.zeros_like(e_s).at[perm].set(e_s)
    return h, e_out


# ----------------------------------------------------------------------------
# Pure-JAX reference (gather / segment_sum formulation of the PyTorch forward)
# ----------------------------------------------------------------------------
def reference_stack(h, e, src, dst, params_list, *, num_heads):
    n, d = h.shape
    n_edges = e.shape[0]
    dh = d // num_heads

    def bn(x, g, b):
        m = x.mean(0, keepdims=True)
        v = jnp.square(x - m).mean(0, keepdims=True)
        return (x - m) / jnp.sqrt(v + BN_EPS) * g + b

    for p in params_list:
        h = bn(h, p["g1h"], p["b1h"])
        e = bn(e, p["g1e"], p["b1e"])
        h_in1, e_in1 = h, e
        q = (h @ p["wq"]).reshape(n, num_heads, dh)
        k = (h @ p["wk"]).reshape(n, num_heads, dh)
        v = (h @ p["wv"]).reshape(n, num_heads, dh)
        score = k[src] * q[dst] / jnp.sqrt(jnp.float32(dh))
        e_attn = score.reshape(n_edges, d)
        s = jnp.exp(jnp.clip(score.sum(-1, keepdims=True), -5.0, 5.0))
        wv = jax.ops.segment_sum(v[src] * s, dst, num_segments=n)
        z = jax.ops.segment_sum(s, dst, num_segments=n)
        h_attn = (wv / (z + ATTN_EPS)).reshape(n, d)
        h = h_in1 + (h_attn @ p["woh"] + p["boh"])
        e = e_in1 + (e_attn @ p["woe"] + p["boe"])
        h = bn(h, p["g2h"], p["b2h"])
        e = bn(e, p["g2e"], p["b2e"])
        h = h + (jnp.maximum(h @ p["wh1"] + p["bh1"], 0.0) @ p["wh2"] + p["bh2"])
        e = e + (jnp.maximum(e @ p["we1"] + p["be1"], 0.0) @ p["we2"] + p["be2"])
    return h, e


# ----------------------------------------------------------------------------
# Deterministic synthetic parameters (no checkpoint)
# ----------------------------------------------------------------------------
def init_params(key, d):
    keys = iter(jax.random.split(key, 15))

    def lin(din, dout):
        return 0.1 * jax.random.normal(next(keys), (din, dout), F32)

    def vec(dout):
        return 0.1 * jax.random.normal(next(keys), (1, dout), F32)

    return {
        # batch norms: PyTorch default init (weight=1, bias=0)
        "g1h": jnp.ones((1, d), F32), "b1h": jnp.zeros((1, d), F32),
        "g1e": jnp.ones((1, d), F32), "b1e": jnp.zeros((1, d), F32),
        "g2h": jnp.ones((1, d), F32), "b2h": jnp.zeros((1, d), F32),
        "g2e": jnp.ones((1, d), F32), "b2e": jnp.zeros((1, d), F32),
        # attention projections (use_bias=False)
        "wq": lin(d, d), "wk": lin(d, d), "wv": lin(d, d),
        # output projections
        "woh": lin(d, d), "boh": vec(d),
        "woe": lin(d, d), "boe": vec(d),
        # FFN h
        "wh1": lin(d, 2 * d), "bh1": vec(2 * d),
        "wh2": lin(2 * d, d), "bh2": vec(d),
        # FFN e
        "we1": lin(d, 2 * d), "be1": vec(2 * d),
        "we2": lin(2 * d, d), "be2": vec(d),
    }


if __name__ == "__main__":
    # StructureEncoder uses num_heads=8, n_layers=3; keep D lane-dense (128).
    N, E, D, H = 64, 256, 128, 8
    TN, TE = 32, 64
    N_LAYERS = 3

    root = jax.random.PRNGKey(0)
    k_h, k_e, k_p = jax.random.split(root, 3)
    h0 = jax.random.normal(k_h, (N, D), F32)
    e0 = jax.random.normal(k_e, (E, D), F32)
    # deterministic synthetic graph (each node: 4 in / 4 out edges)
    src = jnp.arange(E, dtype=jnp.int32) % N
    dst = (5 * jnp.arange(E, dtype=jnp.int32) + 3) % N

    params_list = [init_params(k, D) for k in jax.random.split(k_p, N_LAYERS)]

    run = jax.jit(functools.partial(graph_transformer_stack,
                                    num_heads=H, tn=TN, te=TE))
    h_out, e_out = run(h0, e0, src, dst, params_list)
    jax.block_until_ready((h_out, e_out))

    h_ref, e_ref = reference_stack(h0, e0, src, dst, params_list, num_heads=H)

    def rel_err(a, b):
        return float(jnp.linalg.norm(a - b) / (jnp.linalg.norm(b) + 1e-12))

    err_h = rel_err(h_out, h_ref)
    err_e = rel_err(e_out, e_ref)
    assert h_out.shape == (N, D) and e_out.shape == (E, D)
    # kernel uses bf16 MXU matmuls (f32 accumulation) vs. the pure-f32
    # reference: allow percent-level relative error over 3 stacked layers.
    assert err_h < 5e-2, f"h relative error too large: {err_h}"
    assert err_e < 5e-2, f"e relative error too large: {err_e}"

    print("KERNEL_OK")
</pallas_src>

<mosaic_0001>
module attributes {stable_mosaic.version = 11 : i64} {
  func.func @_node_proj_kernel(%arg0: i32, %arg1: memref<32x128xf32, #tpu.memory_space<vmem>>, %arg2: memref<1x128xf32, #tpu.memory_space<vmem>>, %arg3: memref<1x128xf32, #tpu.memory_space<vmem>>, %arg4: memref<128x128xbf16, #tpu.memory_space<vmem>>, %arg5: memref<128x128xbf16, #tpu.memory_space<vmem>>, %arg6: memref<128x128xbf16, #tpu.memory_space<vmem>>, %arg7: memref<32x128xf32, #tpu.memory_space<vmem>>, %arg8: memref<32x128xf32, #tpu.memory_space<vmem>>, %arg9: memref<32x128xf32, #tpu.memory_space<vmem>>, %arg10: memref<32x128xf32, #tpu.memory_space<vmem>>) attributes {dimension_semantics = [#tpu.dimension_semantics<parallel>], iteration_bounds = array<i64: 2>, scalar_prefetch = 0 : i64, scratch_operands = 0 : i64, tpu.core_type = #tpu.core_type<tc>, window_params = [{transform_indices = @transform_0, window_bounds = array<i64: 32, 128>}, {pipeline_mode = #tpu.pipeline_mode<synchronous>, transform_indices = @transform_1, window_bounds = array<i64: 1, 128>}, {pipeline_mode = #tpu.pipeline_mode<synchronous>, transform_indices = @transform_2, window_bounds = array<i64: 1, 128>}, {pipeline_mode = #tpu.pipeline_mode<synchronous>, transform_indices = @transform_3, window_bounds = array<i64: 128, 128>}, {pipeline_mode = #tpu.pipeline_mode<synchronous>, transform_indices = @transform_4, window_bounds = array<i64: 128, 128>}, {pipeline_mode = #tpu.pipeline_mode<synchronous>, transform_indices = @transform_5, window_bounds = array<i64: 128, 128>}, {transform_indices = @transform_6, window_bounds = array<i64: 32, 128>}, {transform_indices = @transform_7, window_bounds = array<i64: 32, 128>}, {transform_indices = @transform_8, window_bounds = array<i64: 32, 128>}, {transform_indices = @transform_9, window_bounds = array<i64: 32, 128>}]} {
    %c0 = arith.constant 0 : index
    %c0_0 = arith.constant 0 : index
    %0 = vector.load %arg1[%c0, %c0_0] : memref<32x128xf32, #tpu.memory_space<vmem>>, vector<32x128xf32>
    %c0_1 = arith.constant 0 : index
    %c0_2 = arith.constant 0 : index
    %1 = vector.load %arg2[%c0_1, %c0_2] : memref<1x128xf32, #tpu.memory_space<vmem>>, vector<1x128xf32>
    %2 = vector.broadcast %1 : vector<1x128xf32> to vector<32x128xf32>
    %3 = arith.mulf %0, %2 : vector<32x128xf32>
    %c0_3 = arith.constant 0 : index
    %c0_4 = arith.constant 0 : index
    %4 = vector.load %arg3[%c0_3, %c0_4] : memref<1x128xf32, #tpu.memory_space<vmem>>, vector<1x128xf32>
    %5 = vector.broadcast %4 : vector<1x128xf32> to vector<32x128xf32>
    %6 = arith.addf %3, %5 : vector<32x128xf32>
    %c0_5 = arith.constant 0 : index
    %c0_6 = arith.constant 0 : index
    %7 = vector.load %arg7[%c0_5, %c0_6] : memref<32x128xf32, #tpu.memory_space<vmem>>, vector<32x128xf32>
    tpu.vector_store %arg7[%c0_5, %c0_6], %6 {strides = array<i32>} : memref<32x128xf32, #tpu.memory_space<vmem>>, vector<32x128xf32>,
    %8 = arith.truncf %6 : vector<32x128xf32> to vector<32x128xbf16>
    %c0_7 = arith.constant 0 : index
    %c0_8 = arith.constant 0 : index
    %9 = vector.load %arg4[%c0_7, %c0_8] : memref<128x128xbf16, #tpu.memory_space<vmem>>, vector<128x128xbf16>
    %cst = arith.constant dense<0.000000e+00> : vector<32x128xf32>
    %10 = tpu.matmul %8, %9, %cst {dimension_numbers = #tpu.dot_dimension_numbers<[1], [0], [0], [1], [0, 0, 1, 1], [], []>} : vector<32x128xbf16>, vector<128x128xbf16>, vector<32x128xf32> -> vector<32x128xf32>
    %c0_9 = arith.constant 0 : index
    %c0_10 = arith.constant 0 : index
    %11 = vector.load %arg8[%c0_9, %c0_10] : memref<32x128xf32, #tpu.memory_space<vmem>>, vector<32x128xf32>
    tpu.vector_store %arg8[%c0_9, %c0_10], %10 {strides = array<i32>} : memref<32x128xf32, #tpu.memory_space<vmem>>, vector<32x128xf32>,
    %c0_11 = arith.constant 0 : index
    %c0_12 = arith.constant 0 : index
    %12 = vector.load %arg5[%c0_11, %c0_12] : memref<128x128xbf16, #tpu.memory_space<vmem>>, vector<128x128xbf16>
    %cst_13 = arith.constant dense<0.000000e+00> : vector<32x128xf32>
    %13 = tpu.matmul %8, %12, %cst_13 {dimension_numbers = #tpu.dot_dimension_numbers<[1], [0], [0], [1], [0, 0, 1, 1], [], []>} : vector<32x128xbf16>, vector<128x128xbf16>, vector<32x128xf32> -> vector<32x128xf32>
    %c0_14 = arith.constant 0 : index
    %c0_15 = arith.constant 0 : index
    %14 = vector.load %arg9[%c0_14, %c0_15] : memref<32x128xf32, #tpu.memory_space<vmem>>, vector<32x128xf32>
    tpu.vector_store %arg9[%c0_14, %c0_15], %13 {strides = array<i32>} : memref<32x128xf32, #tpu.memory_space<vmem>>, vector<32x128xf32>,
    %c0_16 = arith.constant 0 : index
    %c0_17 = arith.constant 0 : index
    %15 = vector.load %arg6[%c0_16, %c0_17] : memref<128x128xbf16, #tpu.memory_space<vmem>>, vector<128x128xbf16>
    %cst_18 = arith.constant dense<0.000000e+00> : vector<32x128xf32>
    %16 = tpu.matmul %8, %15, %cst_18 {dimension_numbers = #tpu.dot_dimension_numbers<[1], [0], [0], [1], [0, 0, 1, 1], [], []>} : vector<32x128xbf16>, vector<128x128xbf16>, vector<32x128xf32> -> vector<32x128xf32>
    %c0_19 = arith.constant 0 : index
    %c0_20 = arith.constant 0 : index
    %17 = vector.load %arg10[%c0_19, %c0_20] : memref<32x128xf32, #tpu.memory_space<vmem>>, vector<32x128xf32>
    tpu.vector_store %arg10[%c0_19, %c0_20], %16 {strides = array<i32>} : memref<32x128xf32, #tpu.memory_space<vmem>>, vector<32x128xf32>,
    return
  }
  func.func @transform_0(%arg0: i32) -> (i32, i32) {
    %c0_i32 = arith.constant 0 : i32
    %c0_i32_0 = arith.constant 0 : i32
    return %arg0, %c0_i32 : i32, i32
  }
  func.func @transform_1(%arg0: i32) -> (i32, i32) {
    %c0_i32 = arith.constant 0 : i32
    %c0_i32_0 = arith.constant 0 : i32
    %c0_i32_1 = arith.constant 0 : i32
    return %c0_i32, %c0_i32_0 : i32, i32
  }
  func.func @transform_2(%arg0: i32) -> (i32, i32) {
    %c0_i32 = arith.constant 0 : i32
    %c0_i32_0 = arith.constant 0 : i32
    %c0_i32_1 = arith.constant 0 : i32
    return %c0_i32, %c0_i32_0 : i32, i32
  }
  func.func @transform_3(%arg0: i32) -> (i32, i32) {
    %c0_i32 = arith.constant 0 : i32
    %c0_i32_0 = arith.constant 0 : i32
    %c0_i32_1 = arith.constant 0 : i32
    return %c0_i32, %c0_i32_0 : i32, i32
  }
  func.func @transform_4(%arg0: i32) -> (i32, i32) {
    %c0_i32 = arith.constant 0 : i32
    %c0_i32_0 = arith.constant 0 : i32
    %c0_i32_1 = arith.constant 0 : i32
    return %c0_i32, %c0_i32_0 : i32, i32
  }
  func.func @transform_5(%arg0: i32) -> (i32, i32) {
    %c0_i32 = arith.constant 0 : i32
    %c0_i32_0 = arith.constant 0 : i32
    %c0_i32_1 = arith.constant 0 : i32
    return %c0_i32, %c0_i32_0 : i32, i32
  }
  func.func @transform_6(%arg0: i32) -> (i32, i32) {
    %c0_i32 = arith.constant 0 : i32
    %c0_i32_0 = arith.constant 0 : i32
    return %arg0, %c0_i32 : i32, i32
  }
  func.func @transform_7(%arg0: i32) -> (i32, i32) {
    %c0_i32 = arith.constant 0 : i32
    %c0_i32_0 = arith.constant 0 : i32
    return %arg0, %c0_i32 : i32, i32
  }
  func.func @transform_8(%arg0: i32) -> (i32, i32) {
    %c0_i32 = arith.constant 0 : i32
    %c0_i32_0 = arith.constant 0 : i32
    return %arg0, %c0_i32 : i32, i32
  }
  func.func @transform_9(%arg0: i32) -> (i32, i32) {
    %c0_i32 = arith.constant 0 : i32
    %c0_i32_0 = arith.constant 0 : i32
    return %arg0, %c0_i32 : i32, i32
  }
}

module attributes {stable_mosaic.version = 11 : i64} {
  func.func @_edge_attn_kernel(%arg0: i32, %arg1: memref<256xi32, #tpu.memory_space<smem>>, %arg2: memref<256xi32, #tpu.memory_space<smem>>, %arg3: memref<64x128xf32, #tpu.memory_space<vmem>>, %arg4: memref<64x128xf32, #tpu.memory_space<vmem>>, %arg5: memref<64x128xf32, #tpu.memory_space<vmem>>, %arg6: memref<128x128xf32, #tpu.memory_space<vmem>>, %arg7: memref<64x128xf32, #tpu.memory_space<vmem>>, %arg8: memref<64x128xf32, #tpu.memory_space<vmem>>, %arg9: memref<64x128xf32, #tpu.memory_space<vmem>>, %arg10: memref<64x128xf32, #tpu.memory_space<vmem>>, %arg11: memref<64x128xf32, #tpu.memory_space<vmem>>) attributes {dimension_semantics = [#tpu.dimension_semantics<arbitrary>], iteration_bounds = array<i64: 4>, scalar_prefetch = 2 : i64, scratch_operands = 2 : i64, tpu.core_type = #tpu.core_type<tc>, window_params = [{pipeline_mode = #tpu.pipeline_mode<synchronous>, transform_indices = @transform_0, window_bounds = array<i64: 64, 128>}, {pipeline_mode = #tpu.pipeline_mode<synchronous>, transform_indices = @transform_1, window_bounds = array<i64: 64, 128>}, {pipeline_mode = #tpu.pipeline_mode<synchronous>, transform_indices = @transform_2, window_bounds = array<i64: 64, 128>}, {pipeline_mode = #tpu.pipeline_mode<synchronous>, transform_indices = @transform_3, window_bounds = array<i64: 128, 128>}, {transform_indices = @transform_4, window_bounds = array<i64: 64, 128>}, {pipeline_mode = #tpu.pipeline_mode<synchronous>, transform_indices = @transform_5, window_bounds = array<i64: 64, 128>}, {pipeline_mode = #tpu.pipeline_mode<synchronous>, transform_indices = @transform_6, window_bounds = array<i64: 64, 128>}]} {
    %c0_i32 = arith.constant 0 : i32
    %0 = arith.cmpi eq, %arg0, %c0_i32 : i32
    %1 = arith.extui %0 : i1 to i32
    %c0_i32_0 = arith.constant 0 : i32
    %2 = arith.cmpi ne, %1, %c0_i32_0 : i32
    scf.if %2 {
      %cst_19 = arith.constant 0.000000e+00 : f32
      %18 = vector.broadcast %cst_19 : f32 to vector<64x128xf32>
      %c0_20 = arith.constant 0 : index
      %c0_21 = arith.constant 0 : index
      %19 = vector.load %arg8[%c0_20, %c0_21] : memref<64x128xf32, #tpu.memory_space<vmem>>, vector<64x128xf32>
      tpu.vector_store %arg8[%c0_20, %c0_21], %18 {strides = array<i32>} : memref<64x128xf32, #tpu.memory_space<vmem>>, vector<64x128xf32>,
      %cst_22 = arith.constant 0.000000e+00 : f32
      %20 = vector.broadcast %cst_22 : f32 to vector<64x128xf32>
      %c0_23 = arith.constant 0 : index
      %c0_24 = arith.constant 0 : index
      %21 = vector.load %arg9[%c0_23, %c0_24] : memref<64x128xf32, #tpu.memory_space<vmem>>, vector<64x128xf32>
      tpu.vector_store %arg9[%c0_23, %c0_24], %20 {strides = array<i32>} : memref<64x128xf32, #tpu.memory_space<vmem>>, vector<64x128xf32>,
    } else {
    }
    %c64_i32 = arith.constant 64 : i32
    %3 = arith.muli %arg0, %c64_i32 : i32
    %c0_i32_1 = arith.constant 0 : i32
    %c64_i32_2 = arith.constant 64 : i32
    %4 = arith.addi %c0_i32_1, %c64_i32_2 : i32
    %c1_i32 = arith.constant 1 : i32
    scf.for %arg12 = %c0_i32_1 to %4 step %c1_i32  : i32 {
      %18 = arith.addi %3, %arg12 : i32
      %19 = arith.index_cast %18 : i32 to index
      %20 = memref.load %arg1[%19] : memref<256xi32, #tpu.memory_space<smem>>
      %21 = arith.addi %3, %arg12 : i32
      %22 = arith.index_cast %21 : i32 to index
      %23 = memref.load %arg2[%22] : memref<256xi32, #tpu.memory_space<smem>>
      %24 = arith.index_cast %20 : i32 to index
      %c0_19 = arith.constant 0 : index
      %25 = vector.load %arg4[%24, %c0_19] : memref<64x128xf32, #tpu.memory_space<vmem>>, vector<1x128xf32>
      %26 = arith.index_cast %23 : i32 to index
      %c0_20 = arith.constant 0 : index
      %27 = vector.load %arg3[%26, %c0_20] : memref<64x128xf32, #tpu.memory_space<vmem>>, vector<1x128xf32>
      %28 = arith.mulf %25, %27 : vector<1x128xf32>
      %cst_21 = arith.constant 2.500000e-01 : f32
      %29 = vector.broadcast %cst_21 : f32 to vector<1x128xf32>
      %30 = arith.mulf %28, %29 : vector<1x128xf32>
      %31 = arith.index_cast %arg12 : i32 to index
      %c0_22 = arith.constant 0 : index
      %32 = vector.load %arg7[%31, %c0_22] : memref<64x128xf32, #tpu.memory_space<vmem>>, vector<1x128xf32>
      tpu.vector_store %arg7[%31, %c0_22], %30 {strides = array<i32>} : memref<64x128xf32, #tpu.memory_space<vmem>>, vector<1x128xf32>,
      %33 = arith.index_cast %20 : i32 to index
      %c0_23 = arith.constant 0 : index
      %34 = vector.load %arg5[%33, %c0_23] : memref<64x128xf32, #tpu.memory_space<vmem>>, vector<1x128xf32>
      %35 = arith.index_cast %arg12 : i32 to index
      %c0_24 = arith.constant 0 : index
      %36 = vector.load %arg10[%35, %c0_24] : memref<64x128xf32, #tpu.memory_space<vmem>>, vector<1x128xf32>
      tpu.vector_store %arg10[%35, %c0_24], %34 {strides = array<i32>} : memref<64x128xf32, #tpu.memory_space<vmem>>, vector<1x128xf32>,
    }
    %c64_i32_3 = arith.constant 64 : i32
    %c0 = arith.constant 0 : index
    %c0_4 = arith.constant 0 : index
    %5 = vector.load %arg7[%c0, %c0_4] : memref<64x128xf32, #tpu.memory_space<vmem>>, vector<64x128xf32>
    %c0_5 = arith.constant 0 : index
    %c0_6 = arith.constant 0 : index
    %6 = vector.load %arg6[%c0_5, %c0_6] : memref<128x128xf32, #tpu.memory_space<vmem>>, vector<128x128xf32>
    %cst = arith.constant dense<0.000000e+00> : vector<64x128xf32>
    %7 = tpu.matmul %5, %6, %cst {dimension_numbers = #tpu.dot_dimension_numbers<[1], [0], [0], [1], [0, 0, 1, 1], [], []>} : vector<64x128xf32>, vector<128x128xf32>, vector<64x128xf32> -> vector<64x128xf32>
    %cst_7 = arith.constant -5.000000e+00 : f32
    %cst_8 = arith.constant 5.000000e+00 : f32
    %8 = vector.broadcast %cst_7 : f32 to vector<64x128xf32>
    %9 = arith.maximumf %8, %7 : vector<64x128xf32>
    %10 = vector.broadcast %cst_8 : f32 to vector<64x128xf32>
    %11 = arith.minimumf %10, %9 : vector<64x128xf32>
    %12 = math.exp %11 : vector<64x128xf32>
    %c0_9 = arith.constant 0 : index
    %c0_10 = arith.constant 0 : index
    %13 = vector.load %arg11[%c0_9, %c0_10] : memref<64x128xf32, #tpu.memory_space<vmem>>, vector<64x128xf32>
    tpu.vector_store %arg11[%c0_9, %c0_10], %12 {strides = array<i32>} : memref<64x128xf32, #tpu.memory_space<vmem>>, vector<64x128xf32>,
    %c0_11 = arith.constant 0 : index
    %c0_12 = arith.constant 0 : index
    %14 = vector.load %arg10[%c0_11, %c0_12] : memref<64x128xf32, #tpu.memory_space<vmem>>, vector<64x128xf32>
    %15 = arith.mulf %14, %12 : vector<64x128xf32>
    %c0_13 = arith.constant 0 : index
    %c0_14 = arith.constant 0 : index
    %16 = vector.load %arg10[%c0_13, %c0_14] : memref<64x128xf32, #tpu.memory_space<vmem>>, vector<64x128xf32>
    tpu.vector_store %arg10[%c0_13, %c0_14], %15 {strides = array<i32>} : memref<64x128xf32, #tpu.memory_space<vmem>>, vector<64x128xf32>,
    %c0_i32_15 = arith.constant 0 : i32
    %c64_i32_16 = arith.constant 64 : i32
    %17 = arith.addi %c0_i32_15, %c64_i32_16 : i32
    %c1_i32_17 = arith.constant 1 : i32
    scf.for %arg12 = %c0_i32_15 to %17 step %c1_i32_17  : i32 {
      %18 = arith.addi %3, %arg12 : i32
      %19 = arith.index_cast %18 : i32 to index
      %20 = memref.load %arg2[%19] : memref<256xi32, #tpu.memory_space<smem>>
      %21 = arith.index_cast %20 : i32 to index
      %c0_19 = arith.constant 0 : index
      %22 = vector.load %arg8[%21, %c0_19] : memref<64x128xf32, #tpu.memory_space<vmem>>, vector<1x128xf32>
      %23 = arith.index_cast %arg12 : i32 to index
      %c0_20 = arith.constant 0 : index
      %24 = vector.load %arg10[%23, %c0_20] : memref<64x128xf32, #tpu.memory_space<vmem>>, vector<1x128xf32>
      %25 = arith.addf %22, %24 : vector<1x128xf32>
      %26 = arith.index_cast %20 : i32 to index
      %c0_21 = arith.constant 0 : index
      %27 = vector.load %arg8[%26, %c0_21] : memref<64x128xf32, #tpu.memory_space<vmem>>, vector<1x128xf32>
      tpu.vector_store %arg8[%26, %c0_21], %25 {strides = array<i32>} : memref<64x128xf32, #tpu.memory_space<vmem>>, vector<1x128xf32>,
      %28 = arith.index_cast %20 : i32 to index
      %c0_22 = arith.constant 0 : index
      %29 = vector.load %arg9[%28, %c0_22] : memref<64x128xf32, #tpu.memory_space<vmem>>, vector<1x128xf32>
      %30 = arith.index_cast %arg12 : i32 to index
      %c0_23 = arith.constant 0 : index
      %31 = vector.load %arg11[%30, %c0_23] : memref<64x128xf32, #tpu.memory_space<vmem>>, vector<1x128xf32>
      %32 = arith.addf %29, %31 : vector<1x128xf32>
      %33 = arith.index_cast %20 : i32 to index
      %c0_24 = arith.constant 0 : index
      %34 = vector.load %arg9[%33, %c0_24] : memref<64x128xf32, #tpu.memory_space<vmem>>, vector<1x128xf32>
      tpu.vector_store %arg9[%33, %c0_24], %32 {strides = array<i32>} : memref<64x128xf32, #tpu.memory_space<vmem>>, vector<1x128xf32>,
    }
    %c64_i32_18 = arith.constant 64 : i32
    return
  }
  func.func @transform_0(%arg0: i32, %arg1: memref<256xi32, #tpu.memory_space<smem>>, %arg2: memref<256xi32, #tpu.memory_space<smem>>) -> (i32, i32) {
    %c0_i32 = arith.constant 0 : i32
    %c0_i32_0 = arith.constant 0 : i32
    %c0_i32_1 = arith.constant 0 : i32
    return %c0_i32, %c0_i32_0 : i32, i32
  }
  func.func @transform_1(%arg0: i32, %arg1: memref<256xi32, #tpu.memory_space<smem>>, %arg2: memref<256xi32, #tpu.memory_space<smem>>) -> (i32, i32) {
    %c0_i32 = arith.constant 0 : i32
    %c0_i32_0 = arith.constant 0 : i32
    %c0_i32_1 = arith.constant 0 : i32
    return %c0_i32, %c0_i32_0 : i32, i32
  }
  func.func @transform_2(%arg0: i32, %arg1: memref<256xi32, #tpu.memory_space<smem>>, %arg2: memref<256xi32, #tpu.memory_space<smem>>) -> (i32, i32) {
    %c0_i32 = arith.constant 0 : i32
    %c0_i32_0 = arith.constant 0 : i32
    %c0_i32_1 = arith.constant 0 : i32
    return %c0_i32, %c0_i32_0 : i32, i32
  }
  func.func @transform_3(%arg0: i32, %arg1: memref<256xi32, #tpu.memory_space<smem>>, %arg2: memref<256xi32, #tpu.memory_space<smem>>) -> (i32, i32) {
    %c0_i32 = arith.constant 0 : i32
    %c0_i32_0 = arith.constant 0 : i32
    %c0_i32_1 = arith.constant 0 : i32
    return %c0_i32, %c0_i32_0 : i32, i32
  }
  func.func @transform_4(%arg0: i32, %arg1: memref<256xi32, #tpu.memory_space<smem>>, %arg2: memref<256xi32, #tpu.memory_space<smem>>) -> (i32, i32) {
    %c0_i32 = arith.constant 0 : i32
    %c0_i32_0 = arith.constant 0 : i32
    return %arg0, %c0_i32 : i32, i32
  }
  func.func @transform_5(%arg0: i32, %arg1: memref<256xi32, #tpu.memory_space<smem>>, %arg2: memref<256xi32, #tpu.memory_space<smem>>) -> (i32, i32) {
    %c0_i32 = arith.constant 0 : i32
    %c0_i32_0 = arith.constant 0 : i32
    %c0_i32_1 = arith.constant 0 : i32
    return %c0_i32, %c0_i32_0 : i32, i32
  }
  func.func @transform_6(%arg0: i32, %arg1: memref<256xi32, #tpu.memory_space<smem>>, %arg2: memref<256xi32, #tpu.memory_space<smem>>) -> (i32, i32) {
    %c0_i32 = arith.constant 0 : i32
    %c0_i32_0 = arith.constant 0 : i32
    %c0_i32_1 = arith.constant 0 : i32
    return %c0_i32, %c0_i32_0 : i32, i32
  }
}

module attributes {stable_mosaic.version = 11 : i64} {
  func.func @_e_post_kernel(%arg0: i32, %arg1: memref<64x128xf32, #tpu.memory_space<vmem>>, %arg2: memref<1x128xf32, #tpu.memory_space<vmem>>, %arg3: memref<1x128xf32, #tpu.memory_space<vmem>>, %arg4: memref<64x128xf32, #tpu.memory_space<vmem>>, %arg5: memref<128x128xbf16, #tpu.memory_space<vmem>>, %arg6: memref<1x128xf32, #tpu.memory_space<vmem>>, %arg7: memref<64x128xf32, #tpu.memory_space<vmem>>) attributes {dimension_semantics = [#tpu.dimension_semantics<parallel>], iteration_bounds = array<i64: 4>, scalar_prefetch = 0 : i64, scratch_operands = 0 : i64, tpu.core_type = #tpu.core_type<tc>, window_params = [{transform_indices = @transform_0, window_bounds = array<i64: 64, 128>}, {pipeline_mode = #tpu.pipeline_mode<synchronous>, transform_indices = @transform_1, window_bounds = array<i64: 1, 128>}, {pipeline_mode = #tpu.pipeline_mode<synchronous>, transform_indices = @transform_2, window_bounds = array<i64: 1, 128>}, {transform_indices = @transform_3, window_bounds = array<i64: 64, 128>}, {pipeline_mode = #tpu.pipeline_mode<synchronous>, transform_indices = @transform_4, window_bounds = array<i64: 128, 128>}, {pipeline_mode = #tpu.pipeline_mode<synchronous>, transform_indices = @transform_5, window_bounds = array<i64: 1, 128>}, {transform_indices = @transform_6, window_bounds = array<i64: 64, 128>}]} {
    %c0 = arith.constant 0 : index
    %c0_0 = arith.constant 0 : index
    %0 = vector.load %arg1[%c0, %c0_0] : memref<64x128xf32, #tpu.memory_space<vmem>>, vector<64x128xf32>
    %c0_1 = arith.constant 0 : index
    %c0_2 = arith.constant 0 : index
    %1 = vector.load %arg2[%c0_1, %c0_2] : memref<1x128xf32, #tpu.memory_space<vmem>>, vector<1x128xf32>
    %2 = vector.broadcast %1 : vector<1x128xf32> to vector<64x128xf32>
    %3 = arith.mulf %0, %2 : vector<64x128xf32>
    %c0_3 = arith.constant 0 : index
    %c0_4 = arith.constant 0 : index
    %4 = vector.load %arg3[%c0_3, %c0_4] : memref<1x128xf32, #tpu.memory_space<vmem>>, vector<1x128xf32>
    %5 = vector.broadcast %4 : vector<1x128xf32> to vector<64x128xf32>
    %6 = arith.addf %3, %5 : vector<64x128xf32>
    %c0_5 = arith.constant 0 : index
    %c0_6 = arith.constant 0 : index
    %7 = vector.load %arg4[%c0_5, %c0_6] : memref<64x128xf32, #tpu.memory_space<vmem>>, vector<64x128xf32>
    %8 = arith.truncf %7 : vector<64x128xf32> to vector<64x128xbf16>
    %c0_7 = arith.constant 0 : index
    %c0_8 = arith.constant 0 : index
    %9 = vector.load %arg5[%c0_7, %c0_8] : memref<128x128xbf16, #tpu.memory_space<vmem>>, vector<128x128xbf16>
    %cst = arith.constant dense<0.000000e+00> : vector<64x128xf32>
    %10 = tpu.matmul %8, %9, %cst {dimension_numbers = #tpu.dot_dimension_numbers<[1], [0], [0], [1], [0, 0, 1, 1], [], []>} : vector<64x128xbf16>, vector<128x128xbf16>, vector<64x128xf32> -> vector<64x128xf32>
    %11 = arith.addf %6, %10 : vector<64x128xf32>
    %c0_9 = arith.constant 0 : index
    %c0_10 = arith.constant 0 : index
    %12 = vector.load %arg6[%c0_9, %c0_10] : memref<1x128xf32, #tpu.memory_space<vmem>>, vector<1x128xf32>
    %13 = vector.broadcast %12 : vector<1x128xf32> to vector<64x128xf32>
    %14 = arith.addf %11, %13 : vector<64x128xf32>
    %c0_11 = arith.constant 0 : index
    %c0_12 = arith.constant 0 : index
    %15 = vector.load %arg7[%c0_11, %c0_12] : memref<64x128xf32, #tpu.memory_space<vmem>>, vector<64x128xf32>
    tpu.vector_store %arg7[%c0_11, %c0_12], %14 {strides = array<i32>} : memref<64x128xf32, #tpu.memory_space<vmem>>, vector<64x128xf32>,
    return
  }
  func.func @transform_0(%arg0: i32) -> (i32, i32) {
    %c0_i32 = arith.constant 0 : i32
    %c0_i32_0 = arith.constant 0 : i32
    return %arg0, %c0_i32 : i32, i32
  }
  func.func @transform_1(%arg0: i32) -> (i32, i32) {
    %c0_i32 = arith.constant 0 : i32
    %c0_i32_0 = arith.constant 0 : i32
    %c0_i32_1 = arith.constant 0 : i32
    return %c0_i32, %c0_i32_0 : i32, i32
  }
  func.func @transform_2(%arg0: i32) -> (i32, i32) {
    %c0_i32 = arith.constant 0 : i32
    %c0_i32_0 = arith.constant 0 : i32
    %c0_i32_1 = arith.constant 0 : i32
    return %c0_i32, %c0_i32_0 : i32, i32
  }
  func.func @transform_3(%arg0: i32) -> (i32, i32) {
    %c0_i32 = arith.constant 0 : i32
    %c0_i32_0 = arith.constant 0 : i32
    return %arg0, %c0_i32 : i32, i32
  }
  func.func @transform_4(%arg0: i32) -> (i32, i32) {
    %c0_i32 = arith.constant 0 : i32
    %c0_i32_0 = arith.constant 0 : i32
    %c0_i32_1 = arith.constant 0 : i32
    return %c0_i32, %c0_i32_0 : i32, i32
  }
  func.func @transform_5(%arg0: i32) -> (i32, i32) {
    %c0_i32 = arith.constant 0 : i32
    %c0_i32_0 = arith.constant 0 : i32
    %c0_i32_1 = arith.constant 0 : i32
    return %c0_i32, %c0_i32_0 : i32, i32
  }
  func.func @transform_6(%arg0: i32) -> (i32, i32) {
    %c0_i32 = arith.constant 0 : i32
    %c0_i32_0 = arith.constant 0 : i32
    return %arg0, %c0_i32 : i32, i32
  }
}

module attributes {stable_mosaic.version = 11 : i64} {
  func.func @_bn_ffn_kernel(%arg0: i32, %arg1: memref<64x128xf32, #tpu.memory_space<vmem>>, %arg2: memref<1x128xf32, #tpu.memory_space<vmem>>, %arg3: memref<1x128xf32, #tpu.memory_space<vmem>>, %arg4: memref<128x256xbf16, #tpu.memory_space<vmem>>, %arg5: memref<1x256xf32, #tpu.memory_space<vmem>>, %arg6: memref<256x128xbf16, #tpu.memory_space<vmem>>, %arg7: memref<1x128xf32, #tpu.memory_space<vmem>>, %arg8: memref<64x128xf32, #tpu.memory_space<vmem>>) attributes {dimension_semantics = [#tpu.dimension_semantics<parallel>], iteration_bounds = array<i64: 4>, scalar_prefetch = 0 : i64, scratch_operands = 0 : i64, tpu.core_type = #tpu.core_type<tc>, window_params = [{transform_indices = @transform_0, window_bounds = array<i64: 64, 128>}, {pipeline_mode = #tpu.pipeline_mode<synchronous>, transform_indices = @transform_1, window_bounds = array<i64: 1, 128>}, {pipeline_mode = #tpu.pipeline_mode<synchronous>, transform_indices = @transform_2, window_bounds = array<i64: 1, 128>}, {pipeline_mode = #tpu.pipeline_mode<synchronous>, transform_indices = @transform_3, window_bounds = array<i64: 128, 256>}, {pipeline_mode = #tpu.pipeline_mode<synchronous>, transform_indices = @transform_4, window_bounds = array<i64: 1, 256>}, {pipeline_mode = #tpu.pipeline_mode<synchronous>, transform_indices = @transform_5, window_bounds = array<i64: 256, 128>}, {pipeline_mode = #tpu.pipeline_mode<synchronous>, transform_indices = @transform_6, window_bounds = array<i64: 1, 128>}, {transform_indices = @transform_7, window_bounds = array<i64: 64, 128>}]} {
    %c0 = arith.constant 0 : index
    %c0_0 = arith.constant 0 : index
    %0 = vector.load %arg1[%c0, %c0_0] : memref<64x128xf32, #tpu.memory_space<vmem>>, vector<64x128xf32>
    %c0_1 = arith.constant 0 : index
    %c0_2 = arith.constant 0 : index
    %1 = vector.load %arg2[%c0_1, %c0_2] : memref<1x128xf32, #tpu.memory_space<vmem>>, vector<1x128xf32>
    %2 = vector.broadcast %1 : vector<1x128xf32> to vector<64x128xf32>
    %3 = arith.mulf %0, %2 : vector<64x128xf32>
    %c0_3 = arith.constant 0 : index
    %c0_4 = arith.constant 0 : index
    %4 = vector.load %arg3[%c0_3, %c0_4] : memref<1x128xf32, #tpu.memory_space<vmem>>, vector<1x128xf32>
    %5 = vector.broadcast %4 : vector<1x128xf32> to vector<64x128xf32>
    %6 = arith.addf %3, %5 : vector<64x128xf32>
    %7 = arith.truncf %6 : vector<64x128xf32> to vector<64x128xbf16>
    %c0_5 = arith.constant 0 : index
    %c0_6 = arith.constant 0 : index
    %8 = vector.load %arg4[%c0_5, %c0_6] : memref<128x256xbf16, #tpu.memory_space<vmem>>, vector<128x256xbf16>
    %cst = arith.constant dense<0.000000e+00> : vector<64x256xf32>
    %9 = tpu.matmul %7, %8, %cst {dimension_numbers = #tpu.dot_dimension_numbers<[1], [0], [0], [1], [0, 0, 1, 1], [], []>} : vector<64x128xbf16>, vector<128x256xbf16>, vector<64x256xf32> -> vector<64x256xf32>
    %c0_7 = arith.constant 0 : index
    %c0_8 = arith.constant 0 : index
    %10 = vector.load %arg5[%c0_7, %c0_8] : memref<1x256xf32, #tpu.memory_space<vmem>>, vector<1x256xf32>
    %11 = vector.broadcast %10 : vector<1x256xf32> to vector<64x256xf32>
    %12 = arith.addf %9, %11 : vector<64x256xf32>
    %cst_9 = arith.constant 0.000000e+00 : f32
    %13 = vector.broadcast %cst_9 : f32 to vector<64x256xf32>
    %14 = arith.maximumf %12, %13 : vector<64x256xf32>
    %15 = arith.truncf %14 : vector<64x256xf32> to vector<64x256xbf16>
    %c0_10 = arith.constant 0 : index
    %c0_11 = arith.constant 0 : index
    %16 = vector.load %arg6[%c0_10, %c0_11] : memref<256x128xbf16, #tpu.memory_space<vmem>>, vector<256x128xbf16>
    %cst_12 = arith.constant dense<0.000000e+00> : vector<64x128xf32>
    %17 = tpu.matmul %15, %16, %cst_12 {dimension_numbers = #tpu.dot_dimension_numbers<[1], [0], [0], [1], [0, 0, 1, 1], [], []>} : vector<64x256xbf16>, vector<256x128xbf16>, vector<64x128xf32> -> vector<64x128xf32>
    %18 = arith.addf %6, %17 : vector<64x128xf32>
    %c0_13 = arith.constant 0 : index
    %c0_14 = arith.constant 0 : index
    %19 = vector.load %arg7[%c0_13, %c0_14] : memref<1x128xf32, #tpu.memory_space<vmem>>, vector<1x128xf32>
    %20 = vector.broadcast %19 : vector<1x128xf32> to vector<64x128xf32>
    %21 = arith.addf %18, %20 : vector<64x128xf32>
    %c0_15 = arith.constant 0 : index
    %c0_16 = arith.constant 0 : index
    %22 = vector.load %arg8[%c0_15, %c0_16] : memref<64x128xf32, #tpu.memory_space<vmem>>, vector<64x128xf32>
    tpu.vector_store %arg8[%c0_15, %c0_16], %21 {strides = array<i32>} : memref<64x128xf32, #tpu.memory_space<vmem>>, vector<64x128xf32>,
    return
  }
  func.func @transform_0(%arg0: i32) -> (i32, i32) {
    %c0_i32 = arith.constant 0 : i32
    %c0_i32_0 = arith.constant 0 : i32
    return %arg0, %c0_i32 : i32, i32
  }
  func.func @transform_1(%arg0: i32) -> (i32, i32) {
    %c0_i32 = arith.constant 0 : i32
    %c0_i32_0 = arith.constant 0 : i32
    %c0_i32_1 = arith.constant 0 : i32
    return %c0_i32, %c0_i32_0 : i32, i32
  }
  func.func @transform_2(%arg0: i32) -> (i32, i32) {
    %c0_i32 = arith.constant 0 : i32
    %c0_i32_0 = arith.constant 0 : i32
    %c0_i32_1 = arith.constant 0 : i32
    return %c0_i32, %c0_i32_0 : i32, i32
  }
  func.func @transform_3(%arg0: i32) -> (i32, i32) {
    %c0_i32 = arith.constant 0 : i32
    %c0_i32_0 = arith.constant 0 : i32
    %c0_i32_1 = arith.constant 0 : i32
    return %c0_i32, %c0_i32_0 : i32, i32
  }
  func.func @transform_4(%arg0: i32) -> (i32, i32) {
    %c0_i32 = arith.constant 0 : i32
    %c0_i32_0 = arith.constant 0 : i32
    %c0_i32_1 = arith.constant 0 : i32
    return %c0_i32, %c0_i32_0 : i32, i32
  }
  func.func @transform_5(%arg0: i32) -> (i32, i32) {
    %c0_i32 = arith.constant 0 : i32
    %c0_i32_0 = arith.constant 0 : i32
    %c0_i32_1 = arith.constant 0 : i32
    return %c0_i32, %c0_i32_0 : i32, i32
  }
  func.func @transform_6(%arg0: i32) -> (i32, i32) {
    %c0_i32 = arith.constant 0 : i32
    %c0_i32_0 = arith.constant 0 : i32
    %c0_i32_1 = arith.constant 0 : i32
    return %c0_i32, %c0_i32_0 : i32, i32
  }
  func.func @transform_7(%arg0: i32) -> (i32, i32) {
    %c0_i32 = arith.constant 0 : i32
    %c0_i32_0 = arith.constant 0 : i32
    return %arg0, %c0_i32 : i32, i32
  }
}

module attributes {stable_mosaic.version = 11 : i64} {
  func.func @_h_post_kernel(%arg0: i32, %arg1: memref<32x128xf32, #tpu.memory_space<vmem>>, %arg2: memref<32x128xf32, #tpu.memory_space<vmem>>, %arg3: memref<32x128xf32, #tpu.memory_space<vmem>>, %arg4: memref<128x128xbf16, #tpu.memory_space<vmem>>, %arg5: memref<1x128xf32, #tpu.memory_space<vmem>>, %arg6: memref<32x128xf32, #tpu.memory_space<vmem>>) attributes {dimension_semantics = [#tpu.dimension_semantics<parallel>], iteration_bounds = array<i64: 2>, scalar_prefetch = 0 : i64, scratch_operands = 0 : i64, tpu.core_type = #tpu.core_type<tc>, window_params = [{transform_indices = @transform_0, window_bounds = array<i64: 32, 128>}, {transform_indices = @transform_1, window_bounds = array<i64: 32, 128>}, {transform_indices = @transform_2, window_bounds = array<i64: 32, 128>}, {pipeline_mode = #tpu.pipeline_mode<synchronous>, transform_indices = @transform_3, window_bounds = array<i64: 128, 128>}, {pipeline_mode = #tpu.pipeline_mode<synchronous>, transform_indices = @transform_4, window_bounds = array<i64: 1, 128>}, {transform_indices = @transform_5, window_bounds = array<i64: 32, 128>}]} {
    %c0 = arith.constant 0 : index
    %c0_0 = arith.constant 0 : index
    %0 = vector.load %arg2[%c0, %c0_0] : memref<32x128xf32, #tpu.memory_space<vmem>>, vector<32x128xf32>
    %c0_1 = arith.constant 0 : index
    %c0_2 = arith.constant 0 : index
    %1 = vector.load %arg3[%c0_1, %c0_2] : memref<32x128xf32, #tpu.memory_space<vmem>>, vector<32x128xf32>
    %cst = arith.constant 9.99999997E-7 : f32
    %2 = vector.broadcast %cst : f32 to vector<32x128xf32>
    %3 = arith.addf %1, %2 : vector<32x128xf32>
    %4 = tpu.reciprocal %3 {approx = true} : vector<32x128xf32> -> vector<32x128xf32>
    %5 = arith.mulf %0, %4 : vector<32x128xf32>
    %6 = arith.truncf %5 : vector<32x128xf32> to vector<32x128xbf16>
    %c0_3 = arith.constant 0 : index
    %c0_4 = arith.constant 0 : index
    %7 = vector.load %arg4[%c0_3, %c0_4] : memref<128x128xbf16, #tpu.memory_space<vmem>>, vector<128x128xbf16>
    %cst_5 = arith.constant dense<0.000000e+00> : vector<32x128xf32>
    %8 = tpu.matmul %6, %7, %cst_5 {dimension_numbers = #tpu.dot_dimension_numbers<[1], [0], [0], [1], [0, 0, 1, 1], [], []>} : vector<32x128xbf16>, vector<128x128xbf16>, vector<32x128xf32> -> vector<32x128xf32>
    %c0_6 = arith.constant 0 : index
    %c0_7 = arith.constant 0 : index
    %9 = vector.load %arg1[%c0_6, %c0_7] : memref<32x128xf32, #tpu.memory_space<vmem>>, vector<32x128xf32>
    %10 = arith.addf %9, %8 : vector<32x128xf32>
    %c0_8 = arith.constant 0 : index
    %c0_9 = arith.constant 0 : index
    %11 = vector.load %arg5[%c0_8, %c0_9] : memref<1x128xf32, #tpu.memory_space<vmem>>, vector<1x128xf32>
    %12 = vector.broadcast %11 : vector<1x128xf32> to vector<32x128xf32>
    %13 = arith.addf %10, %12 : vector<32x128xf32>
    %c0_10 = arith.constant 0 : index
    %c0_11 = arith.constant 0 : index
    %14 = vector.load %arg6[%c0_10, %c0_11] : memref<32x128xf32, #tpu.memory_space<vmem>>, vector<32x128xf32>
    tpu.vector_store %arg6[%c0_10, %c0_11], %13 {strides = array<i32>} : memref<32x128xf32, #tpu.memory_space<vmem>>, vector<32x128xf32>,
    return
  }
  func.func @transform_0(%arg0: i32) -> (i32, i32) {
    %c0_i32 = arith.constant 0 : i32
    %c0_i32_0 = arith.constant 0 : i32
    return %arg0, %c0_i32 : i32, i32
  }
  func.func @transform_1(%arg0: i32) -> (i32, i32) {
    %c0_i32 = arith.constant 0 : i32
    %c0_i32_0 = arith.constant 0 : i32
    return %arg0, %c0_i32 : i32, i32
  }
  func.func @transform_2(%arg0: i32) -> (i32, i32) {
    %c0_i32 = arith.constant 0 : i32
    %c0_i32_0 = arith.constant 0 : i32
    return %arg0, %c0_i32 : i32, i32
  }
  func.func @transform_3(%arg0: i32) -> (i32, i32) {
    %c0_i32 = arith.constant 0 : i32
    %c0_i32_0 = arith.constant 0 : i32
    %c0_i32_1 = arith.constant 0 : i32
    return %c0_i32, %c0_i32_0 : i32, i32
  }
  func.func @transform_4(%arg0: i32) -> (i32, i32) {
    %c0_i32 = arith.constant 0 : i32
    %c0_i32_0 = arith.constant 0 : i32
    %c0_i32_1 = arith.constant 0 : i32
    return %c0_i32, %c0_i32_0 : i32, i32
  }
  func.func @transform_5(%arg0: i32) -> (i32, i32) {
    %c0_i32 = arith.constant 0 : i32
    %c0_i32_0 = arith.constant 0 : i32
    return %arg0, %c0_i32 : i32, i32
  }
}

module attributes {stable_mosaic.version = 11 : i64} {
  func.func @_bn_ffn_kernel(%arg0: i32, %arg1: memref<32x128xf32, #tpu.memory_space<vmem>>, %arg2: memref<1x128xf32, #tpu.memory_space<vmem>>, %arg3: memref<1x128xf32, #tpu.memory_space<vmem>>, %arg4: memref<128x256xbf16, #tpu.memory_space<vmem>>, %arg5: memref<1x256xf32, #tpu.memory_space<vmem>>, %arg6: memref<256x128xbf16, #tpu.memory_space<vmem>>, %arg7: memref<1x128xf32, #tpu.memory_space<vmem>>, %arg8: memref<32x128xf32, #tpu.memory_space<vmem>>) attributes {dimension_semantics = [#tpu.dimension_semantics<parallel>], iteration_bounds = array<i64: 2>, scalar_prefetch = 0 : i64, scratch_operands = 0 : i64, tpu.core_type = #tpu.core_type<tc>, window_params = [{transform_indices = @transform_0, window_bounds = array<i64: 32, 128>}, {pipeline_mode = #tpu.pipeline_mode<synchronous>, transform_indices = @transform_1, window_bounds = array<i64: 1, 128>}, {pipeline_mode = #tpu.pipeline_mode<synchronous>, transform_indices = @transform_2, window_bounds = array<i64: 1, 128>}, {pipeline_mode = #tpu.pipeline_mode<synchronous>, transform_indices = @transform_3, window_bounds = array<i64: 128, 256>}, {pipeline_mode = #tpu.pipeline_mode<synchronous>, transform_indices = @transform_4, window_bounds = array<i64: 1, 256>}, {pipeline_mode = #tpu.pipeline_mode<synchronous>, transform_indices = @transform_5, window_bounds = array<i64: 256, 128>}, {pipeline_mode = #tpu.pipeline_mode<synchronous>, transform_indices = @transform_6, window_bounds = array<i64: 1, 128>}, {transform_indices = @transform_7, window_bounds = array<i64: 32, 128>}]} {
    %c0 = arith.constant 0 : index
    %c0_0 = arith.constant 0 : index
    %0 = vector.load %arg1[%c0, %c0_0] : memref<32x128xf32, #tpu.memory_space<vmem>>, vector<32x128xf32>
    %c0_1 = arith.constant 0 : index
    %c0_2 = arith.constant 0 : index
    %1 = vector.load %arg2[%c0_1, %c0_2] : memref<1x128xf32, #tpu.memory_space<vmem>>, vector<1x128xf32>
    %2 = vector.broadcast %1 : vector<1x128xf32> to vector<32x128xf32>
    %3 = arith.mulf %0, %2 : vector<32x128xf32>
    %c0_3 = arith.constant 0 : index
    %c0_4 = arith.constant 0 : index
    %4 = vector.load %arg3[%c0_3, %c0_4] : memref<1x128xf32, #tpu.memory_space<vmem>>, vector<1x128xf32>
    %5 = vector.broadcast %4 : vector<1x128xf32> to vector<32x128xf32>
    %6 = arith.addf %3, %5 : vector<32x128xf32>
    %7 = arith.truncf %6 : vector<32x128xf32> to vector<32x128xbf16>
    %c0_5 = arith.constant 0 : index
    %c0_6 = arith.constant 0 : index
    %8 = vector.load %arg4[%c0_5, %c0_6] : memref<128x256xbf16, #tpu.memory_space<vmem>>, vector<128x256xbf16>
    %cst = arith.constant dense<0.000000e+00> : vector<32x256xf32>
    %9 = tpu.matmul %7, %8, %cst {dimension_numbers = #tpu.dot_dimension_numbers<[1], [0], [0], [1], [0, 0, 1, 1], [], []>} : vector<32x128xbf16>, vector<128x256xbf16>, vector<32x256xf32> -> vector<32x256xf32>
    %c0_7 = arith.constant 0 : index
    %c0_8 = arith.constant 0 : index
    %10 = vector.load %arg5[%c0_7, %c0_8] : memref<1x256xf32, #tpu.memory_space<vmem>>, vector<1x256xf32>
    %11 = vector.broadcast %10 : vector<1x256xf32> to vector<32x256xf32>
    %12 = arith.addf %9, %11 : vector<32x256xf32>
    %cst_9 = arith.constant 0.000000e+00 : f32
    %13 = vector.broadcast %cst_9 : f32 to vector<32x256xf32>
    %14 = arith.maximumf %12, %13 : vector<32x256xf32>
    %15 = arith.truncf %14 : vector<32x256xf32> to vector<32x256xbf16>
    %c0_10 = arith.constant 0 : index
    %c0_11 = arith.constant 0 : index
    %16 = vector.load %arg6[%c0_10, %c0_11] : memref<256x128xbf16, #tpu.memory_space<vmem>>, vector<256x128xbf16>
    %cst_12 = arith.constant dense<0.000000e+00> : vector<32x128xf32>
    %17 = tpu.matmul %15, %16, %cst_12 {dimension_numbers = #tpu.dot_dimension_numbers<[1], [0], [0], [1], [0, 0, 1, 1], [], []>} : vector<32x256xbf16>, vector<256x128xbf16>, vector<32x128xf32> -> vector<32x128xf32>
    %18 = arith.addf %6, %17 : vector<32x128xf32>
    %c0_13 = arith.constant 0 : index
    %c0_14 = arith.constant 0 : index
    %19 = vector.load %arg7[%c0_13, %c0_14] : memref<1x128xf32, #tpu.memory_space<vmem>>, vector<1x128xf32>
    %20 = vector.broadcast %19 : vector<1x128xf32> to vector<32x128xf32>
    %21 = arith.addf %18, %20 : vector<32x128xf32>
    %c0_15 = arith.constant 0 : index
    %c0_16 = arith.constant 0 : index
    %22 = vector.load %arg8[%c0_15, %c0_16] : memref<32x128xf32, #tpu.memory_space<vmem>>, vector<32x128xf32>
    tpu.vector_store %arg8[%c0_15, %c0_16], %21 {strides = array<i32>} : memref<32x128xf32, #tpu.memory_space<vmem>>, vector<32x128xf32>,
    return
  }
  func.func @transform_0(%arg0: i32) -> (i32, i32) {
    %c0_i32 = arith.constant 0 : i32
    %c0_i32_0 = arith.constant 0 : i32
    return %arg0, %c0_i32 : i32, i32
  }
  func.func @transform_1(%arg0: i32) -> (i32, i32) {
    %c0_i32 = arith.constant 0 : i32
    %c0_i32_0 = arith.constant 0 : i32
    %c0_i32_1 = arith.constant 0 : i32
    return %c0_i32, %c0_i32_0 : i32, i32
  }
  func.func @transform_2(%arg0: i32) -> (i32, i32) {
    %c0_i32 = arith.constant 0 : i32
    %c0_i32_0 = arith.constant 0 : i32
    %c0_i32_1 = arith.constant 0 : i32
    return %c0_i32, %c0_i32_0 : i32, i32
  }
  func.func @transform_3(%arg0: i32) -> (i32, i32) {
    %c0_i32 = arith.constant 0 : i32
    %c0_i32_0 = arith.constant 0 : i32
    %c0_i32_1 = arith.constant 0 : i32
    return %c0_i32, %c0_i32_0 : i32, i32
  }
  func.func @transform_4(%arg0: i32) -> (i32, i32) {
    %c0_i32 = arith.constant 0 : i32
    %c0_i32_0 = arith.constant 0 : i32
    %c0_i32_1 = arith.constant 0 : i32
    return %c0_i32, %c0_i32_0 : i32, i32
  }
  func.func @transform_5(%arg0: i32) -> (i32, i32) {
    %c0_i32 = arith.constant 0 : i32
    %c0_i32_0 = arith.constant 0 : i32
    %c0_i32_1 = arith.constant 0 : i32
    return %c0_i32, %c0_i32_0 : i32, i32
  }
  func.func @transform_6(%arg0: i32) -> (i32, i32) {
    %c0_i32 = arith.constant 0 : i32
    %c0_i32_0 = arith.constant 0 : i32
    %c0_i32_1 = arith.constant 0 : i32
    return %c0_i32, %c0_i32_0 : i32, i32
  }
  func.func @transform_7(%arg0: i32) -> (i32, i32) {
    %c0_i32 = arith.constant 0 : i32
    %c0_i32_0 = arith.constant 0 : i32
    return %arg0, %c0_i32 : i32, i32
  }
}

module attributes {stable_mosaic.version = 11 : i64} {
  func.func @_bn_ffn_kernel(%arg0: i32, %arg1: memref<32x128xf32, #tpu.memory_space<vmem>>, %arg2: memref<1x128xf32, #tpu.memory_space<vmem>>, %arg3: memref<1x128xf32, #tpu.memory_space<vmem>>, %arg4: memref<128x256xbf16, #tpu.memory_space<vmem>>, %arg5: memref<1x256xf32, #tpu.memory_space<vmem>>, %arg6: memref<256x128xbf16, #tpu.memory_space<vmem>>, %arg7: memref<1x128xf32, #tpu.memory_space<vmem>>, %arg8: memref<32x128xf32, #tpu.memory_space<vmem>>) attributes {dimension_semantics = [#tpu.dimension_semantics<parallel>], iteration_bounds = array<i64: 2>, scalar_prefetch = 0 : i64, scratch_operands = 0 : i64, tpu.core_type = #tpu.core_type<tc>, window_params = [{transform_indices = @transform_0, window_bounds = array<i64: 32, 128>}, {pipeline_mode = #tpu.pipeline_mode<synchronous>, transform_indices = @transform_1, window_bounds = array<i64: 1, 128>}, {pipeline_mode = #tpu.pipeline_mode<synchronous>, transform_indices = @transform_2, window_bounds = array<i64: 1, 128>}, {pipeline_mode = #tpu.pipeline_mode<synchronous>, transform_indices = @transform_3, window_bounds = array<i64: 128, 256>}, {pipeline_mode = #tpu.pipeline_mode<synchronous>, transform_indices = @transform_4, window_bounds = array<i64: 1, 256>}, {pipeline_mode = #tpu.pipeline_mode<synchronous>, transform_indices = @transform_5, window_bounds = array<i64: 256, 128>}, {pipeline_mode = #tpu.pipeline_mode<synchronous>, transform_indices = @transform_6, window_bounds = array<i64: 1, 128>}, {transform_indices = @transform_7, window_bounds = array<i64: 32, 128>}]} {
    %c0 = arith.constant 0 : index
    %c0_0 = arith.constant 0 : index
    %0 = vector.load %arg1[%c0, %c0_0] : memref<32x128xf32, #tpu.memory_space<vmem>>, vector<32x128xf32>
    %c0_1 = arith.constant 0 : index
    %c0_2 = arith.constant 0 : index
    %1 = vector.load %arg2[%c0_1, %c0_2] : memref<1x128xf32, #tpu.memory_space<vmem>>, vector<1x128xf32>
    %2 = vector.broadcast %1 : vector<1x128xf32> to vector<32x128xf32>
    %3 = arith.mulf %0, %2 : vector<32x128xf32>
    %c0_3 = arith.constant 0 : index
    %c0_4 = arith.constant 0 : index
    %4 = vector.load %arg3[%c0_3, %c0_4] : memref<1x128xf32, #tpu.memory_space<vmem>>, vector<1x128xf32>
    %5 = vector.broadcast %4 : vector<1x128xf32> to vector<32x128xf32>
    %6 = arith.addf %3, %5 : vector<32x128xf32>
    %7 = arith.truncf %6 : vector<32x128xf32> to vector<32x128xbf16>
    %c0_5 = arith.constant 0 : index
    %c0_6 = arith.constant 0 : index
    %8 = vector.load %arg4[%c0_5, %c0_6] : memref<128x256xbf16, #tpu.memory_space<vmem>>, vector<128x256xbf16>
    %cst = arith.constant dense<0.000000e+00> : vector<32x256xf32>
    %9 = tpu.matmul %7, %8, %cst {dimension_numbers = #tpu.dot_dimension_numbers<[1], [0], [0], [1], [0, 0, 1, 1], [], []>} : vector<32x128xbf16>, vector<128x256xbf16>, vector<32x256xf32> -> vector<32x256xf32>
    %c0_7 = arith.constant 0 : index
    %c0_8 = arith.constant 0 : index
    %10 = vector.load %arg5[%c0_7, %c0_8] : memref<1x256xf32, #tpu.memory_space<vmem>>, vector<1x256xf32>
    %11 = vector.broadcast %10 : vector<1x256xf32> to vector<32x256xf32>
    %12 = arith.addf %9, %11 : vector<32x256xf32>
    %cst_9 = arith.constant 0.000000e+00 : f32
    %13 = vector.broadcast %cst_9 : f32 to vector<32x256xf32>
    %14 = arith.maximumf %12, %13 : vector<32x256xf32>
    %15 = arith.truncf %14 : vector<32x256xf32> to vector<32x256xbf16>
    %c0_10 = arith.constant 0 : index
    %c0_11 = arith.constant 0 : index
    %16 = vector.load %arg6[%c0_10, %c0_11] : memref<256x128xbf16, #tpu.memory_space<vmem>>, vector<256x128xbf16>
    %cst_12 = arith.constant dense<0.000000e+00> : vector<32x128xf32>
    %17 = tpu.matmul %15, %16, %cst_12 {dimension_numbers = #tpu.dot_dimension_numbers<[1], [0], [0], [1], [0, 0, 1, 1], [], []>} : vector<32x256xbf16>, vector<256x128xbf16>, vector<32x128xf32> -> vector<32x128xf32>
    %18 = arith.addf %6, %17 : vector<32x128xf32>
    %c0_13 = arith.constant 0 : index
    %c0_14 = arith.constant 0 : index
    %19 = vector.load %arg7[%c0_13, %c0_14] : memref<1x128xf32, #tpu.memory_space<vmem>>, vector<1x128xf32>
    %20 = vector.broadcast %19 : vector<1x128xf32> to vector<32x128xf32>
    %21 = arith.addf %18, %20 : vector<32x128xf32>
    %c0_15 = arith.constant 0 : index
    %c0_16 = arith.constant 0 : index
    %22 = vector.load %arg8[%c0_15, %c0_16] : memref<32x128xf32, #tpu.memory_space<vmem>>, vector<32x128xf32>
    tpu.vector_store %arg8[%c0_15, %c0_16], %21 {strides = array<i32>} : memref<32x128xf32, #tpu.memory_space<vmem>>, vector<32x128xf32>,
    return
  }
  func.func @transform_0(%arg0: i32) -> (i32, i32) {
    %c0_i32 = arith.constant 0 : i32
    %c0_i32_0 = arith.constant 0 : i32
    return %arg0, %c0_i32 : i32, i32
  }
  func.func @transform_1(%arg0: i32) -> (i32, i32) {
    %c0_i32 = arith.constant 0 : i32
    %c0_i32_0 = arith.constant 0 : i32
    %c0_i32_1 = arith.constant 0 : i32
    return %c0_i32, %c0_i32_0 : i32, i32
  }
  func.func @transform_2(%arg0: i32) -> (i32, i32) {
    %c0_i32 = arith.constant 0 : i32
    %c0_i32_0 = arith.constant 0 : i32
    %c0_i32_1 = arith.constant 0 : i32
    return %c0_i32, %c0_i32_0 : i32, i32
  }
  func.func @transform_3(%arg0: i32) -> (i32, i32) {
    %c0_i32 = arith.constant 0 : i32
    %c0_i32_0 = arith.constant 0 : i32
    %c0_i32_1 = arith.constant 0 : i32
    return %c0_i32, %c0_i32_0 : i32, i32
  }
  func.func @transform_4(%arg0: i32) -> (i32, i32) {
    %c0_i32 = arith.constant 0 : i32
    %c0_i32_0 = arith.constant 0 : i32
    %c0_i32_1 = arith.constant 0 : i32
    return %c0_i32, %c0_i32_0 : i32, i32
  }
  func.func @transform_5(%arg0: i32) -> (i32, i32) {
    %c0_i32 = arith.constant 0 : i32
    %c0_i32_0 = arith.constant 0 : i32
    %c0_i32_1 = arith.constant 0 : i32
    return %c0_i32, %c0_i32_0 : i32, i32
  }
  func.func @transform_6(%arg0: i32) -> (i32, i32) {
    %c0_i32 = arith.constant 0 : i32
    %c0_i32_0 = arith.constant 0 : i32
    %c0_i32_1 = arith.constant 0 : i32
    return %c0_i32, %c0_i32_0 : i32, i32
  }
  func.func @transform_7(%arg0: i32) -> (i32, i32) {
    %c0_i32 = arith.constant 0 : i32
    %c0_i32_0 = arith.constant 0 : i32
    return %arg0, %c0_i32 : i32, i32
  }
}

</mosaic_0001>

<bundles_post_ra>
// kernel: graph_transformer_stack.19
= control target key start
LH: loop header
LB: loop body
LE: loop exit
PB: predicated region body
PF: predicated region fallthrough
CT: control target
= control target key end

     0   :  { %s996_s0 = inlined_call_operand.vmem [shape: s32[256], index: 0, kind: input, shape index: {}]   ;;  %s997_s2 = inlined_call_operand.vmem [shape: f32[64,128], index: 2, kind: input, shape index: {}]   ;;  %s998_s3 = inlined_call_operand.vmem [shape: f32[64,128], index: 3, kind: input, shape index: {}]   ;;  %s999_s4 = inlined_call_operand.vmem [shape: f32[64,128], index: 4, kind: input, shape index: {}]   ;;  %s1000_s5 = inlined_call_operand.vmem [shape: f32[128,128], index: 5, kind: input, shape index: {}]   ;;  %s1001_s6 = inlined_call_operand.vmem [shape: f32[256,128], index: 6, kind: output, shape index: {0}]   ;;  %s1002_s7 = inlined_call_operand.vmem [shape: f32[64,128], index: 7, kind: output, shape index: {1}]   ;;  %s1003_s8 = inlined_call_operand.vmem [shape: f32[64,128], index: 8, kind: output, shape index: {2}]   ;;  %s1004_s1 = inlined_call_operand.vmem [shape: s32[256], index: 1, kind: input, shape index: {}]  }
   0x1   :  { %s14_s29 = sshll.u32 %s996_s0, 4  ;;  %s18_s10 = sshll.u32 %s1004_s1, 4  ;;  %s15_s29 = int_to_ptr.vmem [resolvable:$true] %s14_s29  ;;  %s19_s10 = int_to_ptr.vmem [resolvable:$true] %s18_s10 }
   0x2   :  { %s747_s11 = scalar_lea.vmem %s15_s29, 32  ;;  %p752_p1 = scmp.lt.s32.totalorder %s15_s29, %s15_s29 }
   0x3   :  { %p748_p0 = scmp.ne.s32.totalorder %s15_s29, %s747_s11  ;;  %p753_p2 = scmp.lt.s32.totalorder %s747_s11, %s747_s11 }
   0x5   :  { %p754_p3 = por %p753_p2, %p752_p1 }
   0x7   :  { %p755_p4 = pnand %p754_p3, %p748_p0 }
   0x9   :  { %758 = shalt.err (!%p755_p4)  }
   0xa   :  { %s797_s12 = smov [#allocation5]   ;;  %s759_s13 = scalar_lea.vmem %s19_s10, 32 }
   0xb   :  { %17 = dma.vmem_to_smem %s15_s29, 32, %s797_s12, [#allocation4] }
   0xc   :  { %p760_p5 = scmp.ne.s32.totalorder %s19_s10, %s759_s13  ;;  %p764_p6 = scmp.lt.s32.totalorder %s19_s10, %s19_s10 }
   0xd   :  { %p765_p7 = scmp.lt.s32.totalorder %s759_s13, %s759_s13 }
   0xf   :  { %p766_p8 = por %p765_p7, %p764_p6 }
  0x11   :  { %p767_p9 = pnand %p766_p8, %p760_p5 }
  0x13   :  { %770 = shalt.err (!%p767_p9)  }
  0x14   :  { %s798_s0 = smov [#allocation6]  }
  0x15   :  { %21 = dma.vmem_to_smem %s19_s10, 32, %s798_s0, [#allocation4] }
  0x16   :  { %783 = dma.done.wait [#allocation4], 64 }
  0x17   :  { %784 = vsyncadd [#allocation4], 4294967232 }
  0x18   :  { %23 = sfence }
  0x19   :  { %s851_s1 = smov 0  }
  0x1a LB: > { %s857_s14 = sadd.s32 4294967295, %s787_s1   ;;  %p573_p10 = scmp.ge.s32.totalorder %s787_s1, 1  ;;  %s787_s1 = sphi %s851_s1, %s29_s1  }
  0x1b   : > { %p209_p11 = scmp.lt.s32.totalorder %s787_s1, 5 }
  0x1d   : > { %p210_p12 = pnand %p573_p10, %p209_p11 }
  0x1e   : > { %s574_s15 = sshll.u32 (!%p210_p12), %s857_s14, 3  ;;  %p576_p0 = scmp.ne.s32.totalorder (!%p210_p12), %s857_s14, 0 }
  0x1f   : > { %213 = sbr.rel (%p210_p12) target bundleno = 338 (0x152), region = 36  ;;  %p235_p13 = scmp.lt.s32.totalorder (!%p210_p12), %s574_s15, 31 }
  0x26   : > { %s1006_s15 = smov (!%p235_p13, %s574_s15), 31  ;;  %243 = sbr.rel (%p576_p0) target bundleno = 48 (0x30), region = 40 }
  0x27   : > { %s575_s16 = sshll.u32 %s1006_s15, 3  ;;  %v799_v0 = vmov (!%p576_p0), 0.0  }
  0x28   : > { %s865_s19 = scalar_lea.vmem %s1001_s6, %s575_s16  ;;  %244 = vst [vmem:[%s1002_s7] sm:$0xff] (!%p576_p0), %v799_v0  ;;  %245 = vst [vmem:[%s1002_s7 + $0x8] sm:$0xff] (!%p576_p0), %v799_v0 }
  0x29   : > { %246 = vst [vmem:[%s1002_s7 + $0x10] sm:$0xff] (!%p576_p0), %v799_v0  ;;  %247 = vst [vmem:[%s1002_s7 + $0x18] sm:$0xff] (!%p576_p0), %v799_v0 }
  0x2a   : > { %248 = vst [vmem:[%s1002_s7 + $0x20] sm:$0xff] (!%p576_p0), %v799_v0  ;;  %249 = vst [vmem:[%s1002_s7 + $0x28] sm:$0xff] (!%p576_p0), %v799_v0 }
  0x2b   : > { %250 = vst [vmem:[%s1002_s7 + $0x30] sm:$0xff] (!%p576_p0), %v799_v0  ;;  %251 = vst [vmem:[%s1002_s7 + $0x38] sm:$0xff] (!%p576_p0), %v799_v0 }
  0x2c   : > { %252 = vst [vmem:[%s1003_s8] sm:$0xff] (!%p576_p0), %v799_v0  ;;  %253 = vst [vmem:[%s1003_s8 + $0x8] sm:$0xff] (!%p576_p0), %v799_v0 }
  0x2d   : > { %254 = vst [vmem:[%s1003_s8 + $0x10] sm:$0xff] %v799_v0  ;;  %255 = vst [vmem:[%s1003_s8 + $0x18] sm:$0xff] %v799_v0 }
  0x2e   : > { %256 = vst [vmem:[%s1003_s8 + $0x20] sm:$0xff] %v799_v0  ;;  %257 = vst [vmem:[%s1003_s8 + $0x28] sm:$0xff] %v799_v0 }
  0x2f   : > { %258 = vst [vmem:[%s1003_s8 + $0x30] sm:$0xff] %v799_v0  ;;  %259 = vst [vmem:[%s1003_s8 + $0x38] sm:$0xff] %v799_v0 }
  0x30 PF: > { %s577_s9 = sshll.u32 %s857_s14, 6  ;;  %s789_s10 = smov 0  }
  0x31 LB: >> { %s267_s11 = sadd.s32 %s791_s10, %s577_s9  ;;  %s276_s24 = scalar_lea.vmem %s865_s19, %s791_s10  ;;  %s791_s10 = sphi %s789_s10, %s266_s10  }
  0x32   : >> { %s268_s12 = sld [smem:[#allocation5 + %s267_s11]]  ;;  %s280_s25 = scalar_lea.vmem [#allocation2], %s791_s10 }
  0x33   : >> { %s269_s13 = sld [smem:[#allocation6 + %s267_s11]]  ;;  %s266_s10 = sadd.s32 1, %s791_s10  }
  0x34   : >> { %p263_p1 = scmp.ge.s32.totalorder %s266_s10, 64  }
  0x35   : > { %v290_v6 = vld [vmem:[%s1000_s5] sm:$0xff] (%p263_p1)  ;;  %v291_v7 = vld [vmem:[%s1000_s5 + $0x8] sm:$0xff] (%p263_p1)  ;;  %v292_v8 = vld [vmem:[%s1000_s5 + $0x10] sm:$0xff] (%p263_p1) }
  0x36   : > { %v656_v9 = vpack.c.bf16 (%p263_p1), %v291_v7, %v290_v6  ;;  %v293_v10 = vld [vmem:[%s1000_s5 + $0x18] sm:$0xff] (%p263_p1)  ;;  %v294_v12 = vld [vmem:[%s1000_s5 + $0x20] sm:$0xff] (%p263_p1)  ;;  %v295_v13 = vld [vmem:[%s1000_s5 + $0x28] sm:$0xff] (%p263_p1) }
  0x37   : > { %v660_v11 = vpack.c.bf16 (%p263_p1), %v293_v10, %v292_v8  ;;  %v664_v14 = vpack.c.bf16 (%p263_p1), %v295_v13, %v294_v12  ;;  %v296_v17 = vld [vmem:[%s1000_s5 + $0x30] sm:$0xff] (%p263_p1)  ;;  %v297_v18 = vld [vmem:[%s1000_s5 + $0x38] sm:$0xff] (%p263_p1)  ;;  %v298_v20 = vld [vmem:[%s1000_s5 + $0x40] sm:$0xff] (%p263_p1) }
  0x38   : >> { %s270_s16 = scalar_lea.vmem %s998_s3, %s268_s12  ;;  %s278_s23 = scalar_lea.vmem %s999_s4, %s268_s12  ;;  %657 = vmatprep.subr.bf16.mxu0 (%p263_p1), %v656_v9  ;;  %688 = vmatprep.subr.bf16.mxu1 (%p263_p1), %v656_v9  ;;  %v668_v19 = vpack.c.bf16 (%p263_p1), %v297_v18, %v296_v17  ;;  %v299_v21 = vld [vmem:[%s1000_s5 + $0x48] sm:$0xff] (%p263_p1)  ;;  %v300_v23 = vld [vmem:[%s1000_s5 + $0x50] sm:$0xff] (%p263_p1)  ;;  %v301_v24 = vld [vmem:[%s1000_s5 + $0x58] sm:$0xff] (%p263_p1) }
  0x39   : >> { %s272_s20 = scalar_lea.vmem %s997_s2, %s269_s13  ;;  %v271_v1 = vld [vmem:[%s270_s16] sm:$0x1]  ;;  %265 = sbr.rel (!%p263_p1) target bundleno = 49 (0x31), region = 106  ;;  %659 = vmatpush3.bf16.msra.mxu0 (%p263_p1), %v656_v9  ;;  %696 = vmatpush3.bf16.msra.mxu1 (%p263_p1), %v656_v9  ;;  %v672_v22 = vpack.c.bf16 (%p263_p1), %v299_v21, %v298_v20  ;;  %v676_v25 = vpack.c.bf16 (%p263_p1), %v301_v24, %v300_v23  ;;  %v303_v27 = vld [vmem:[%s1000_s5 + $0x68] sm:$0xff] (%p263_p1)  ;;  %v304_v29 = vld [vmem:[%s1000_s5 + $0x70] sm:$0xff] (%p263_p1) }
  0x3a   : >> { %v273_v2 = vld [vmem:[%s272_s20] sm:$0x1]  ;;  %661 = vmatprep.subr.bf16.mxu0 (%p263_p1), %v660_v11  ;;  %689 = vmatprep.subr.bf16.mxu1 (%p263_p1), %v660_v11  ;;  %v305_v30 = vld [vmem:[%s1000_s5 + $0x78] sm:$0xff] (%p263_p1) }
  0x3b   : >> { %v274_v3 = vmul.f32 %v273_v2, %v271_v1  ;;  %v279_v4 = vld [vmem:[%s278_s23] sm:$0x1]  ;;  %v684_v31 = vpack.c.bf16 (%p263_p1), %v305_v30, %v304_v29 }
  0x3c   : >> { %281 = vst [vmem:[%s280_s25] sm:$0x1] %v279_v4  ;;  %v302_v26 = vld [vmem:[%s1000_s5 + $0x60] sm:$0xff] (%p263_p1) }
  0x3d   : >> { %v275_v5 = vmul.f32 0.25, %v274_v3  ;;  %663 = vmatpush3.bf16.msra.mxu0 (%p263_p1), %v660_v11  ;;  %697 = vmatpush3.bf16.msra.mxu1 (%p263_p1), %v660_v11  ;;  %v680_v28 = vpack.c.bf16 (%p263_p1), %v303_v27, %v302_v26 }
  0x3e   : > { %665 = vmatprep.subr.bf16.mxu0 (%p263_p1), %v664_v14  ;;  %690 = vmatprep.subr.bf16.mxu1 (%p263_p1), %v664_v14 }
  0x3f   : >> { %277 = vst [vmem:[%s276_s24] sm:$0x1] %v275_v5 }
  0x41   : > { %667 = vmatpush3.bf16.msra.mxu0 %v664_v14  ;;  %698 = vmatpush3.bf16.msra.mxu1 %v664_v14 }
  0x42   : > { %669 = vmatprep.subr.bf16.mxu0 %v668_v19  ;;  %691 = vmatprep.subr.bf16.mxu1 %v668_v19 }
  0x43   : > { %v452_v62 = vld [vmem:[#allocation2 + $0x8] sm:$0xff]  ;;  %v451_v1 = vld [vmem:[#allocation2] sm:$0xff]  ;;  %v454_v7 = vld [vmem:[#allocation2 + $0x18] sm:$0xff] }
  0x44   : > { %v456_v63 = vld [vmem:[#allocation2 + $0x28] sm:$0xff]  ;;  %v455_v4 = vld [vmem:[#allocation2 + $0x20] sm:$0xff]  ;;  %v458_v10 = vld [vmem:[#allocation2 + $0x38] sm:$0xff] }
  0x45   : > { %671 = vmatpush3.bf16.msra.mxu0 %v668_v19  ;;  %699 = vmatpush3.bf16.msra.mxu1 %v668_v19  ;;  %v453_v13 = vld [vmem:[#allocation2 + $0x10] sm:$0xff] }
  0x46   : > { %v282_v15 = vld [vmem:[%s865_s19] sm:$0xff]  ;;  %673 = vmatprep.subr.bf16.mxu0 %v672_v22  ;;  %692 = vmatprep.subr.bf16.mxu1 %v672_v22  ;;  %v283_v32 = vld [vmem:[%s865_s19 + $0x8] sm:$0xff]  ;;  %v284_v34 = vld [vmem:[%s865_s19 + $0x10] sm:$0xff] }
  0x47   : > { %v286_v16 = vld [vmem:[%s865_s19 + $0x20] sm:$0xff]  ;;  %644 = vmatprep.mubr.f32.mxu0 %v282_v15  ;;  %v287_v33 = vld [vmem:[%s865_s19 + $0x28] sm:$0xff]  ;;  %v288_v35 = vld [vmem:[%s865_s19 + $0x30] sm:$0xff] }
  0x48   : > { %650 = vmatprep.mubr.f32.mxu1 %v286_v16  ;;  %v285_v36 = vld [vmem:[%s865_s19 + $0x18] sm:$0xff]  ;;  %v457_v16 = vld [vmem:[#allocation2 + $0x30] sm:$0xff] }
  0x49   : > { %675 = vmatpush3.bf16.msra.mxu0 %v672_v22  ;;  %700 = vmatpush3.bf16.msra.mxu1 %v672_v22  ;;  %v289_v37 = vld [vmem:[%s865_s19 + $0x38] sm:$0xff]  ;;  %s793_s19 = smov 0  }
  0x4a   : > { %677 = vmatprep.subr.bf16.mxu0 %v676_v25  ;;  %693 = vmatprep.subr.bf16.mxu1 %v676_v25 }
  0x4d   : > { %679 = vmatpush3.bf16.msra.mxu0 %v676_v25  ;;  %701 = vmatpush3.bf16.msra.mxu1 %v676_v25 }
  0x4e   : > { %681 = vmatprep.subr.bf16.mxu0 %v680_v28  ;;  %694 = vmatprep.subr.bf16.mxu1 %v680_v28 }
  0x51   : > { %683 = vmatpush3.bf16.msra.mxu0 %v680_v28  ;;  %702 = vmatpush3.bf16.msra.mxu1 %v680_v28 }
  0x52   : > { %685 = vmatprep.subr.bf16.mxu0 %v684_v31  ;;  %695 = vmatprep.subr.bf16.mxu1 %v684_v31 }
  0x55   : > { %687 = vmatpush3.bf16.msra.mxu0 %v684_v31  ;;  %703 = vmatpush3.bf16.msra.mxu1 %v684_v31 }
  0x58   : > { %645 = vmatmul.mubr.f32.vlgmr.msra.gmra.mrb[0].mxu0 %v283_v32  ;;  %651 = vmatmul.mubr.f32.vlgmr.msra.gmra.mrb[0].mxu1 %v287_v33 }
  0x59   : > { %647 = vmatprep.mubr.f32.mxu0 %v284_v34  ;;  %653 = vmatprep.mubr.f32.mxu1 %v288_v35 }
  0x5c   : > { %648 = vmatmul.mubr.f32.gmra.mrb[2].mxu0 %v285_v36  ;;  %654 = vmatmul.mubr.f32.gmra.mrb[2].mxu1 %v289_v37 }
 0x12b   : > { %v646_v38 = vpop.f32.mrb[0].mxu0  ;;  %v652_v39 = vpop.f32.mrb[0].mxu1 }
 0x12c   : > { %v579_v40 = vclamps-f32 %v646_v38, 5.0  ;;  %v583_v41 = vclamps-f32 %v652_v39, 5.0  ;;  %v372_v42 = vpop.f32.mrb[1].mxu0  ;;  %v392_v43 = vpop.f32.mrb[1].mxu1 }
 0x12d   : > { %v578_v44 = vclamps-f32 %v372_v42, 5.0  ;;  %v582_v45 = vclamps-f32 %v392_v43, 5.0 }
 0x12e   : > { %v429_v46 = vmul.f32 1.442695, %v579_v40  ;;  %v437_v47 = vmul.f32 1.442695, %v583_v41 }
 0x12f   : > { %v427_v48 = vmul.f32 1.442695, %v578_v44  ;;  %v435_v49 = vmul.f32 1.442695, %v582_v45  ;;  %v649_v50 = vpop.f32.mrb[2].mxu0  ;;  %v655_v51 = vpop.f32.mrb[2].mxu1 }
 0x130   : > { %731 = vpow2.f32 %v429_v46  ;;  %v581_v52 = vclamps-f32 %v649_v50, 5.0  ;;  %v585_v53 = vclamps-f32 %v655_v51, 5.0  ;;  %v382_v54 = vpop.f32.mrb[3].mxu0  ;;  %v402_v55 = vpop.f32.mrb[3].mxu1 }
 0x131   : > { %733 = vpow2.f32 %v437_v47  ;;  %v580_v56 = vclamps-f32 %v382_v54, 5.0  ;;  %v584_v57 = vclamps-f32 %v402_v55, 5.0 }
 0x132   : > { %735 = vpow2.f32 %v427_v48  ;;  %v433_v58 = vmul.f32 1.442695, %v581_v52  ;;  %v441_v59 = vmul.f32 1.442695, %v585_v53 }
 0x133   : > { %737 = vpow2.f32 %v435_v49  ;;  %v431_v60 = vmul.f32 1.442695, %v580_v56  ;;  %v439_v61 = vmul.f32 1.442695, %v584_v57 }
 0x134   : > { %739 = vpow2.f32 %v433_v58 }
 0x135   : > { %741 = vpow2.f32 %v441_v59 }
 0x136   : > { %743 = vpow2.f32 %v431_v60 }
 0x137   : > { %745 = vpow2.f32 %v439_v61 }
 0x13a   : > { %v732_v0 = vpop.eup %731 }
 0x13b   : > { %v734_v2 = vpop.eup %733  ;;  %444 = vst [vmem:[#allocation3 + $0x8] sm:$0xff] %v732_v0  ;;  %v460_v3 = vmul.f32 %v732_v0, %v452_v62 }
 0x13c   : > { %v736_v5 = vpop.eup %735  ;;  %448 = vst [vmem:[#allocation3 + $0x28] sm:$0xff] %v734_v2  ;;  %v464_v6 = vmul.f32 %v734_v2, %v456_v63 }
 0x13d   : > { %v738_v8 = vpop.eup %737  ;;  %468 = vst [vmem:[#allocation2 + $0x8] sm:$0xff] %v460_v3  ;;  %443 = vst [vmem:[#allocation3] sm:$0xff] %v736_v5  ;;  %v459_v9 = vmul.f32 %v736_v5, %v451_v1 }
 0x13e   : > { %v740_v11 = vpop.eup %739  ;;  %472 = vst [vmem:[#allocation2 + $0x28] sm:$0xff] %v464_v6  ;;  %447 = vst [vmem:[#allocation3 + $0x20] sm:$0xff] %v738_v8  ;;  %v463_v12 = vmul.f32 %v738_v8, %v455_v4 }
 0x13f   : > { %v742_v14 = vpop.eup %741  ;;  %467 = vst [vmem:[#allocation2] sm:$0xff] %v459_v9  ;;  %446 = vst [vmem:[#allocation3 + $0x18] sm:$0xff] %v740_v11  ;;  %v462_v15 = vmul.f32 %v740_v11, %v454_v7 }
 0x140   : > { %v744_v17 = vpop.eup %743  ;;  %471 = vst [vmem:[#allocation2 + $0x20] sm:$0xff] %v463_v12  ;;  %450 = vst [vmem:[#allocation3 + $0x38] sm:$0xff] %v742_v14  ;;  %v466_v18 = vmul.f32 %v742_v14, %v458_v10 }
 0x141   : > { %v746_v19 = vpop.eup %745  ;;  %470 = vst [vmem:[#allocation2 + $0x18] sm:$0xff] %v462_v15  ;;  %445 = vst [vmem:[#allocation3 + $0x10] sm:$0xff] %v744_v17  ;;  %v461_v20 = vmul.f32 %v744_v17, %v453_v13 }
 0x142   : > { %474 = vst [vmem:[#allocation2 + $0x38] sm:$0xff] %v466_v18  ;;  %449 = vst [vmem:[#allocation3 + $0x30] sm:$0xff] %v746_v19  ;;  %v465_v21 = vmul.f32 %v746_v19, %v457_v16 }
 0x143   : > { %469 = vst [vmem:[#allocation2 + $0x10] sm:$0xff] %v461_v20 }
 0x144   : > { %473 = vst [vmem:[#allocation2 + $0x30] sm:$0xff] %v465_v21 }
 0x145 LB: >> { %s481_s17 = sadd.s32 %s795_s19, %s577_s9  ;;  %s485_s20 = scalar_lea.vmem [#allocation2], %s795_s19  ;;  %s795_s19 = sphi %s793_s19, %s480_s19  }
 0x146   : >> { %s482_s18 = sld [smem:[#allocation6 + %s481_s17]]  ;;  %s491_s21 = scalar_lea.vmem [#allocation3], %s795_s19 }
 0x147   : >> { %s480_s19 = sadd.s32 1, %s795_s19  }
 0x148   : >> { %p477_p2 = scmp.ge.s32.totalorder %s480_s19, 64  }
 0x149   : >> { %v492_v23 = vld [vmem:[%s491_s21] sm:$0x1] }
 0x14b   : >> { %v486_v22 = vld [vmem:[%s485_s20] sm:$0x1]  ;;  %479 = sbr.rel (!%p477_p2) target bundleno = 325 (0x145), region = 117 }
 0x14c   : >> { %s483_s24 = scalar_lea.vmem %s1002_s7, %s482_s18  ;;  %s489_s27 = scalar_lea.vmem %s1003_s8, %s482_s18 }
 0x14d   : >> { %v484_v24 = vld [vmem:[%s483_s24] sm:$0x1] }
 0x14e   : >> { %v490_v25 = vld [vmem:[%s489_s27] sm:$0x1]  ;;  %v487_v26 = vadd.f32 %v486_v22, %v484_v24 }
 0x14f   : >> { %v493_v27 = vadd.f32 %v492_v23, %v490_v25 }
 0x150   : >> { %488 = vst [vmem:[%s483_s24] sm:$0x1] %v487_v26 }
 0x151   : >> { %494 = vst [vmem:[%s489_s27] sm:$0x1] %v493_v27 }
 0x152 PF: > { %s29_s1 = sadd.s32 1, %s787_s1  }
 0x153   : > { %p26_p3 = scmp.ge.s32.totalorder %s29_s1, 6  }
 0x155   :  { %28 = sbr.rel (!%p26_p3) target bundleno = 26 (0x1a), region = 128 }

// kernel: graph_transformer_stack.18
= control target key start
LH: loop header
LB: loop body
LE: loop exit
PB: predicated region body
PF: predicated region fallthrough
CT: control target
= control target key end

     0   :  { %s1141_s30 = smov 0   ;;  %s1252_s0 = inlined_call_operand.vmem [shape: f32[64,128], index: 0, kind: input, shape index: {}]   ;;  %s1253_s1 = inlined_call_operand.vmem [shape: f32[1,128], index: 1, kind: input, shape index: {}]   ;;  %s1254_s2 = inlined_call_operand.vmem [shape: f32[1,128], index: 2, kind: input, shape index: {}]   ;;  %s1255_s3 = inlined_call_operand.vmem [shape: bf16[128,128], index: 3, kind: input, shape index: {}]   ;;  %s1256_s4 = inlined_call_operand.vmem [shape: bf16[128,128], index: 4, kind: input, shape index: {}]   ;;  %s1257_s5 = inlined_call_operand.vmem [shape: bf16[128,128], index: 5, kind: input, shape index: {}]   ;;  %s1258_s6 = inlined_call_operand.vmem [shape: f32[64,128], index: 6, kind: output, shape index: {0}]   ;;  %s1259_s7 = inlined_call_operand.vmem [shape: f32[64,128], index: 7, kind: output, shape index: {1}]   ;;  %s1260_s8 = inlined_call_operand.vmem [shape: f32[64,128], index: 8, kind: output, shape index: {2}]   ;;  %s1261_s9 = inlined_call_operand.vmem [shape: f32[64,128], index: 9, kind: output, shape index: {3}]  }
   0x1 LB: > { %s918_s10 = sadd.s32 4294967295, %s1089_s30   ;;  %p922_p0 = scmp.ge.s32.totalorder %s1089_s30, 1  ;;  %s1089_s30 = sphi %s1141_s30, %s20_s30  }
   0x2   : > { %p295_p1 = scmp.lt.s32.totalorder %s1089_s30, 3 }
   0x4   : > { %p296_p2 = pnand %p922_p0, %p295_p1 }
   0x5   : > { %v1059_v0 = vld [vmem:[%s1255_s3] sm:$0xff] (!%p296_p2)   ;;  %s923_s13 = sshll.u32 (!%p296_p2), %s918_s10, 2  ;;  %v1060_v1 = vld [vmem:[%s1255_s3 + $0x8] sm:$0xff] (!%p296_p2)   ;;  %v1061_v2 = vld [vmem:[%s1255_s3 + $0x10] sm:$0xff] (!%p296_p2)  }
   0x6   : > { %299 = sbr.rel (%p296_p2) target bundleno = 287 (0x11f), region = 44  ;;  %p347_p3 = scmp.lt.s32.totalorder (!%p296_p2), %s923_s13, 7  ;;  %991 = vmatprep.subr.bf16.mxu0 (!%p296_p2), %v1059_v0  ;;  %v1066_v3 = vld [vmem:[%s1256_s4] sm:$0xff] (!%p296_p2)   ;;  %v1062_v4 = vld [vmem:[%s1255_s3 + $0x18] sm:$0xff] (!%p296_p2)   ;;  %v1068_v11 = vld [vmem:[%s1256_s4 + $0x8] sm:$0xff] (!%p296_p2)  }
   0x7   : > { %992 = vmatpush3.bf16.msra.mxu0 (!%p296_p2), %v1059_v0  ;;  %1011 = vmatprep.subr.bf16.mxu1 (!%p296_p2), %v1066_v3  ;;  %v933_v7 = vld [vmem:[%s1253_s1] ss:$0 sm:$0xff] (!%p296_p2)  ;;  %v1070_v19 = vld [vmem:[%s1256_s4 + $0x10] sm:$0xff] (!%p296_p2)   ;;  %v1072_v23 = vld [vmem:[%s1256_s4 + $0x18] sm:$0xff] (!%p296_p2)  }
   0x8   : > { %993 = vmatprep.subr.bf16.mxu0 (!%p296_p2), %v1060_v1  ;;  %1012 = vmatpush3.bf16.msra.mxu1 (!%p296_p2), %v1066_v3  ;;  %v934_v10 = vld [vmem:[%s1254_s2] ss:$0 sm:$0xff] (!%p296_p2)  ;;  %v1064_v24 = vld [vmem:[%s1255_s3 + $0x28] sm:$0xff] (!%p296_p2)   ;;  %v1065_v26 = vld [vmem:[%s1255_s3 + $0x30] sm:$0xff] (!%p296_p2)  }
   0x9   : > { %v1063_v14 = vld [vmem:[%s1255_s3 + $0x20] sm:$0xff] (!%p296_p2)   ;;  %1013 = vmatprep.subr.bf16.mxu1 (!%p296_p2), %v1068_v11  ;;  %v1076_v27 = vld [vmem:[%s1256_s4 + $0x28] sm:$0xff] (!%p296_p2)   ;;  %v1067_v28 = vld [vmem:[%s1255_s3 + $0x38] sm:$0xff] (!%p296_p2)  }
   0xa   : > { %v1074_v25 = vld [vmem:[%s1256_s4 + $0x20] sm:$0xff] (!%p296_p2)   ;;  %v1078_v29 = vld [vmem:[%s1256_s4 + $0x30] sm:$0xff] (!%p296_p2)   ;;  %v1080_v32 = vld [vmem:[%s1256_s4 + $0x38] sm:$0xff] (!%p296_p2)  }
   0xb   : > { %994 = vmatpush3.bf16.msra.mxu0 (!%p296_p2), %v1060_v1  ;;  %v1069_v30 = vld [vmem:[%s1257_s5] sm:$0xff] (!%p296_p2)   ;;  %v1071_v33 = vld [vmem:[%s1257_s5 + $0x8] sm:$0xff] (!%p296_p2)   ;;  %v1073_v34 = vld [vmem:[%s1257_s5 + $0x10] sm:$0xff] (!%p296_p2)  }
   0xc   : > { %995 = vmatprep.subr.bf16.mxu0 (!%p296_p2), %v1061_v2  ;;  %1014 = vmatpush3.bf16.msra.mxu1 (!%p296_p2), %v1068_v11  ;;  %v1075_v35 = vld [vmem:[%s1257_s5 + $0x18] sm:$0xff] (!%p296_p2)   ;;  %v1077_v36 = vld [vmem:[%s1257_s5 + $0x20] sm:$0xff] (!%p296_p2)   ;;  %v1079_v37 = vld [vmem:[%s1257_s5 + $0x28] sm:$0xff] (!%p296_p2)  }
   0xd   : > { %s1263_s13 = smov (!%p347_p3, %s923_s13), 7  ;;  %1015 = vmatprep.subr.bf16.mxu1 %v1070_v19  ;;  %v1081_v38 = vld [vmem:[%s1257_s5 + $0x30] sm:$0xff]   ;;  %v1082_v39 = vld [vmem:[%s1257_s5 + $0x38] sm:$0xff]  }
   0xe   : > { %s1158_s18 = sshll.u32 %s1263_s13, 3 }
   0xf   : > { %s350_s21 = scalar_lea.vmem %s1252_s0, %s1158_s18  ;;  %996 = vmatpush3.bf16.msra.mxu0 %v1061_v2  ;;  %s356_s12 = scalar_lea.vmem %s1258_s6, %s1158_s18 }
  0x10   : > { %v377_v5 = vld [vmem:[%s350_s21] sm:$0xff]  ;;  %v378_v6 = vld [vmem:[%s350_s21 + $0x8] sm:$0xff]  ;;  %v379_v12 = vld [vmem:[%s350_s21 + $0x10] sm:$0xff]  ;;  %997 = vmatprep.subr.bf16.mxu0 %v1062_v4  ;;  %1016 = vmatpush3.bf16.msra.mxu1 %v1070_v19  ;;  %s362_s15 = scalar_lea.vmem %s1259_s7, %s1158_s18  ;;  %s368_s19 = scalar_lea.vmem %s1260_s8, %s1158_s18 }
  0x11   : > { %v388_v8 = vmul.f32 %v933_v7, %v377_v5  ;;  %v389_v9 = vmul.f32 %v933_v7, %v378_v6  ;;  %v380_v13 = vld [vmem:[%s350_s21 + $0x18] sm:$0xff]  ;;  %v390_v17 = vmul.f32 %v933_v7, %v379_v12  ;;  %1017 = vmatprep.subr.bf16.mxu1 %v1072_v23  ;;  %s374_s22 = scalar_lea.vmem %s1261_s9, %s1158_s18 }
  0x12   : > { %v391_v18 = vmul.f32 %v933_v7, %v380_v13 }
  0x13   : > { %v399_v15 = vadd.f32 %v934_v10, %v388_v8  ;;  %v400_v16 = vadd.f32 %v934_v10, %v389_v9  ;;  %v401_v21 = vadd.f32 %v934_v10, %v390_v17  ;;  %998 = vmatpush3.bf16.msra.mxu0 %v1062_v4 }
  0x14   : > { %v402_v22 = vadd.f32 %v934_v10, %v391_v18  ;;  %999 = vmatprep.subr.bf16.mxu0 %v1063_v14  ;;  %1018 = vmatpush3.bf16.msra.mxu1 %v1072_v23 }
  0x15   : > { %403 = vst [vmem:[%s356_s12] sm:$0xff] %v399_v15  ;;  %v407_v20 = vpack.c.bf16 %v400_v16, %v399_v15  ;;  %404 = vst [vmem:[%s356_s12 + $0x8] sm:$0xff] %v400_v16  ;;  %1019 = vmatprep.subr.bf16.mxu1 %v1074_v25 }
  0x16   : > { %405 = vst [vmem:[%s356_s12 + $0x10] sm:$0xff] %v401_v21  ;;  %406 = vst [vmem:[%s356_s12 + $0x18] sm:$0xff] %v402_v22  ;;  %v408_v31 = vpack.c.bf16 %v402_v22, %v401_v21 }
  0x17   : > { %1007 = vmatprep.mubr.bf16.mxu0 %v407_v20  ;;  %1027 = vmatprep.mubr.bf16.mxu1 %v407_v20 }
  0x18   : > { %1000 = vmatpush3.bf16.msra.mxu0 %v1063_v14  ;;  %1020 = vmatpush3.bf16.msra.mxu1 %v1074_v25 }
  0x19   : > { %1001 = vmatprep.subr.bf16.mxu0 %v1064_v24  ;;  %1021 = vmatprep.subr.bf16.mxu1 %v1076_v27 }
  0x1c   : > { %1002 = vmatpush3.bf16.msra.mxu0 %v1064_v24  ;;  %1022 = vmatpush3.bf16.msra.mxu1 %v1076_v27 }
  0x1d   : > { %1003 = vmatprep.subr.bf16.mxu0 %v1065_v26  ;;  %1023 = vmatprep.subr.bf16.mxu1 %v1078_v29 }
  0x20   : > { %1004 = vmatpush3.bf16.msra.mxu0 %v1065_v26  ;;  %1024 = vmatpush3.bf16.msra.mxu1 %v1078_v29 }
  0x21   : > { %1005 = vmatprep.subr.bf16.mxu0 %v1067_v28  ;;  %1025 = vmatprep.subr.bf16.mxu1 %v1080_v32 }
  0x24   : > { %1006 = vmatpush3.bf16.msra.mxu0 %v1067_v28  ;;  %1026 = vmatpush3.bf16.msra.mxu1 %v1080_v32 }
  0x25   : > { %1031 = vmatprep.subr.bf16.mxu0 %v1069_v30 }
  0x27   : > { %1008 = vmatmul.mubr.bf16.vlgmr.msra.gmra.mrb[0].mxu0 %v408_v31  ;;  %1028 = vmatmul.mubr.bf16.vlgmr.msra.gmra.mrb[0].mxu1 %v408_v31 }
  0x28   : > { %1032 = vmatpush3.bf16.msra.mxu0 %v1069_v30  ;;  %1047 = vmatprep.mubr.bf16.mxu0 %v407_v20 }
  0x29   : > { %1033 = vmatprep.subr.bf16.mxu0 %v1071_v33 }
  0x2c   : > { %1034 = vmatpush3.bf16.msra.mxu0 %v1071_v33 }
  0x2d   : > { %1035 = vmatprep.subr.bf16.mxu0 %v1073_v34 }
  0x30   : > { %1036 = vmatpush3.bf16.msra.mxu0 %v1073_v34 }
  0x31   : > { %1037 = vmatprep.subr.bf16.mxu0 %v1075_v35 }
  0x34   : > { %1038 = vmatpush3.bf16.msra.mxu0 %v1075_v35 }
  0x35   : > { %1039 = vmatprep.subr.bf16.mxu0 %v1077_v36 }
  0x38   : > { %1040 = vmatpush3.bf16.msra.mxu0 %v1077_v36 }
  0x39   : > { %1041 = vmatprep.subr.bf16.mxu0 %v1079_v37 }
  0x3c   : > { %1042 = vmatpush3.bf16.msra.mxu0 %v1079_v37 }
  0x3d   : > { %1043 = vmatprep.subr.bf16.mxu0 %v1081_v38 }
  0x40   : > { %1044 = vmatpush3.bf16.msra.mxu0 %v1081_v38 }
  0x41   : > { %1045 = vmatprep.subr.bf16.mxu0 %v1082_v39 }
  0x44   : > { %1046 = vmatpush3.bf16.msra.mxu0 %v1082_v39 }
  0x47   : > { %1048 = vmatmul.mubr.bf16.vlgmr.msra.gmra.mrb[4].mxu0 %v408_v31 }
  0xfa   : > { %v1009_v40 = vpop.f32.mrb[0].mxu0  ;;  %v1029_v44 = vpop.f32.mrb[0].mxu1 }
  0xfb   : > { %v507_v41 = vpop.f32.mrb[1].mxu0  ;;  %524 = vst [vmem:[%s362_s15 + $0x10] sm:$0xff] %v1009_v40  ;;  %v624_v45 = vpop.f32.mrb[1].mxu1  ;;  %641 = vst [vmem:[%s368_s19 + $0x10] sm:$0xff] %v1029_v44 }
  0xfc   : > { %522 = vst [vmem:[%s362_s15] sm:$0xff] %v507_v41  ;;  %v1010_v42 = vpop.f32.mrb[2].mxu0  ;;  %639 = vst [vmem:[%s368_s19] sm:$0xff] %v624_v45  ;;  %v1030_v46 = vpop.f32.mrb[2].mxu1 }
  0xfd   : > { %v510_v43 = vpop.f32.mrb[3].mxu0  ;;  %525 = vst [vmem:[%s362_s15 + $0x18] sm:$0xff] %v1010_v42  ;;  %v627_v47 = vpop.f32.mrb[3].mxu1  ;;  %642 = vst [vmem:[%s368_s19 + $0x18] sm:$0xff] %v1030_v46 }
  0xfe   : > { %523 = vst [vmem:[%s362_s15 + $0x8] sm:$0xff] %v510_v43  ;;  %640 = vst [vmem:[%s368_s19 + $0x8] sm:$0xff] %v627_v47 }
 0x11a   : > { %v1049_v48 = vpop.f32.mrb[4].mxu0 }
 0x11b   : > { %v741_v49 = vpop.f32.mrb[5].mxu0  ;;  %758 = vst [vmem:[%s374_s22 + $0x10] sm:$0xff] %v1049_v48 }
 0x11c   : > { %756 = vst [vmem:[%s374_s22] sm:$0xff] %v741_v49  ;;  %v1050_v50 = vpop.f32.mrb[6].mxu0 }
 0x11d   : > { %v744_v51 = vpop.f32.mrb[7].mxu0  ;;  %759 = vst [vmem:[%s374_s22 + $0x18] sm:$0xff] %v1050_v50 }
 0x11e   : > { %757 = vst [vmem:[%s374_s22 + $0x8] sm:$0xff] %v744_v51 }
 0x11f PF: > { %s20_s30 = sadd.s32 1, %s1089_s30  }
 0x120   : > { %p17_p4 = scmp.ge.s32.totalorder %s20_s30, 4  }
 0x122   :  { %19 = sbr.rel (!%p17_p4) target bundleno = 1 (0x1), region = 110 }

// kernel: graph_transformer_stack.21
= control target key start
LH: loop header
LB: loop body
LE: loop exit
PB: predicated region body
PF: predicated region fallthrough
CT: control target
= control target key end

     0   :  { %s691_s21 = smov 0   ;;  %s759_s0 = inlined_call_operand.vmem [shape: f32[256,128], index: 0, kind: input, shape index: {}]   ;;  %s760_s1 = inlined_call_operand.vmem [shape: f32[1,128], index: 1, kind: input, shape index: {}]   ;;  %s761_s2 = inlined_call_operand.vmem [shape: f32[1,128], index: 2, kind: input, shape index: {}]   ;;  %s762_s3 = inlined_call_operand.vmem [shape: f32[256,128], index: 3, kind: input, shape index: {}]   ;;  %s763_s4 = inlined_call_operand.vmem [shape: bf16[128,128], index: 4, kind: input, shape index: {}]   ;;  %s764_s5 = inlined_call_operand.vmem [shape: f32[1,128], index: 5, kind: input, shape index: {}]   ;;  %s765_s6 = inlined_call_operand.vmem [shape: f32[256,128], index: 6, kind: output, shape index: {}]  }
   0x1 LB: > { %s556_s22 = sadd.s32 4294967295, %s654_s21   ;;  %p560_p0 = scmp.ge.s32.totalorder %s654_s21, 1  ;;  %s654_s21 = sphi %s691_s21, %s16_s21  }
   0x2   : > { %p224_p1 = scmp.lt.s32.totalorder %s654_s21, 5 }
   0x4   : > { %p225_p2 = pnand %p560_p0, %p224_p1 }
   0x5   : > { %v640_v0 = vld [vmem:[%s763_s4] sm:$0xff] (!%p225_p2)   ;;  %s561_s25 = sshll.u32 (!%p225_p2), %s556_s22, 3  ;;  %v641_v1 = vld [vmem:[%s763_s4 + $0x8] sm:$0xff] (!%p225_p2)   ;;  %v642_v2 = vld [vmem:[%s763_s4 + $0x10] sm:$0xff] (!%p225_p2)  }
   0x6   : > { %228 = sbr.rel (%p225_p2) target bundleno = 259 (0x103), region = 44  ;;  %p260_p3 = scmp.lt.s32.totalorder (!%p225_p2), %s561_s25, 31  ;;  %592 = vmatprep.subr.bf16.mxu0 (!%p225_p2), %v640_v0  ;;  %616 = vmatprep.subr.bf16.mxu1 (!%p225_p2), %v640_v0  ;;  %v643_v3 = vld [vmem:[%s763_s4 + $0x18] sm:$0xff] (!%p225_p2)   ;;  %v644_v10 = vld [vmem:[%s763_s4 + $0x20] sm:$0xff] (!%p225_p2)   ;;  %v645_v11 = vld [vmem:[%s763_s4 + $0x28] sm:$0xff] (!%p225_p2)  }
   0x7   : > { %593 = vmatpush3.bf16.msra.mxu0 (!%p225_p2), %v640_v0  ;;  %624 = vmatpush3.bf16.msra.mxu1 (!%p225_p2), %v640_v0  ;;  %v646_v12 = vld [vmem:[%s763_s4 + $0x30] sm:$0xff] (!%p225_p2)   ;;  %v647_v13 = vld [vmem:[%s763_s4 + $0x38] sm:$0xff] (!%p225_p2)   ;;  %v567_v21 = vld [vmem:[%s760_s1] ss:$0 sm:$0xff] (!%p225_p2) }
   0x8   : > { %594 = vmatprep.subr.bf16.mxu0 (!%p225_p2), %v641_v1  ;;  %617 = vmatprep.subr.bf16.mxu1 (!%p225_p2), %v641_v1  ;;  %v568_v31 = vld [vmem:[%s761_s2] ss:$0 sm:$0xff] (!%p225_p2) }
   0x9   : > { %v577_v45 = vld [vmem:[%s764_s5] ss:$0 sm:$0xff] (!%p225_p2) }
   0xb   : > { %595 = vmatpush3.bf16.msra.mxu0 (!%p225_p2), %v641_v1  ;;  %625 = vmatpush3.bf16.msra.mxu1 (!%p225_p2), %v641_v1 }
   0xc   : > { %596 = vmatprep.subr.bf16.mxu0 (!%p225_p2), %v642_v2  ;;  %618 = vmatprep.subr.bf16.mxu1 (!%p225_p2), %v642_v2 }
   0xd   : > { %s767_s25 = smov (!%p260_p3, %s561_s25), 31 }
   0xe   : > { %s708_s30 = sshll.u32 %s767_s25, 3 }
   0xf   : > { %s714_s9 = scalar_lea.vmem %s762_s3, %s708_s30  ;;  %597 = vmatpush3.bf16.msra.mxu0 %v642_v2  ;;  %626 = vmatpush3.bf16.msra.mxu1 %v642_v2  ;;  %s263_s23 = scalar_lea.vmem %s759_s0, %s708_s30 }
  0x10   : > { %v316_v4 = vld [vmem:[%s714_s9] sm:$0xff]  ;;  %v317_v5 = vld [vmem:[%s714_s9 + $0x8] sm:$0xff]  ;;  %598 = vmatprep.subr.bf16.mxu0 %v643_v3  ;;  %619 = vmatprep.subr.bf16.mxu1 %v643_v3  ;;  %v318_v14 = vld [vmem:[%s714_s9 + $0x10] sm:$0xff] }
  0x11   : > { %v320_v6 = vld [vmem:[%s714_s9 + $0x20] sm:$0xff]  ;;  %v324_v7 = vpack.c.bf16 %v317_v5, %v316_v4  ;;  %v321_v8 = vld [vmem:[%s714_s9 + $0x28] sm:$0xff]  ;;  %v319_v15 = vld [vmem:[%s714_s9 + $0x18] sm:$0xff] }
  0x12   : > { %v326_v9 = vpack.c.bf16 %v321_v8, %v320_v6  ;;  %v322_v16 = vld [vmem:[%s714_s9 + $0x30] sm:$0xff]  ;;  %v323_v17 = vld [vmem:[%s714_s9 + $0x38] sm:$0xff]  ;;  %v325_v18 = vpack.c.bf16 %v319_v15, %v318_v14  ;;  %v278_v23 = vld [vmem:[%s263_s23] sm:$0xff]  ;;  %s275_s9 = scalar_lea.vmem %s765_s6, %s708_s30 }
  0x13   : > { %608 = vmatprep.mubr.bf16.mxu0 %v324_v7  ;;  %599 = vmatpush3.bf16.msra.mxu0 %v643_v3  ;;  %v327_v19 = vpack.c.bf16 %v323_v17, %v322_v16  ;;  %v280_v20 = vld [vmem:[%s263_s23 + $0x10] sm:$0xff]  ;;  %v282_v24 = vld [vmem:[%s263_s23 + $0x20] sm:$0xff]  ;;  %v281_v25 = vld [vmem:[%s263_s23 + $0x18] sm:$0xff]  ;;  %v293_v32 = vmul.f32 %v567_v21, %v278_v23 }
  0x14   : > { %612 = vmatprep.mubr.bf16.mxu1 %v326_v9  ;;  %627 = vmatpush3.bf16.msra.mxu1 %v643_v3  ;;  %v284_v22 = vld [vmem:[%s263_s23 + $0x30] sm:$0xff]  ;;  %v285_v26 = vld [vmem:[%s263_s23 + $0x38] sm:$0xff]  ;;  %v295_v27 = vmul.f32 %v567_v21, %v280_v20  ;;  %v279_v29 = vld [vmem:[%s263_s23 + $0x8] sm:$0xff]  ;;  %v297_v33 = vmul.f32 %v567_v21, %v282_v24  ;;  %v296_v34 = vmul.f32 %v567_v21, %v281_v25 }
  0x15   : > { %600 = vmatprep.subr.bf16.mxu0 %v644_v10  ;;  %620 = vmatprep.subr.bf16.mxu1 %v644_v10  ;;  %v299_v28 = vmul.f32 %v567_v21, %v284_v22  ;;  %v283_v30 = vld [vmem:[%s263_s23 + $0x28] sm:$0xff]  ;;  %v300_v35 = vmul.f32 %v567_v21, %v285_v26  ;;  %v294_v36 = vmul.f32 %v567_v21, %v279_v29 }
  0x16   : > { %v298_v37 = vmul.f32 %v567_v21, %v283_v30  ;;  %v310_v38 = vadd.f32 %v568_v31, %v295_v27  ;;  %v308_v40 = vadd.f32 %v568_v31, %v293_v32  ;;  %v312_v41 = vadd.f32 %v568_v31, %v297_v33 }
  0x17   : > { %601 = vmatpush3.bf16.msra.mxu0 %v644_v10  ;;  %v314_v39 = vadd.f32 %v568_v31, %v299_v28  ;;  %v311_v42 = vadd.f32 %v568_v31, %v296_v34  ;;  %v315_v43 = vadd.f32 %v568_v31, %v300_v35  ;;  %v309_v47 = vadd.f32 %v568_v31, %v294_v36 }
  0x18   : > { %628 = vmatpush3.bf16.msra.mxu1 %v644_v10  ;;  %602 = vmatprep.subr.bf16.mxu0 %v645_v11  ;;  %v313_v48 = vadd.f32 %v568_v31, %v298_v37 }
  0x19   : > { %621 = vmatprep.subr.bf16.mxu1 %v645_v11 }
  0x1b   : > { %603 = vmatpush3.bf16.msra.mxu0 %v645_v11 }
  0x1c   : > { %629 = vmatpush3.bf16.msra.mxu1 %v645_v11  ;;  %604 = vmatprep.subr.bf16.mxu0 %v646_v12 }
  0x1d   : > { %622 = vmatprep.subr.bf16.mxu1 %v646_v12 }
  0x1f   : > { %605 = vmatpush3.bf16.msra.mxu0 %v646_v12 }
  0x20   : > { %630 = vmatpush3.bf16.msra.mxu1 %v646_v12  ;;  %606 = vmatprep.subr.bf16.mxu0 %v647_v13 }
  0x21   : > { %623 = vmatprep.subr.bf16.mxu1 %v647_v13 }
  0x23   : > { %607 = vmatpush3.bf16.msra.mxu0 %v647_v13 }
  0x24   : > { %631 = vmatpush3.bf16.msra.mxu1 %v647_v13 }
  0x26   : > { %609 = vmatmul.mubr.bf16.vlgmr.msra.gmra.mrb[0].mxu0 %v325_v18 }
  0x27   : > { %613 = vmatmul.mubr.bf16.vlgmr.msra.gmra.mrb[0].mxu1 %v327_v19 }
  0xf9   : > { %v610_v44 = vpop.f32.mrb[0].mxu0 }
  0xfa   : > { %v614_v46 = vpop.f32.mrb[0].mxu1  ;;  %v459_v49 = vadd.f32 %v610_v44, %v310_v38  ;;  %v426_v51 = vpop.f32.mrb[1].mxu0 }
  0xfb   : > { %v463_v50 = vadd.f32 %v614_v46, %v314_v39  ;;  %v442_v52 = vpop.f32.mrb[1].mxu1  ;;  %v457_v53 = vadd.f32 %v426_v51, %v308_v40  ;;  %v611_v55 = vpop.f32.mrb[2].mxu0 }
  0xfc   : > { %v461_v54 = vadd.f32 %v442_v52, %v312_v41  ;;  %v615_v56 = vpop.f32.mrb[2].mxu1  ;;  %v474_v57 = vadd.f32 %v577_v45, %v459_v49  ;;  %v460_v59 = vadd.f32 %v611_v55, %v311_v42  ;;  %v429_v61 = vpop.f32.mrb[3].mxu0 }
  0xfd   : > { %v478_v58 = vadd.f32 %v577_v45, %v463_v50  ;;  %v464_v60 = vadd.f32 %v615_v56, %v315_v43  ;;  %v445_v62 = vpop.f32.mrb[3].mxu1  ;;  %v472_v63 = vadd.f32 %v577_v45, %v457_v53  ;;  %v458_v1 = vadd.f32 %v429_v61, %v309_v47 }
  0xfe   : > { %v476_v0 = vadd.f32 %v577_v45, %v461_v54  ;;  %v462_v2 = vadd.f32 %v445_v62, %v313_v48  ;;  %482 = vst [vmem:[%s275_s9 + $0x10] sm:$0xff] %v474_v57  ;;  %v475_v3 = vadd.f32 %v577_v45, %v460_v59 }
  0xff   : > { %486 = vst [vmem:[%s275_s9 + $0x30] sm:$0xff] %v478_v58  ;;  %v479_v4 = vadd.f32 %v577_v45, %v464_v60  ;;  %480 = vst [vmem:[%s275_s9] sm:$0xff] %v472_v63  ;;  %v473_v5 = vadd.f32 %v577_v45, %v458_v1 }
 0x100   : > { %484 = vst [vmem:[%s275_s9 + $0x20] sm:$0xff] %v476_v0  ;;  %v477_v6 = vadd.f32 %v577_v45, %v462_v2  ;;  %483 = vst [vmem:[%s275_s9 + $0x18] sm:$0xff] %v475_v3 }
 0x101   : > { %487 = vst [vmem:[%s275_s9 + $0x38] sm:$0xff] %v479_v4  ;;  %481 = vst [vmem:[%s275_s9 + $0x8] sm:$0xff] %v473_v5 }
 0x102   : > { %485 = vst [vmem:[%s275_s9 + $0x28] sm:$0xff] %v477_v6 }
 0x103 PF: > { %s16_s21 = sadd.s32 1, %s654_s21  }
 0x104   : > { %p13_p4 = scmp.ge.s32.totalorder %s16_s21, 6  }
 0x106   :  { %15 = sbr.rel (!%p13_p4) target bundleno = 1 (0x1), region = 77 }

// kernel: graph_transformer_stack.20
= control target key start
LH: loop header
LB: loop body
LE: loop exit
PB: predicated region body
PF: predicated region fallthrough
CT: control target
= control target key end

     0   :  { %s627_s18 = smov 0   ;;  %s683_s0 = inlined_call_operand.vmem [shape: f32[64,128], index: 0, kind: input, shape index: {}]   ;;  %s684_s1 = inlined_call_operand.vmem [shape: f32[64,128], index: 1, kind: input, shape index: {}]   ;;  %s685_s2 = inlined_call_operand.vmem [shape: f32[64,128], index: 2, kind: input, shape index: {}]   ;;  %s686_s3 = inlined_call_operand.vmem [shape: bf16[128,128], index: 3, kind: input, shape index: {}]   ;;  %s687_s4 = inlined_call_operand.vmem [shape: f32[1,128], index: 4, kind: input, shape index: {}]   ;;  %s688_s5 = inlined_call_operand.vmem [shape: f32[64,128], index: 5, kind: output, shape index: {}]  }
   0x1 LB: > { %s511_s19 = sadd.s32 4294967295, %s595_s18   ;;  %p515_p0 = scmp.ge.s32.totalorder %s595_s18, 1  ;;  %s595_s18 = sphi %s627_s18, %s15_s18  }
   0x2   : > { %p210_p1 = scmp.lt.s32.totalorder %s595_s18, 3 }
   0x4   : > { %p211_p2 = pnand %p515_p0, %p210_p1 }
   0x5   : > { %v573_v0 = vld [vmem:[%s686_s3] sm:$0xff] (!%p211_p2)   ;;  %s516_s22 = sshll.u32 (!%p211_p2), %s511_s19, 2  ;;  %v574_v1 = vld [vmem:[%s686_s3 + $0x8] sm:$0xff] (!%p211_p2)   ;;  %v575_v2 = vld [vmem:[%s686_s3 + $0x10] sm:$0xff] (!%p211_p2)  }
   0x6   : > { %214 = sbr.rel (%p211_p2) target bundleno = 258 (0x102), region = 40  ;;  %p249_p3 = scmp.lt.s32.totalorder (!%p211_p2), %s516_s22, 7  ;;  %545 = vmatprep.subr.bf16.mxu0 (!%p211_p2), %v573_v0  ;;  %v576_v3 = vld [vmem:[%s686_s3 + $0x18] sm:$0xff] (!%p211_p2)   ;;  %v577_v12 = vld [vmem:[%s686_s3 + $0x20] sm:$0xff] (!%p211_p2)   ;;  %v578_v13 = vld [vmem:[%s686_s3 + $0x28] sm:$0xff] (!%p211_p2)  }
   0x7   : > { %546 = vmatpush3.bf16.msra.mxu0 (!%p211_p2), %v573_v0  ;;  %v579_v15 = vld [vmem:[%s686_s3 + $0x30] sm:$0xff] (!%p211_p2)   ;;  %v580_v25 = vld [vmem:[%s686_s3 + $0x38] sm:$0xff] (!%p211_p2)   ;;  %v532_v33 = vld [vmem:[%s687_s4] ss:$0 sm:$0xff] (!%p211_p2) }
   0x8   : > { %547 = vmatprep.subr.bf16.mxu0 (!%p211_p2), %v574_v1 }
   0xb   : > { %548 = vmatpush3.bf16.msra.mxu0 (!%p211_p2), %v574_v1 }
   0xc   : > { %549 = vmatprep.subr.bf16.mxu0 (!%p211_p2), %v575_v2 }
   0xd   : > { %s690_s22 = smov (!%p249_p3, %s516_s22), 7 }
   0xe   : > { %s644_s27 = sshll.u32 %s690_s22, 3 }
   0xf   : > { %s264_s30 = scalar_lea.vmem %s685_s2, %s644_s27  ;;  %550 = vmatpush3.bf16.msra.mxu0 %v575_v2  ;;  %s258_s14 = scalar_lea.vmem %s684_s1, %s644_s27 }
  0x10   : > { %v277_v4 = vld [vmem:[%s264_s30] sm:$0xff]  ;;  %v278_v5 = vld [vmem:[%s264_s30 + $0x8] sm:$0xff]  ;;  %v279_v8 = vld [vmem:[%s264_s30 + $0x10] sm:$0xff]  ;;  %551 = vmatprep.subr.bf16.mxu0 %v576_v3  ;;  %s252_s22 = scalar_lea.vmem %s683_s0, %s644_s27  ;;  %s270_s28 = scalar_lea.vmem %s688_s5, %s644_s27 }
  0x11   : > { %v281_v6 = vadd.f32 1e-06, %v277_v4  ;;  %v282_v7 = vadd.f32 1e-06, %v278_v5  ;;  %v280_v9 = vld [vmem:[%s264_s30 + $0x18] sm:$0xff]  ;;  %v273_v14 = vld [vmem:[%s258_s14] sm:$0xff] }
  0x12   : > { %v283_v10 = vadd.f32 1e-06, %v279_v8  ;;  %v284_v11 = vadd.f32 1e-06, %v280_v9  ;;  %v274_v16 = vld [vmem:[%s258_s14 + $0x8] sm:$0xff]  ;;  %v275_v22 = vld [vmem:[%s258_s14 + $0x10] sm:$0xff] }
  0x13   : > { %581 = vrcp.f32 %v281_v6  ;;  %552 = vmatpush3.bf16.msra.mxu0 %v576_v3  ;;  %v276_v23 = vld [vmem:[%s258_s14 + $0x18] sm:$0xff]  ;;  %v408_v30 = vld [vmem:[%s252_s22] sm:$0xff]  ;;  %v410_v32 = vld [vmem:[%s252_s22 + $0x10] sm:$0xff] }
  0x14   : > { %583 = vrcp.f32 %v282_v7  ;;  %553 = vmatprep.subr.bf16.mxu0 %v577_v12  ;;  %v411_v35 = vld [vmem:[%s252_s22 + $0x18] sm:$0xff]  ;;  %v409_v36 = vld [vmem:[%s252_s22 + $0x8] sm:$0xff] }
  0x15   : > { %585 = vrcp.f32 %v283_v10 }
  0x16   : > { %587 = vrcp.f32 %v284_v11 }
  0x17   : > { %554 = vmatpush3.bf16.msra.mxu0 %v577_v12 }
  0x18   : > { %555 = vmatprep.subr.bf16.mxu0 %v578_v13 }
  0x1b   : > { %556 = vmatpush3.bf16.msra.mxu0 %v578_v13 }
  0x1c   : > { %557 = vmatprep.subr.bf16.mxu0 %v579_v15 }
  0x1d   : > { %v582_v17 = vpop.eup %581 }
  0x1e   : > { %v584_v18 = vpop.eup %583  ;;  %v289_v19 = vmul.f32 %v582_v17, %v273_v14 }
  0x1f   : > { %v586_v20 = vpop.eup %585  ;;  %v290_v21 = vmul.f32 %v584_v18, %v274_v16  ;;  %558 = vmatpush3.bf16.msra.mxu0 %v579_v15 }
  0x20   : > { %v588_v24 = vpop.eup %587  ;;  %v291_v27 = vmul.f32 %v586_v20, %v275_v22  ;;  %559 = vmatprep.subr.bf16.mxu0 %v580_v25 }
  0x21   : > { %v293_v26 = vpack.c.bf16 %v290_v21, %v289_v19  ;;  %v292_v28 = vmul.f32 %v588_v24, %v276_v23 }
  0x23   : > { %561 = vmatprep.mubr.bf16.mxu0 %v293_v26  ;;  %v294_v29 = vpack.c.bf16 %v292_v28, %v291_v27  ;;  %560 = vmatpush3.bf16.msra.mxu0 %v580_v25 }
  0x26   : > { %562 = vmatmul.mubr.bf16.vlgmr.msra.gmra.mrb[0].mxu0 %v294_v29 }
  0xf9   : > { %v563_v31 = vpop.f32.mrb[0].mxu0 }
  0xfa   : > { %v393_v34 = vpop.f32.mrb[1].mxu0  ;;  %v414_v39 = vadd.f32 %v563_v31, %v410_v32 }
  0xfb   : > { %v412_v37 = vadd.f32 %v408_v30, %v393_v34  ;;  %v564_v38 = vpop.f32.mrb[2].mxu0 }
  0xfc   : > { %v396_v40 = vpop.f32.mrb[3].mxu0  ;;  %v415_v42 = vadd.f32 %v564_v38, %v411_v35  ;;  %v425_v45 = vadd.f32 %v532_v33, %v414_v39 }
  0xfd   : > { %v423_v41 = vadd.f32 %v532_v33, %v412_v37  ;;  %v413_v43 = vadd.f32 %v409_v36, %v396_v40 }
  0xfe   : > { %v426_v46 = vadd.f32 %v532_v33, %v415_v42  ;;  %429 = vst [vmem:[%s270_s28 + $0x10] sm:$0xff] %v425_v45 }
  0xff   : > { %427 = vst [vmem:[%s270_s28] sm:$0xff] %v423_v41  ;;  %v424_v44 = vadd.f32 %v532_v33, %v413_v43 }
 0x100   : > { %430 = vst [vmem:[%s270_s28 + $0x18] sm:$0xff] %v426_v46 }
 0x101   : > { %428 = vst [vmem:[%s270_s28 + $0x8] sm:$0xff] %v424_v44 }
 0x102 PF: > { %s15_s18 = sadd.s32 1, %s595_s18  }
 0x103   : > { %p12_p4 = scmp.ge.s32.totalorder %s15_s18, 4  }
 0x105   :  { %14 = sbr.rel (!%p12_p4) target bundleno = 1 (0x1), region = 76 }

// kernel: graph_transformer_stack.23
= control target key start
LH: loop header
LB: loop body
LE: loop exit
PB: predicated region body
PF: predicated region fallthrough
CT: control target
= control target key end

     0   :  { %s994_s24 = smov 0   ;;  %s1182_s0 = inlined_call_operand.vmem [shape: f32[256,128], index: 0, kind: input, shape index: {}]   ;;  %s1183_s1 = inlined_call_operand.vmem [shape: f32[1,128], index: 1, kind: input, shape index: {}]   ;;  %s1184_s2 = inlined_call_operand.vmem [shape: f32[1,128], index: 2, kind: input, shape index: {}]   ;;  %s1185_s3 = inlined_call_operand.vmem [shape: bf16[128,256], index: 3, kind: input, shape index: {}]   ;;  %s1186_s4 = inlined_call_operand.vmem [shape: f32[1,256], index: 4, kind: input, shape index: {}]   ;;  %s1187_s5 = inlined_call_operand.vmem [shape: bf16[256,128], index: 5, kind: input, shape index: {}]   ;;  %s1188_s6 = inlined_call_operand.vmem [shape: f32[1,128], index: 6, kind: input, shape index: {}]   ;;  %s1189_s7 = inlined_call_operand.vmem [shape: f32[256,128], index: 7, kind: output, shape index: {}]  }
   0x1 LB: > { %s810_s25 = sadd.s32 4294967295, %s951_s24   ;;  %p814_p0 = scmp.ge.s32.totalorder %s951_s24, 1  ;;  %s951_s24 = sphi %s994_s24, %s17_s24  }
   0x2   : > { %p238_p1 = scmp.lt.s32.totalorder %s951_s24, 5 }
   0x4   : > { %p239_p2 = pnand %p814_p0, %p238_p1 }
   0x5   : > { %v905_v0 = vld [vmem:[%s1185_s3 + $0x4] ss:$8 sps:$4 sm:$0xff] (!%p239_p2)   ;;  %s815_s28 = sshll.u32 (!%p239_p2), %s810_s25, 3  ;;  %v907_v1 = vld [vmem:[%s1185_s3] ss:$8 sps:$4 sm:$0xff] (!%p239_p2)   ;;  %v953_v2 = vmov (!%p239_p2), 0   ;;  %v343_v63 = vlaneseq (!%p239_p2) }
   0x6   : > { %242 = sbr.rel (%p239_p2) target bundleno = 506 (0x1fa), region = 48  ;;  %465 = vmatprep.mubr.bf16.mxu0 (!%p239_p2), %v953_v2  ;;  %433 = vmatprep.subr.bf16.mxu0 (!%p239_p2), %v905_v0  ;;  %v908_v3 = vld [vmem:[%s1185_s3 + $0x14] ss:$8 sps:$4 sm:$0xff] (!%p239_p2)   ;;  %v910_v4 = vld [vmem:[%s1185_s3 + $0x10] ss:$8 sps:$4 sm:$0xff] (!%p239_p2)   ;;  %p271_p3 = scmp.lt.s32.totalorder (!%p239_p2), %s815_s28, 31 }
   0x7   : > { %434 = vmatpush1.bf16.msra.mxu0 (!%p239_p2), %v907_v1  ;;  %v911_v5 = vld [vmem:[%s1185_s3 + $0x24] ss:$8 sps:$4 sm:$0xff] (!%p239_p2)   ;;  %v913_v6 = vld [vmem:[%s1185_s3 + $0x20] ss:$8 sps:$4 sm:$0xff] (!%p239_p2)   ;;  %v914_v7 = vld [vmem:[%s1185_s3 + $0x34] ss:$8 sps:$4 sm:$0xff] (!%p239_p2)  }
   0x8   : > { %435 = vmatprep.subr.bf16.mxu0 (!%p239_p2), %v908_v3  ;;  %v916_v8 = vld [vmem:[%s1185_s3 + $0x30] ss:$8 sps:$4 sm:$0xff] (!%p239_p2)   ;;  %v917_v9 = vld [vmem:[%s1185_s3 + $0x44] ss:$8 sps:$4 sm:$0xff] (!%p239_p2)   ;;  %v919_v10 = vld [vmem:[%s1185_s3 + $0x40] ss:$8 sps:$4 sm:$0xff] (!%p239_p2)  }
   0x9   : > { %v920_v11 = vld [vmem:[%s1185_s3 + $0x54] ss:$8 sps:$4 sm:$0xff] (!%p239_p2)   ;;  %v929_v12 = vld [vmem:[%s1187_s5 + $0x40] sm:$0xff] (!%p239_p2)   ;;  %v931_v14 = vld [vmem:[%s1187_s5 + $0x48] sm:$0xff] (!%p239_p2)   ;;  %v344_v0 = vshrl.u32 (!%p239_p2), %v343_v63, 7 }
   0xa   : > { %v930_v13 = vld [vmem:[%s1187_s5] sm:$0xff] (!%p239_p2)   ;;  %856 = vmatprep.subr.bf16.mxu1 (!%p239_p2), %v929_v12  ;;  %v922_v15 = vld [vmem:[%s1185_s3 + $0x50] ss:$8 sps:$4 sm:$0xff] (!%p239_p2)   ;;  %v932_v18 = vld [vmem:[%s1187_s5 + $0x8] sm:$0xff] (!%p239_p2)  }
   0xb   : > { %436 = vmatpush1.bf16.msra.mxu0 (!%p239_p2), %v910_v4  ;;  %857 = vmatpush3.bf16.msra.mxu1 (!%p239_p2), %v930_v13  ;;  %v933_v19 = vld [vmem:[%s1187_s5 + $0x50] sm:$0xff] (!%p239_p2)   ;;  %v819_v20 = vld [vmem:[%s1183_s1] ss:$0 sm:$0xff] (!%p239_p2)  ;;  %v923_v21 = vld [vmem:[%s1185_s3 + $0x64] ss:$8 sps:$4 sm:$0xff] (!%p239_p2)   ;;  %v345_v1 = vsub.s32 (!%p239_p2), 0, %v344_v0 }
   0xc   : > { %437 = vmatprep.subr.bf16.mxu0 (!%p239_p2), %v911_v5  ;;  %858 = vmatprep.subr.bf16.mxu1 (!%p239_p2), %v931_v14  ;;  %v925_v22 = vld [vmem:[%s1185_s3 + $0x60] ss:$8 sps:$4 sm:$0xff] (!%p239_p2)   ;;  %v934_v23 = vld [vmem:[%s1187_s5 + $0x10] sm:$0xff] (!%p239_p2)   ;;  %v935_v27 = vld [vmem:[%s1187_s5 + $0x58] sm:$0xff] (!%p239_p2)   ;;  %v349_v3 = vsub.s32 (!%p239_p2), 1, %v344_v0 }
   0xd   : > { %s1191_s28 = smov (!%p271_p3, %s815_s28), 31  ;;  %v926_v24 = vld [vmem:[%s1185_s3 + $0x74] ss:$8 sps:$4 sm:$0xff]   ;;  %v820_v28 = vld [vmem:[%s1184_s2] ss:$0 sm:$0xff]  ;;  %v939_v40 = vld [vmem:[%s1187_s5 + $0x68] sm:$0xff]  }
   0xe   : > { %s816_s20 = sshll.u32 %s1191_s28, 3  ;;  %v936_v29 = vld [vmem:[%s1187_s5 + $0x18] sm:$0xff]   ;;  %v937_v33 = vld [vmem:[%s1187_s5 + $0x60] sm:$0xff]   ;;  %v940_v58 = vld [vmem:[%s1187_s5 + $0x28] sm:$0xff]  }
   0xf   : > { %438 = vmatpush1.bf16.msra.mxu0 %v913_v6  ;;  %s1044_s8 = scalar_lea.vmem %s1182_s0, %s816_s20  ;;  %859 = vmatpush3.bf16.msra.mxu1 %v932_v18  ;;  %v928_v30 = vld [vmem:[%s1185_s3 + $0x70] ss:$8 sps:$4 sm:$0xff]   ;;  %v938_v36 = vld [vmem:[%s1187_s5 + $0x20] sm:$0xff]   ;;  %s1162_s23 = scalar_lea.vmem %s1189_s7, %s816_s20 }
  0x10   : > { %439 = vmatprep.subr.bf16.mxu0 %v914_v7  ;;  %v283_v16 = vld [vmem:[%s1044_s8] sm:$0xff]  ;;  %v284_v17 = vld [vmem:[%s1044_s8 + $0x8] sm:$0xff]  ;;  %860 = vmatprep.subr.bf16.mxu1 %v933_v19  ;;  %v285_v31 = vld [vmem:[%s1044_s8 + $0x10] sm:$0xff] }
  0x11   : > { %v298_v25 = vmul.f32 %v819_v20, %v283_v16  ;;  %v299_v26 = vmul.f32 %v819_v20, %v284_v17  ;;  %v286_v32 = vld [vmem:[%s1044_s8 + $0x18] sm:$0xff]  ;;  %v300_v38 = vmul.f32 %v819_v20, %v285_v31  ;;  %v287_v43 = vld [vmem:[%s1044_s8 + $0x20] sm:$0xff]  ;;  %v288_v44 = vld [vmem:[%s1044_s8 + $0x28] sm:$0xff] }
  0x12   : > { %v301_v39 = vmul.f32 %v819_v20, %v286_v32  ;;  %v302_v46 = vmul.f32 %v819_v20, %v287_v43  ;;  %v303_v47 = vmul.f32 %v819_v20, %v288_v44  ;;  %v289_v50 = vld [vmem:[%s1044_s8 + $0x30] sm:$0xff]  ;;  %v290_v51 = vld [vmem:[%s1044_s8 + $0x38] sm:$0xff] }
  0x13   : > { %440 = vmatpush1.bf16.msra.mxu0 %v916_v8  ;;  %861 = vmatpush3.bf16.msra.mxu1 %v934_v23  ;;  %v1098_v34 = vadd.f32 %v820_v28, %v298_v25  ;;  %v1100_v35 = vadd.f32 %v820_v28, %v299_v26  ;;  %v1110_v41 = vadd.f32 %v820_v28, %v300_v38  ;;  %v941_v59 = vld [vmem:[%s1187_s5 + $0x70] sm:$0xff]   ;;  %v943_v61 = vld [vmem:[%s1187_s5 + $0x78] sm:$0xff]  }
  0x14   : > { %441 = vmatprep.subr.bf16.mxu0 %v917_v9  ;;  %862 = vmatprep.subr.bf16.mxu1 %v935_v27  ;;  %v1112_v42 = vadd.f32 %v820_v28, %v301_v39  ;;  %v1119_v48 = vadd.f32 %v820_v28, %v302_v46  ;;  %v1121_v49 = vadd.f32 %v820_v28, %v303_v47  ;;  %v942_v60 = vld [vmem:[%s1187_s5 + $0x30] sm:$0xff]   ;;  %v944_v62 = vld [vmem:[%s1187_s5 + $0x38] sm:$0xff]  }
  0x15   : > { %v321_v37 = vpack.c.bf16 %v1100_v35, %v1098_v34  ;;  %v304_v53 = vmul.f32 %v819_v20, %v289_v50  ;;  %v305_v54 = vmul.f32 %v819_v20, %v290_v51 }
  0x16   : > { %v322_v45 = vpack.c.bf16 %v1112_v42, %v1110_v41  ;;  %v323_v52 = vpack.c.bf16 %v1121_v49, %v1119_v48 }
  0x17   : > { %442 = vmatpush1.bf16.msra.mxu0 %v919_v10  ;;  %863 = vmatpush3.bf16.msra.mxu1 %v936_v29  ;;  %v1128_v55 = vadd.f32 %v820_v28, %v304_v53  ;;  %v1130_v56 = vadd.f32 %v820_v28, %v305_v54 }
  0x18   : > { %443 = vmatprep.subr.bf16.mxu0 %v920_v11  ;;  %864 = vmatprep.subr.bf16.mxu1 %v937_v33 }
  0x19   : > { %v324_v57 = vpack.c.bf16 %v1130_v56, %v1128_v55 }
  0x1b   : > { %444 = vmatpush1.bf16.msra.mxu0 %v922_v15  ;;  %865 = vmatpush3.bf16.msra.mxu1 %v938_v36 }
  0x1c   : > { %445 = vmatprep.subr.bf16.mxu0 %v923_v21  ;;  %866 = vmatprep.subr.bf16.mxu1 %v939_v40 }
  0x1f   : > { %446 = vmatpush1.bf16.msra.mxu0 %v925_v22  ;;  %867 = vmatpush3.bf16.msra.mxu1 %v940_v58 }
  0x20   : > { %447 = vmatprep.subr.bf16.mxu0 %v926_v24  ;;  %868 = vmatprep.subr.bf16.mxu1 %v941_v59 }
  0x23   : > { %448 = vmatpush1.bf16.msra.mxu0 %v928_v30  ;;  %869 = vmatpush3.bf16.msra.mxu1 %v942_v60 }
  0x24   : > { %870 = vmatprep.subr.bf16.mxu1 %v943_v61 }
  0x26   : > { %466 = vmatmul.mubr.bf16.vlgmr.msra.gmra.mrb[0].mxu0 %v321_v37 }
  0x27   : > { %475 = vmatprep.mubr.bf16.mxu0 %v953_v2  ;;  %871 = vmatpush3.bf16.msra.mxu1 %v944_v62 }
  0x2e   : > { %476 = vmatmul.mubr.bf16.gmra.mrb[4].mxu0 %v322_v45 }
  0x2f   : > { %485 = vmatprep.mubr.bf16.mxu0 %v953_v2 }
  0x36   : > { %486 = vmatmul.mubr.bf16.gmra.mrb[8].mxu0 %v323_v52 }
  0x37   : > { %495 = vmatprep.mubr.bf16.mxu0 %v953_v2  ;;  %v341_v2 = vld [vmem:[%s1186_s4] sm:$0x3] }
  0x38   : > { %v346_v4 = vrot.slane %v341_v2, %v345_v1  ;;  %v350_v5 = vrot.slane %v341_v2, %v349_v3 }
  0x3e   : > { %496 = vmatmul.mubr.bf16.gmra.mrb[12].mxu0 %v324_v57 }
  0xf9   : > { %v467_v6 = vpop.f32.mrb[0].mxu0 }
  0xfa   : > { %v468_v7 = vadd.f32 %v467_v6, %v346_v4  ;;  %v469_v8 = vpop.f32.mrb[1].mxu0 }
  0xfb   : > { %v470_v9 = vadd.f32 %v469_v8, %v350_v5  ;;  %v471_v10 = vpop.f32.mrb[2].mxu0 }
  0xfc   : > { %v472_v11 = vadd.f32 %v471_v10, %v346_v4  ;;  %v473_v12 = vpop.f32.mrb[3].mxu0  ;;  %v506_v14 = vmax.f32 %v468_v7, 0.0 }
  0xfd   : > { %v474_v13 = vadd.f32 %v473_v12, %v350_v5  ;;  %v507_v16 = vmax.f32 %v470_v9, 0.0 }
  0xfe   : > { %v508_v15 = vmax.f32 %v472_v11, 0.0 }
  0xff   : > { %v509_v17 = vmax.f32 %v474_v13, 0.0 }
 0x100   : > { %v522_v18 = vpack.c.bf16 %v508_v15, %v506_v14 }
 0x101   : > { %v477_v19 = vpop.f32.mrb[4].mxu0  ;;  %v523_v20 = vpack.c.bf16 %v509_v17, %v507_v16 }
 0x102   : > { %v478_v21 = vadd.f32 %v477_v19, %v346_v4  ;;  %v479_v22 = vpop.f32.mrb[5].mxu0 }
 0x103   : > { %v480_v23 = vadd.f32 %v479_v22, %v350_v5  ;;  %v481_v24 = vpop.f32.mrb[6].mxu0  ;;  %690 = vmatprep.mubr.bf16.mxu1 %v523_v20 }
 0x104   : > { %v482_v25 = vadd.f32 %v481_v24, %v346_v4  ;;  %v483_v26 = vpop.f32.mrb[7].mxu0  ;;  %691 = vmatmul.mubr.bf16.vlgmr.msra.gmra.mrb[0].mxu1 %v522_v18  ;;  %v510_v28 = vmax.f32 %v478_v21, 0.0 }
 0x105   : > { %v484_v27 = vadd.f32 %v483_v26, %v350_v5  ;;  %v511_v30 = vmax.f32 %v480_v23, 0.0 }
 0x106   : > { %v512_v29 = vmax.f32 %v482_v25, 0.0 }
 0x107   : > { %v513_v31 = vmax.f32 %v484_v27, 0.0 }
 0x108   : > { %v524_v32 = vpack.c.bf16 %v512_v29, %v510_v28 }
 0x109   : > { %v525_v33 = vpack.c.bf16 %v513_v31, %v511_v30  ;;  %v487_v36 = vpop.f32.mrb[8].mxu0 }
 0x10a   : > { %v488_v37 = vadd.f32 %v487_v36, %v346_v4  ;;  %v489_v38 = vpop.f32.mrb[9].mxu0 }
 0x10b   : > { %v490_v39 = vadd.f32 %v489_v38, %v350_v5  ;;  %v491_v40 = vpop.f32.mrb[10].mxu0  ;;  %698 = vmatprep.mubr.bf16.mxu1 %v525_v33 }
 0x10c   : > { %v492_v43 = vadd.f32 %v491_v40, %v346_v4  ;;  %v493_v44 = vpop.f32.mrb[11].mxu0  ;;  %699 = vmatmul.mubr.bf16.gmra.mrb[4].mxu1 %v524_v32  ;;  %v514_v46 = vmax.f32 %v488_v37, 0.0 }
 0x10d   : > { %v494_v45 = vadd.f32 %v493_v44, %v350_v5  ;;  %v515_v50 = vmax.f32 %v490_v39, 0.0 }
 0x10e   : > { %v516_v47 = vmax.f32 %v492_v43, 0.0 }
 0x10f   : > { %v517_v51 = vmax.f32 %v494_v45, 0.0 }
 0x110   : > { %v526_v52 = vpack.c.bf16 %v516_v47, %v514_v46 }
 0x111   : > { %v527_v53 = vpack.c.bf16 %v517_v51, %v515_v50  ;;  %v497_v54 = vpop.f32.mrb[12].mxu0 }
 0x112   : > { %v498_v57 = vadd.f32 %v497_v54, %v346_v4  ;;  %v499_v58 = vpop.f32.mrb[13].mxu0 }
 0x113   : > { %v500_v59 = vadd.f32 %v499_v58, %v350_v5  ;;  %v501_v60 = vpop.f32.mrb[14].mxu0  ;;  %706 = vmatprep.mubr.bf16.mxu1 %v527_v53 }
 0x114   : > { %v502_v61 = vadd.f32 %v501_v60, %v346_v4  ;;  %v503_v62 = vpop.f32.mrb[15].mxu0  ;;  %707 = vmatmul.mubr.bf16.gmra.mrb[8].mxu1 %v526_v52  ;;  %v518_v0 = vmax.f32 %v498_v57, 0.0  ;;  %v853_v4 = vld [vmem:[%s1188_s6] ss:$0 sm:$0xff] }
 0x115   : > { %v504_v63 = vadd.f32 %v503_v62, %v350_v5  ;;  %v519_v2 = vmax.f32 %v500_v59, 0.0 }
 0x116   : > { %v520_v1 = vmax.f32 %v502_v61, 0.0 }
 0x117   : > { %v521_v3 = vmax.f32 %v504_v63, 0.0 }
 0x118   : > { %v528_v6 = vpack.c.bf16 %v520_v1, %v518_v0 }
 0x119   : > { %v529_v7 = vpack.c.bf16 %v521_v3, %v519_v2 }
 0x11b   : > { %714 = vmatprep.mubr.bf16.mxu1 %v529_v7 }
 0x11c   : > { %715 = vmatmul.mubr.bf16.gmra.mrb[12].mxu1 %v528_v6 }
 0x1d7   : > { %v872_v8 = vpop.f32.mrb[0].mxu1 }
 0x1d8   : > { %v873_v9 = vpop.f32.mrb[1].mxu1 }
 0x1d9   : > { %v874_v10 = vadd.f32 %v873_v9, %v872_v8  ;;  %v875_v11 = vpop.f32.mrb[2].mxu1 }
 0x1da   : > { %v876_v12 = vpop.f32.mrb[3].mxu1 }
 0x1db   : > { %v723_v5 = vadd.f32 %v874_v10, %v1098_v34  ;;  %v877_v13 = vadd.f32 %v876_v12, %v875_v11 }
 0x1dd   : > { %v738_v14 = vadd.f32 %v853_v4, %v723_v5  ;;  %v724_v15 = vadd.f32 %v877_v13, %v1100_v35 }
 0x1df   : > { %746 = vst [vmem:[%s1162_s23] sm:$0xff] %v738_v14  ;;  %v739_v16 = vadd.f32 %v853_v4, %v724_v15  ;;  %v878_v17 = vpop.f32.mrb[4].mxu1 }
 0x1e0   : > { %v879_v18 = vpop.f32.mrb[5].mxu1 }
 0x1e1   : > { %747 = vst [vmem:[%s1162_s23 + $0x8] sm:$0xff] %v739_v16  ;;  %v880_v34 = vadd.f32 %v879_v18, %v878_v17  ;;  %v881_v19 = vpop.f32.mrb[6].mxu1 }
 0x1e2   : > { %v882_v20 = vpop.f32.mrb[7].mxu1 }
 0x1e3   : > { %v725_v21 = vadd.f32 %v880_v34, %v1110_v41  ;;  %v883_v22 = vadd.f32 %v882_v20, %v881_v19 }
 0x1e5   : > { %v740_v23 = vadd.f32 %v853_v4, %v725_v21  ;;  %v726_v24 = vadd.f32 %v883_v22, %v1112_v42 }
 0x1e7   : > { %748 = vst [vmem:[%s1162_s23 + $0x10] sm:$0xff] %v740_v23  ;;  %v741_v25 = vadd.f32 %v853_v4, %v726_v24  ;;  %v884_v35 = vpop.f32.mrb[8].mxu1 }
 0x1e8   : > { %v885_v26 = vpop.f32.mrb[9].mxu1 }
 0x1e9   : > { %749 = vst [vmem:[%s1162_s23 + $0x18] sm:$0xff] %v741_v25  ;;  %v886_v27 = vadd.f32 %v885_v26, %v884_v35  ;;  %v887_v28 = vpop.f32.mrb[10].mxu1 }
 0x1ea   : > { %v888_v29 = vpop.f32.mrb[11].mxu1 }
 0x1eb   : > { %v727_v30 = vadd.f32 %v886_v27, %v1119_v48  ;;  %v889_v31 = vadd.f32 %v888_v29, %v887_v28 }
 0x1ed   : > { %v742_v32 = vadd.f32 %v853_v4, %v727_v30  ;;  %v728_v41 = vadd.f32 %v889_v31, %v1121_v49 }
 0x1ef   : > { %750 = vst [vmem:[%s1162_s23 + $0x20] sm:$0xff] %v742_v32  ;;  %v743_v33 = vadd.f32 %v853_v4, %v728_v41  ;;  %v890_v42 = vpop.f32.mrb[12].mxu1 }
 0x1f0   : > { %v891_v36 = vpop.f32.mrb[13].mxu1 }
 0x1f1   : > { %751 = vst [vmem:[%s1162_s23 + $0x28] sm:$0xff] %v743_v33  ;;  %v892_v37 = vadd.f32 %v891_v36, %v890_v42  ;;  %v893_v38 = vpop.f32.mrb[14].mxu1 }
 0x1f2   : > { %v894_v39 = vpop.f32.mrb[15].mxu1 }
 0x1f3   : > { %v729_v40 = vadd.f32 %v892_v37, %v1128_v55  ;;  %v895_v43 = vadd.f32 %v894_v39, %v893_v38 }
 0x1f5   : > { %v744_v44 = vadd.f32 %v853_v4, %v729_v40  ;;  %v730_v48 = vadd.f32 %v895_v43, %v1130_v56 }
 0x1f7   : > { %752 = vst [vmem:[%s1162_s23 + $0x30] sm:$0xff] %v744_v44  ;;  %v745_v45 = vadd.f32 %v853_v4, %v730_v48 }
 0x1f9   : > { %753 = vst [vmem:[%s1162_s23 + $0x38] sm:$0xff] %v745_v45 }
 0x1fa PF: > { %s17_s24 = sadd.s32 1, %s951_s24  }
 0x1fb   : > { %p14_p4 = scmp.ge.s32.totalorder %s17_s24, 6  }
 0x1fd   :  { %16 = sbr.rel (!%p14_p4) target bundleno = 1 (0x1), region = 78 }

// kernel: graph_transformer_stack.22
= control target key start
LH: loop header
LB: loop body
LE: loop exit
PB: predicated region body
PF: predicated region fallthrough
CT: control target
= control target key end

     0   :  { %s908_s24 = smov 0   ;;  %s1064_s0 = inlined_call_operand.vmem [shape: f32[64,128], index: 0, kind: input, shape index: {}]   ;;  %s1065_s1 = inlined_call_operand.vmem [shape: f32[1,128], index: 1, kind: input, shape index: {}]   ;;  %s1066_s2 = inlined_call_operand.vmem [shape: f32[1,128], index: 2, kind: input, shape index: {}]   ;;  %s1067_s3 = inlined_call_operand.vmem [shape: bf16[128,256], index: 3, kind: input, shape index: {}]   ;;  %s1068_s4 = inlined_call_operand.vmem [shape: f32[1,256], index: 4, kind: input, shape index: {}]   ;;  %s1069_s5 = inlined_call_operand.vmem [shape: bf16[256,128], index: 5, kind: input, shape index: {}]   ;;  %s1070_s6 = inlined_call_operand.vmem [shape: f32[1,128], index: 6, kind: input, shape index: {}]   ;;  %s1071_s7 = inlined_call_operand.vmem [shape: f32[64,128], index: 7, kind: output, shape index: {}]  }
   0x1 LB: > { %s736_s25 = sadd.s32 4294967295, %s865_s24   ;;  %p740_p0 = scmp.ge.s32.totalorder %s865_s24, 1  ;;  %s865_s24 = sphi %s908_s24, %s17_s24  }
   0x2   : > { %p238_p1 = scmp.lt.s32.totalorder %s865_s24, 3 }
   0x4   : > { %p239_p2 = pnand %p740_p0, %p238_p1 }
   0x5   : > { %v819_v0 = vld [vmem:[%s1067_s3 + $0x4] ss:$8 sps:$4 sm:$0xff] (!%p239_p2)   ;;  %s741_s28 = sshll.u32 (!%p239_p2), %s736_s25, 2  ;;  %v821_v1 = vld [vmem:[%s1067_s3] ss:$8 sps:$4 sm:$0xff] (!%p239_p2)   ;;  %v867_v2 = vmov (!%p239_p2), 0   ;;  %v329_v49 = vlaneseq (!%p239_p2) }
   0x6   : > { %242 = sbr.rel (%p239_p2) target bundleno = 490 (0x1ea), region = 48  ;;  %451 = vmatprep.mubr.bf16.mxu0 (!%p239_p2), %v867_v2  ;;  %419 = vmatprep.subr.bf16.mxu0 (!%p239_p2), %v819_v0  ;;  %v822_v3 = vld [vmem:[%s1067_s3 + $0x14] ss:$8 sps:$4 sm:$0xff] (!%p239_p2)   ;;  %v824_v4 = vld [vmem:[%s1067_s3 + $0x10] ss:$8 sps:$4 sm:$0xff] (!%p239_p2)   ;;  %p271_p3 = scmp.lt.s32.totalorder (!%p239_p2), %s741_s28, 7 }
   0x7   : > { %420 = vmatpush1.bf16.msra.mxu0 (!%p239_p2), %v821_v1  ;;  %v825_v5 = vld [vmem:[%s1067_s3 + $0x24] ss:$8 sps:$4 sm:$0xff] (!%p239_p2)   ;;  %v827_v6 = vld [vmem:[%s1067_s3 + $0x20] ss:$8 sps:$4 sm:$0xff] (!%p239_p2)   ;;  %v828_v7 = vld [vmem:[%s1067_s3 + $0x34] ss:$8 sps:$4 sm:$0xff] (!%p239_p2)  }
   0x8   : > { %421 = vmatprep.subr.bf16.mxu0 (!%p239_p2), %v822_v3  ;;  %v830_v8 = vld [vmem:[%s1067_s3 + $0x30] ss:$8 sps:$4 sm:$0xff] (!%p239_p2)   ;;  %v831_v9 = vld [vmem:[%s1067_s3 + $0x44] ss:$8 sps:$4 sm:$0xff] (!%p239_p2)   ;;  %v833_v10 = vld [vmem:[%s1067_s3 + $0x40] ss:$8 sps:$4 sm:$0xff] (!%p239_p2)  }
   0x9   : > { %v843_v11 = vld [vmem:[%s1069_s5 + $0x40] sm:$0xff] (!%p239_p2)   ;;  %v834_v12 = vld [vmem:[%s1067_s3 + $0x54] ss:$8 sps:$4 sm:$0xff] (!%p239_p2)   ;;  %v845_v14 = vld [vmem:[%s1069_s5 + $0x48] sm:$0xff] (!%p239_p2)   ;;  %v330_v50 = vshrl.u32 (!%p239_p2), %v329_v49, 7 }
   0xa   : > { %v844_v13 = vld [vmem:[%s1069_s5] sm:$0xff] (!%p239_p2)   ;;  %782 = vmatprep.subr.bf16.mxu1 (!%p239_p2), %v843_v11  ;;  %v846_v15 = vld [vmem:[%s1069_s5 + $0x8] sm:$0xff] (!%p239_p2)   ;;  %v836_v16 = vld [vmem:[%s1067_s3 + $0x50] ss:$8 sps:$4 sm:$0xff] (!%p239_p2)  }
   0xb   : > { %422 = vmatpush1.bf16.msra.mxu0 (!%p239_p2), %v824_v4  ;;  %783 = vmatpush3.bf16.msra.mxu1 (!%p239_p2), %v844_v13  ;;  %v847_v18 = vld [vmem:[%s1069_s5 + $0x50] sm:$0xff] (!%p239_p2)   ;;  %v837_v19 = vld [vmem:[%s1067_s3 + $0x64] ss:$8 sps:$4 sm:$0xff] (!%p239_p2)   ;;  %v745_v21 = vld [vmem:[%s1065_s1] ss:$0 sm:$0xff] (!%p239_p2)  ;;  %v331_v51 = vsub.s32 (!%p239_p2), 0, %v330_v50 }
   0xc   : > { %423 = vmatprep.subr.bf16.mxu0 (!%p239_p2), %v825_v5  ;;  %784 = vmatprep.subr.bf16.mxu1 (!%p239_p2), %v845_v14  ;;  %v848_v22 = vld [vmem:[%s1069_s5 + $0x10] sm:$0xff] (!%p239_p2)   ;;  %v839_v23 = vld [vmem:[%s1067_s3 + $0x60] ss:$8 sps:$4 sm:$0xff] (!%p239_p2)   ;;  %v849_v24 = vld [vmem:[%s1069_s5 + $0x58] sm:$0xff] (!%p239_p2)   ;;  %v335_v53 = vsub.s32 (!%p239_p2), 1, %v330_v50 }
   0xd   : > { %s1073_s28 = smov (!%p271_p3, %s741_s28), 7  ;;  %v840_v25 = vld [vmem:[%s1067_s3 + $0x74] ss:$8 sps:$4 sm:$0xff]   ;;  %v746_v28 = vld [vmem:[%s1066_s2] ss:$0 sm:$0xff]  ;;  %v853_v37 = vld [vmem:[%s1069_s5 + $0x68] sm:$0xff]  }
   0xe   : > { %s742_s20 = sshll.u32 %s1073_s28, 3  ;;  %v850_v29 = vld [vmem:[%s1069_s5 + $0x18] sm:$0xff]   ;;  %v851_v30 = vld [vmem:[%s1069_s5 + $0x60] sm:$0xff]   ;;  %v854_v44 = vld [vmem:[%s1069_s5 + $0x28] sm:$0xff]  }
   0xf   : > { %424 = vmatpush1.bf16.msra.mxu0 %v827_v6  ;;  %s961_s10 = scalar_lea.vmem %s1064_s0, %s742_s20  ;;  %785 = vmatpush3.bf16.msra.mxu1 %v846_v15  ;;  %v842_v31 = vld [vmem:[%s1067_s3 + $0x70] ss:$8 sps:$4 sm:$0xff]   ;;  %v852_v36 = vld [vmem:[%s1069_s5 + $0x20] sm:$0xff]   ;;  %s280_s23 = scalar_lea.vmem %s1071_s7, %s742_s20 }
  0x10   : > { %425 = vmatprep.subr.bf16.mxu0 %v828_v7  ;;  %v283_v17 = vld [vmem:[%s961_s10] sm:$0xff]  ;;  %v284_v20 = vld [vmem:[%s961_s10 + $0x8] sm:$0xff]  ;;  %786 = vmatprep.subr.bf16.mxu1 %v847_v18  ;;  %v285_v34 = vld [vmem:[%s961_s10 + $0x10] sm:$0xff] }
  0x11   : > { %v294_v26 = vmul.f32 %v745_v21, %v283_v17  ;;  %v295_v27 = vmul.f32 %v745_v21, %v284_v20  ;;  %v286_v35 = vld [vmem:[%s961_s10 + $0x18] sm:$0xff]  ;;  %v296_v39 = vmul.f32 %v745_v21, %v285_v34  ;;  %v855_v45 = vld [vmem:[%s1069_s5 + $0x70] sm:$0xff]   ;;  %v327_v52 = vld [vmem:[%s1068_s4] sm:$0x3] }
  0x12   : > { %v297_v40 = vmul.f32 %v745_v21, %v286_v35  ;;  %v856_v46 = vld [vmem:[%s1069_s5 + $0x30] sm:$0xff]   ;;  %v857_v47 = vld [vmem:[%s1069_s5 + $0x78] sm:$0xff]   ;;  %v332_v54 = vrot.slane %v327_v52, %v331_v51  ;;  %v336_v55 = vrot.slane %v327_v52, %v335_v53 }
  0x13   : > { %426 = vmatpush1.bf16.msra.mxu0 %v830_v8  ;;  %787 = vmatpush3.bf16.msra.mxu1 %v848_v22  ;;  %v1010_v32 = vadd.f32 %v746_v28, %v294_v26  ;;  %v1012_v33 = vadd.f32 %v746_v28, %v295_v27  ;;  %v1024_v41 = vadd.f32 %v746_v28, %v296_v39  ;;  %v858_v48 = vld [vmem:[%s1069_s5 + $0x38] sm:$0xff]  }
  0x14   : > { %427 = vmatprep.subr.bf16.mxu0 %v831_v9  ;;  %788 = vmatprep.subr.bf16.mxu1 %v849_v24  ;;  %v1026_v42 = vadd.f32 %v746_v28, %v297_v40  ;;  %v779_v24 = vld [vmem:[%s1070_s6] ss:$0 sm:$0xff] }
  0x15   : > { %v309_v38 = vpack.c.bf16 %v1012_v33, %v1010_v32 }
  0x16   : > { %v310_v43 = vpack.c.bf16 %v1026_v42, %v1024_v41 }
  0x17   : > { %428 = vmatpush1.bf16.msra.mxu0 %v833_v10  ;;  %789 = vmatpush3.bf16.msra.mxu1 %v850_v29 }
  0x18   : > { %429 = vmatprep.subr.bf16.mxu0 %v834_v12  ;;  %790 = vmatprep.subr.bf16.mxu1 %v851_v30 }
  0x1b   : > { %430 = vmatpush1.bf16.msra.mxu0 %v836_v16  ;;  %791 = vmatpush3.bf16.msra.mxu1 %v852_v36 }
  0x1c   : > { %431 = vmatprep.subr.bf16.mxu0 %v837_v19  ;;  %792 = vmatprep.subr.bf16.mxu1 %v853_v37 }
  0x1f   : > { %432 = vmatpush1.bf16.msra.mxu0 %v839_v23  ;;  %793 = vmatpush3.bf16.msra.mxu1 %v854_v44 }
  0x20   : > { %433 = vmatprep.subr.bf16.mxu0 %v840_v25  ;;  %794 = vmatprep.subr.bf16.mxu1 %v855_v45 }
  0x23   : > { %434 = vmatpush1.bf16.msra.mxu0 %v842_v31  ;;  %795 = vmatpush3.bf16.msra.mxu1 %v856_v46 }
  0x24   : > { %796 = vmatprep.subr.bf16.mxu1 %v857_v47 }
  0x26   : > { %452 = vmatmul.mubr.bf16.vlgmr.msra.gmra.mrb[0].mxu0 %v309_v38 }
  0x27   : > { %461 = vmatprep.mubr.bf16.mxu0 %v867_v2  ;;  %797 = vmatpush3.bf16.msra.mxu1 %v858_v48 }
  0x2e   : > { %462 = vmatmul.mubr.bf16.gmra.mrb[4].mxu0 %v310_v43 }
  0xf9   : > { %v453_v56 = vpop.f32.mrb[0].mxu0 }
  0xfa   : > { %v454_v57 = vadd.f32 %v453_v56, %v332_v54  ;;  %v455_v58 = vpop.f32.mrb[1].mxu0 }
  0xfb   : > { %v456_v59 = vadd.f32 %v455_v58, %v336_v55  ;;  %v457_v60 = vpop.f32.mrb[2].mxu0 }
  0xfc   : > { %v458_v61 = vadd.f32 %v457_v60, %v332_v54  ;;  %v459_v62 = vpop.f32.mrb[3].mxu0  ;;  %v472_v0 = vmax.f32 %v454_v57, 0.0 }
  0xfd   : > { %v460_v63 = vadd.f32 %v459_v62, %v336_v55  ;;  %v473_v2 = vmax.f32 %v456_v59, 0.0 }
  0xfe   : > { %v474_v1 = vmax.f32 %v458_v61, 0.0 }
  0xff   : > { %v475_v3 = vmax.f32 %v460_v63, 0.0 }
 0x100   : > { %v480_v4 = vpack.c.bf16 %v474_v1, %v472_v0 }
 0x101   : > { %v463_v5 = vpop.f32.mrb[4].mxu0  ;;  %v481_v6 = vpack.c.bf16 %v475_v3, %v473_v2 }
 0x102   : > { %v464_v7 = vadd.f32 %v463_v5, %v332_v54  ;;  %v465_v8 = vpop.f32.mrb[5].mxu0 }
 0x103   : > { %v466_v9 = vadd.f32 %v465_v8, %v336_v55  ;;  %v467_v10 = vpop.f32.mrb[6].mxu0  ;;  %644 = vmatprep.mubr.bf16.mxu1 %v481_v6 }
 0x104   : > { %v468_v11 = vadd.f32 %v467_v10, %v332_v54  ;;  %v469_v12 = vpop.f32.mrb[7].mxu0  ;;  %645 = vmatmul.mubr.bf16.vlgmr.msra.gmra.mrb[0].mxu1 %v480_v4  ;;  %v476_v14 = vmax.f32 %v464_v7, 0.0 }
 0x105   : > { %v470_v13 = vadd.f32 %v469_v12, %v336_v55  ;;  %v477_v16 = vmax.f32 %v466_v9, 0.0 }
 0x106   : > { %v478_v15 = vmax.f32 %v468_v11, 0.0 }
 0x107   : > { %v479_v17 = vmax.f32 %v470_v13, 0.0 }
 0x108   : > { %v482_v18 = vpack.c.bf16 %v478_v15, %v476_v14 }
 0x109   : > { %v483_v19 = vpack.c.bf16 %v479_v17, %v477_v16 }
 0x10b   : > { %652 = vmatprep.mubr.bf16.mxu1 %v483_v19 }
 0x10c   : > { %653 = vmatmul.mubr.bf16.gmra.mrb[4].mxu1 %v482_v18 }
 0x1d7   : > { %v798_v20 = vpop.f32.mrb[0].mxu1 }
 0x1d8   : > { %v799_v21 = vpop.f32.mrb[1].mxu1 }
 0x1d9   : > { %v800_v22 = vadd.f32 %v799_v21, %v798_v20  ;;  %v801_v23 = vpop.f32.mrb[2].mxu1 }
 0x1da   : > { %v802_v25 = vpop.f32.mrb[3].mxu1 }
 0x1db   : > { %v661_v26 = vadd.f32 %v800_v22, %v1010_v32  ;;  %v803_v27 = vadd.f32 %v802_v25, %v801_v23 }
 0x1dd   : > { %v672_v28 = vadd.f32 %v779_v24, %v661_v26  ;;  %v662_v29 = vadd.f32 %v803_v27, %v1012_v33 }
 0x1df   : > { %676 = vst [vmem:[%s280_s23] sm:$0xff] %v672_v28  ;;  %v673_v30 = vadd.f32 %v779_v24, %v662_v29  ;;  %v804_v31 = vpop.f32.mrb[4].mxu1 }
 0x1e0   : > { %v805_v34 = vpop.f32.mrb[5].mxu1 }
 0x1e1   : > { %677 = vst [vmem:[%s280_s23 + $0x8] sm:$0xff] %v673_v30  ;;  %v806_v35 = vadd.f32 %v805_v34, %v804_v31  ;;  %v807_v36 = vpop.f32.mrb[6].mxu1 }
 0x1e2   : > { %v808_v37 = vpop.f32.mrb[7].mxu1 }
 0x1e3   : > { %v663_v38 = vadd.f32 %v806_v35, %v1024_v41  ;;  %v809_v32 = vadd.f32 %v808_v37, %v807_v36 }
 0x1e5   : > { %v674_v39 = vadd.f32 %v779_v24, %v663_v38  ;;  %v664_v40 = vadd.f32 %v809_v32, %v1026_v42 }
 0x1e7   : > { %678 = vst [vmem:[%s280_s23 + $0x10] sm:$0xff] %v674_v39  ;;  %v675_v43 = vadd.f32 %v779_v24, %v664_v40 }
 0x1e9   : > { %679 = vst [vmem:[%s280_s23 + $0x18] sm:$0xff] %v675_v43 }
 0x1ea PF: > { %s17_s24 = sadd.s32 1, %s865_s24  }
 0x1eb   : > { %p14_p4 = scmp.ge.s32.totalorder %s17_s24, 4  }
 0x1ed   :  { %16 = sbr.rel (!%p14_p4) target bundleno = 1 (0x1), region = 78 }

// kernel: graph_transformer_stack.34
= control target key start
LH: loop header
LB: loop body
LE: loop exit
PB: predicated region body
PF: predicated region fallthrough
CT: control target
= control target key end

     0   :  { %12 = vsyncpa [#allocation3], 0  ;;  %s1258_s0 = inlined_call_operand.vmem [shape: f32[64,128], index: 0, kind: input, shape index: {}]   ;;  %s1259_s1 = inlined_call_operand.vmem [shape: f32[1,128], index: 1, kind: input, shape index: {}]   ;;  %s1260_s2 = inlined_call_operand.vmem [shape: f32[1,128], index: 2, kind: input, shape index: {}]   ;;  %s1261_s3 = inlined_call_operand.vmem [shape: bf16[128,256], index: 3, kind: input, shape index: {}]   ;;  %s1262_s4 = inlined_call_operand.vmem [shape: f32[1,256], index: 4, kind: input, shape index: {}]   ;;  %s1263_s5 = inlined_call_operand.vmem [shape: bf16[256,128], index: 5, kind: input, shape index: {}]   ;;  %s1264_s6 = inlined_call_operand.vmem [shape: f32[1,128], index: 6, kind: input, shape index: {}]   ;;  %s1265_s7 = inlined_call_operand.hbm [shape: f32[64,128], index: 7, kind: output, shape index: {}]  }
   0x1   :  { %14 = vsyncpa [#allocation3 + $0x1], 0  ;;  %s1020_s24 = smov 0   ;;  %s1022_s25 = smov 0  }
   0x2   :  { %s1024_s26 = smov 0   ;;  %s1026_s27 = smov 0  }
   0x3 LB: > { %s1041_s28 = sadd.s32 4294967295, %s974_s27   ;;  %s754_s29 = sadd.s32 4294967294, %s974_s27   ;;  %s974_s27 = sphi %s1026_s27, %s1271_s27   ;;  %s970_s26 = sphi %s1024_s26, %s1270_s26   ;;  %s966_s25 = sphi %s1022_s25, %s1269_s25   ;;  %s962_s24 = sphi %s1020_s24, %s1268_s24  }
   0x4   : > { %s1045_s30 = sadd.s32 1, %s974_s27   ;;  %s179_s8 = sadd.s32 1, %s970_s26 }
   0x5   : > { %s176_s9 = ssub.s32 %s974_s27, %s1045_s30  ;;  %p189_p0 = scmp.ne.s32.totalorder %s970_s26, %s966_s25 }
   0x6   : > { %p177_p1 = scmp.eq.s32.totalorder %s176_s9, 0  ;;  %p190_p2 = scmp.eq.s32.totalorder %s1041_s28, 1 }
   0x7   : > { %p195_p3 = scmp.ne.s32.totalorder %s966_s25, %s962_s24  ;;  %p196_p4 = scmp.eq.s32.totalorder %s754_s29, 1 }
   0x8   : > { %s1056_s10 = scalar_select %p177_p1, %s970_s26, %s179_s8  }
   0x9   : > { %p1058_p5 = por %p190_p2, %p189_p0  ;;  %p1062_p6 = por %p196_p4, %p195_p3 }
   0xa   : > { %p757_p7 = scmp.ge.s32.totalorder %s974_s27, 1  ;;  %p241_p8 = scmp.lt.s32.totalorder %s974_s27, 3 }
   0xc   : > { %p242_p9 = pnand %p757_p7, %p241_p8 }
   0xd   : > { %v872_v0 = vld [vmem:[%s1261_s3 + $0x4] ss:$8 sps:$4 sm:$0xff] (!%p242_p9)   ;;  %s759_s15 = sshll.u32 (!%p242_p9), %s1041_s28, 2  ;;  %v874_v1 = vld [vmem:[%s1261_s3] ss:$8 sps:$4 sm:$0xff] (!%p242_p9)   ;;  %v976_v2 = vmov (!%p242_p9), 0   ;;  %v327_v49 = vlaneseq (!%p242_p9) }
   0xe   : > { %245 = sbr.rel (%p242_p9) target bundleno = 512 (0x200), region = 48  ;;  %449 = vmatprep.mubr.bf16.mxu0 (!%p242_p9), %v976_v2  ;;  %417 = vmatprep.subr.bf16.mxu0 (!%p242_p9), %v872_v0  ;;  %v875_v3 = vld [vmem:[%s1261_s3 + $0x14] ss:$8 sps:$4 sm:$0xff] (!%p242_p9)   ;;  %v877_v4 = vld [vmem:[%s1261_s3 + $0x10] ss:$8 sps:$4 sm:$0xff] (!%p242_p9)   ;;  %p274_p10 = scmp.lt.s32.totalorder (!%p242_p9), %s759_s15, 7 }
   0xf   : > { %418 = vmatpush1.bf16.msra.mxu0 (!%p242_p9), %v874_v1  ;;  %v878_v5 = vld [vmem:[%s1261_s3 + $0x24] ss:$8 sps:$4 sm:$0xff] (!%p242_p9)   ;;  %v880_v6 = vld [vmem:[%s1261_s3 + $0x20] ss:$8 sps:$4 sm:$0xff] (!%p242_p9)   ;;  %v881_v7 = vld [vmem:[%s1261_s3 + $0x34] ss:$8 sps:$4 sm:$0xff] (!%p242_p9)  }
  0x10   : > { %419 = vmatprep.subr.bf16.mxu0 (!%p242_p9), %v875_v3  ;;  %v883_v8 = vld [vmem:[%s1261_s3 + $0x30] ss:$8 sps:$4 sm:$0xff] (!%p242_p9)   ;;  %v884_v9 = vld [vmem:[%s1261_s3 + $0x44] ss:$8 sps:$4 sm:$0xff] (!%p242_p9)   ;;  %v886_v10 = vld [vmem:[%s1261_s3 + $0x40] ss:$8 sps:$4 sm:$0xff] (!%p242_p9)  }
  0x11   : > { %v896_v11 = vld [vmem:[%s1263_s5 + $0x40] sm:$0xff] (!%p242_p9)   ;;  %v887_v12 = vld [vmem:[%s1261_s3 + $0x54] ss:$8 sps:$4 sm:$0xff] (!%p242_p9)   ;;  %v898_v14 = vld [vmem:[%s1263_s5 + $0x48] sm:$0xff] (!%p242_p9)   ;;  %v328_v50 = vshrl.u32 (!%p242_p9), %v327_v49, 7  ;;  %s801_s9 = sshll.u32 (!%p242_p9), %s1041_s28, 9 }
  0x12   : > { %v897_v13 = vld [vmem:[%s1263_s5] sm:$0xff] (!%p242_p9)   ;;  %802 = vmatprep.subr.bf16.mxu1 (!%p242_p9), %v896_v11  ;;  %v899_v15 = vld [vmem:[%s1263_s5 + $0x8] sm:$0xff] (!%p242_p9)   ;;  %v889_v16 = vld [vmem:[%s1261_s3 + $0x50] ss:$8 sps:$4 sm:$0xff] (!%p242_p9)   ;;  %s1213_s16 = scalar_lea.hbm (!%p242_p9), %s1265_s7, %s801_s9  ;;  %s977_s19 = smov (!%p242_p9), [#allocation2]  }
  0x13   : > { %420 = vmatpush1.bf16.msra.mxu0 (!%p242_p9), %v877_v4  ;;  %803 = vmatpush3.bf16.msra.mxu1 (!%p242_p9), %v897_v13  ;;  %v900_v18 = vld [vmem:[%s1263_s5 + $0x50] sm:$0xff] (!%p242_p9)   ;;  %v890_v19 = vld [vmem:[%s1261_s3 + $0x64] ss:$8 sps:$4 sm:$0xff] (!%p242_p9)   ;;  %v761_v21 = vld [vmem:[%s1259_s1] ss:$0 sm:$0xff] (!%p242_p9)  ;;  %v329_v51 = vsub.s32 (!%p242_p9), 0, %v328_v50 }
  0x14   : > { %421 = vmatprep.subr.bf16.mxu0 (!%p242_p9), %v878_v5  ;;  %804 = vmatprep.subr.bf16.mxu1 (!%p242_p9), %v898_v14  ;;  %v901_v22 = vld [vmem:[%s1263_s5 + $0x10] sm:$0xff] (!%p242_p9)   ;;  %v892_v23 = vld [vmem:[%s1261_s3 + $0x60] ss:$8 sps:$4 sm:$0xff] (!%p242_p9)   ;;  %v902_v24 = vld [vmem:[%s1263_s5 + $0x58] sm:$0xff] (!%p242_p9)   ;;  %v333_v53 = vsub.s32 (!%p242_p9), 1, %v328_v50  ;;  %s916_s20 = sshll.u32 (!%p242_p9), %s977_s19, 4  ;;  %s917_s20 = int_to_ptr.vmem [resolvable:$false] %s916_s20 }
  0x15   : > { %s1273_s15 = smov (!%p274_p10, %s759_s15), 7  ;;  %v893_v25 = vld [vmem:[%s1261_s3 + $0x74] ss:$8 sps:$4 sm:$0xff]   ;;  %v762_v28 = vld [vmem:[%s1260_s2] ss:$0 sm:$0xff]  ;;  %v906_v37 = vld [vmem:[%s1263_s5 + $0x68] sm:$0xff]  }
  0x16   : > { %s760_s17 = sshll.u32 %s1273_s15, 3  ;;  %v903_v29 = vld [vmem:[%s1263_s5 + $0x18] sm:$0xff]   ;;  %v904_v30 = vld [vmem:[%s1263_s5 + $0x60] sm:$0xff]   ;;  %v907_v44 = vld [vmem:[%s1263_s5 + $0x28] sm:$0xff]   ;;  %s918_s21 = scalar_lea.vmem %s917_s20, 1024 }
  0x17   : > { %422 = vmatpush1.bf16.msra.mxu0 %v880_v6  ;;  %s1109_s15 = scalar_lea.vmem %s1258_s0, %s760_s17  ;;  %805 = vmatpush3.bf16.msra.mxu1 %v899_v15  ;;  %v895_v31 = vld [vmem:[%s1261_s3 + $0x70] ss:$8 sps:$4 sm:$0xff]   ;;  %v905_v36 = vld [vmem:[%s1263_s5 + $0x20] sm:$0xff]   ;;  %s270_s17 = sand.u32 1, %s966_s25  }
  0x18   : > { %423 = vmatprep.subr.bf16.mxu0 %v881_v7  ;;  %v281_v17 = vld [vmem:[%s1109_s15] sm:$0xff]  ;;  %v282_v20 = vld [vmem:[%s1109_s15 + $0x8] sm:$0xff]  ;;  %806 = vmatprep.subr.bf16.mxu1 %v900_v18  ;;  %v283_v34 = vld [vmem:[%s1109_s15 + $0x10] sm:$0xff]  ;;  %s758_s22 = sshll.u32 %s270_s17, 5  ;;  %s1217_s18 = scalar_lea.sflag [#allocation3], %s270_s17 }
  0x19   : > { %v292_v26 = vmul.f32 %v761_v21, %v281_v17  ;;  %v293_v27 = vmul.f32 %v761_v21, %v282_v20  ;;  %v284_v35 = vld [vmem:[%s1109_s15 + $0x18] sm:$0xff]  ;;  %v294_v39 = vmul.f32 %v761_v21, %v283_v34  ;;  %v908_v45 = vld [vmem:[%s1263_s5 + $0x70] sm:$0xff]   ;;  %v325_v52 = vld [vmem:[%s1262_s4] sm:$0x3]  ;;  %s272_s29 = scalar_lea.vmem [#allocation2], %s758_s22 }
  0x1a   : > { %v295_v40 = vmul.f32 %v761_v21, %v284_v35  ;;  %v909_v46 = vld [vmem:[%s1263_s5 + $0x30] sm:$0xff]   ;;  %v910_v47 = vld [vmem:[%s1263_s5 + $0x78] sm:$0xff]   ;;  %v330_v54 = vrot.slane %v325_v52, %v329_v51  ;;  %v334_v55 = vrot.slane %v325_v52, %v333_v53  ;;  %s692_s8 = sshll.u32 %s272_s29, 4  ;;  %s1208_s8 = int_to_ptr.vmem [resolvable:$true] %s692_s8 }
  0x1b   : > { %424 = vmatpush1.bf16.msra.mxu0 %v883_v8  ;;  %807 = vmatpush3.bf16.msra.mxu1 %v901_v22  ;;  %v1158_v32 = vadd.f32 %v762_v28, %v292_v26  ;;  %v1160_v33 = vadd.f32 %v762_v28, %v293_v27  ;;  %v1172_v41 = vadd.f32 %v762_v28, %v294_v39  ;;  %v911_v48 = vld [vmem:[%s1263_s5 + $0x38] sm:$0xff]   ;;  %s912_s28 = scalar_lea.vmem %s1208_s8, 512  ;;  %p919_p0 = scmp.lt.s32.totalorder %s1208_s8, %s917_s20 }
  0x1c   : > { %425 = vmatprep.subr.bf16.mxu0 %v884_v9  ;;  %808 = vmatprep.subr.bf16.mxu1 %v902_v24  ;;  %v1174_v42 = vadd.f32 %v762_v28, %v295_v40  ;;  %v795_v24 = vld [vmem:[%s1264_s6] ss:$0 sm:$0xff]  ;;  %p913_p11 = scmp.ne.s32.totalorder %s1208_s8, %s912_s28  ;;  %p920_p1 = scmp.lt.s32.totalorder %s918_s21, %s912_s28 }
  0x1d   : > { %v307_v38 = vpack.c.bf16 %v1160_v33, %v1158_v32 }
  0x1e   : > { %v308_v43 = vpack.c.bf16 %v1174_v42, %v1172_v41  ;;  %p914_p12 = pnand %p913_p11, %p1058_p5  ;;  %p921_p2 = por %p920_p1, %p919_p0 }
  0x1f   : > { %426 = vmatpush1.bf16.msra.mxu0 %v886_v10  ;;  %809 = vmatpush3.bf16.msra.mxu1 %v903_v29 }
  0x20   : > { %427 = vmatprep.subr.bf16.mxu0 %v887_v12  ;;  %810 = vmatprep.subr.bf16.mxu1 %v904_v30  ;;  %p915_p13 = pneg %p914_p12 }
  0x22   : > { %p922_p3 = pnand %p921_p2, %p915_p13 }
  0x23   : > { %428 = vmatpush1.bf16.msra.mxu0 %v889_v16  ;;  %811 = vmatpush3.bf16.msra.mxu1 %v905_v36 }
  0x24   : > { %429 = vmatprep.subr.bf16.mxu0 %v890_v19  ;;  %812 = vmatprep.subr.bf16.mxu1 %v906_v37 }
  0x27   : > { %430 = vmatpush1.bf16.msra.mxu0 %v892_v23  ;;  %813 = vmatpush3.bf16.msra.mxu1 %v907_v44 }
  0x28   : > { %431 = vmatprep.subr.bf16.mxu0 %v893_v25  ;;  %814 = vmatprep.subr.bf16.mxu1 %v908_v45 }
  0x2b   : > { %432 = vmatpush1.bf16.msra.mxu0 %v895_v31  ;;  %815 = vmatpush3.bf16.msra.mxu1 %v909_v46 }
  0x2c   : > { %816 = vmatprep.subr.bf16.mxu1 %v910_v47 }
  0x2e   : > { %450 = vmatmul.mubr.bf16.vlgmr.msra.gmra.mrb[0].mxu0 %v307_v38 }
  0x2f   : > { %459 = vmatprep.mubr.bf16.mxu0 %v976_v2  ;;  %817 = vmatpush3.bf16.msra.mxu1 %v911_v48 }
  0x36   : > { %460 = vmatmul.mubr.bf16.gmra.mrb[4].mxu0 %v308_v43 }
 0x101   : > { %v451_v56 = vpop.f32.mrb[0].mxu0 }
 0x102   : > { %v452_v57 = vadd.f32 %v451_v56, %v330_v54  ;;  %v453_v58 = vpop.f32.mrb[1].mxu0 }
 0x103   : > { %v454_v59 = vadd.f32 %v453_v58, %v334_v55  ;;  %v455_v60 = vpop.f32.mrb[2].mxu0 }
 0x104   : > { %v456_v61 = vadd.f32 %v455_v60, %v330_v54  ;;  %v457_v62 = vpop.f32.mrb[3].mxu0  ;;  %v470_v0 = vmax.f32 %v452_v57, 0.0 }
 0x105   : > { %v458_v63 = vadd.f32 %v457_v62, %v334_v55  ;;  %v471_v2 = vmax.f32 %v454_v59, 0.0 }
 0x106   : > { %v472_v1 = vmax.f32 %v456_v61, 0.0 }
 0x107   : > { %v473_v3 = vmax.f32 %v458_v63, 0.0 }
 0x108   : > { %v478_v4 = vpack.c.bf16 %v472_v1, %v470_v0 }
 0x109   : > { %v461_v5 = vpop.f32.mrb[4].mxu0  ;;  %v479_v6 = vpack.c.bf16 %v473_v3, %v471_v2 }
 0x10a   : > { %v462_v7 = vadd.f32 %v461_v5, %v330_v54  ;;  %v463_v8 = vpop.f32.mrb[5].mxu0 }
 0x10b   : > { %v464_v9 = vadd.f32 %v463_v8, %v334_v55  ;;  %v465_v10 = vpop.f32.mrb[6].mxu0  ;;  %642 = vmatprep.mubr.bf16.mxu1 %v479_v6 }
 0x10c   : > { %v466_v11 = vadd.f32 %v465_v10, %v330_v54  ;;  %v467_v12 = vpop.f32.mrb[7].mxu0  ;;  %643 = vmatmul.mubr.bf16.vlgmr.msra.gmra.mrb[0].mxu1 %v478_v4  ;;  %v474_v14 = vmax.f32 %v462_v7, 0.0 }
 0x10d   : > { %v468_v13 = vadd.f32 %v467_v12, %v334_v55  ;;  %v475_v16 = vmax.f32 %v464_v9, 0.0 }
 0x10e   : > { %v476_v15 = vmax.f32 %v466_v11, 0.0 }
 0x10f   : > { %v477_v17 = vmax.f32 %v468_v13, 0.0 }
 0x110   : > { %v480_v18 = vpack.c.bf16 %v476_v15, %v474_v14 }
 0x111   : > { %v481_v19 = vpack.c.bf16 %v477_v17, %v475_v16 }
 0x113   : > { %650 = vmatprep.mubr.bf16.mxu1 %v481_v19 }
 0x114   : > { %651 = vmatmul.mubr.bf16.gmra.mrb[4].mxu1 %v480_v18 }
 0x1df   : > { %v818_v20 = vpop.f32.mrb[0].mxu1 }
 0x1e0   : > { %v819_v21 = vpop.f32.mrb[1].mxu1 }
 0x1e1   : > { %v820_v22 = vadd.f32 %v819_v21, %v818_v20  ;;  %v821_v23 = vpop.f32.mrb[2].mxu1 }
 0x1e2   : > { %v822_v25 = vpop.f32.mrb[3].mxu1 }
 0x1e3   : > { %v659_v26 = vadd.f32 %v820_v22, %v1158_v32  ;;  %v823_v27 = vadd.f32 %v822_v25, %v821_v23 }
 0x1e5   : > { %v670_v28 = vadd.f32 %v795_v24, %v659_v26  ;;  %v660_v29 = vadd.f32 %v823_v27, %v1160_v33 }
 0x1e7   : > { %674 = vst [vmem:[%s272_s29] sm:$0xff] %v670_v28  ;;  %v671_v30 = vadd.f32 %v795_v24, %v660_v29  ;;  %v824_v31 = vpop.f32.mrb[4].mxu1 }
 0x1e8   : > { %v825_v34 = vpop.f32.mrb[5].mxu1 }
 0x1e9   : > { %675 = vst [vmem:[%s272_s29 + $0x8] sm:$0xff] %v671_v30  ;;  %v826_v35 = vadd.f32 %v825_v34, %v824_v31  ;;  %v827_v36 = vpop.f32.mrb[6].mxu1 }
 0x1ea   : > { %v828_v37 = vpop.f32.mrb[7].mxu1 }
 0x1eb   : > { %v661_v38 = vadd.f32 %v826_v35, %v1172_v41  ;;  %v829_v32 = vadd.f32 %v828_v37, %v827_v36 }
 0x1ed   : > { %v672_v39 = vadd.f32 %v795_v24, %v661_v38  ;;  %v662_v40 = vadd.f32 %v829_v32, %v1174_v42 }
 0x1ef   : > { %676 = vst [vmem:[%s272_s29 + $0x10] sm:$0xff] %v672_v39  ;;  %v673_v33 = vadd.f32 %v795_v24, %v662_v40 }
 0x1f1   : > { %677 = vst [vmem:[%s272_s29 + $0x18] sm:$0xff] %v673_v33 }
 0x1f2   : > { %925 = shalt.err (!%p922_p3)
}
 0x1f3   : > { %s926_s17 = scalar_lea.hbm %s1213_s16, 512  ;;  %s930_s23 = scalar_lea.hbm %s1265_s7, 1024 }
 0x1f4   : > { %p927_p4 = scmp.ne.s32.totalorder %s1213_s16, %s926_s17  ;;  %p931_p9 = scmp.lt.u32.totalorder %s1213_s16, %s1265_s7 }
 0x1f5   : > { %p932_p10 = scmp.lt.u32.totalorder %s930_s23, %s926_s17  ;;  %p934_p12 = scmp.lt.u32.totalorder %s926_s17, %s1213_s16 }
 0x1f6   : > { %p928_p7 = pnand %p927_p4, %p1058_p5 }
 0x1f7   : > { %p933_p11 = por %p932_p10, %p931_p9 }
 0x1f8   : > { %p929_p8 = pneg %p928_p7 }
 0x1f9   : > { %p935_p13 = por %p934_p12, %p933_p11 }
 0x1fb   : > { %p936_p0 = pnand %p935_p13, %p929_p8 }
 0x1fd   : > { %939 = shalt.err (!%p936_p0)
}
 0x1fe   : > { %s978_s13 = smov 128   ;;  %s979_s14 = smov 8  }
 0x1ff   : > { %830 = dma.vmem_to_hbm [thread:$0]  (%p1058_p5), %s1208_s8, 512, %s1213_s16, %s1217_s18, %s978_s13, %s978_s13, %s979_s14  }
 0x200 PF: > { %p836_p1 = scmp.ge.s32.totalorder %s974_s27, 2  ;;  %s707_s28 = sand.u32 1, %s962_s24  }
 0x201   : > { %s708_s19 = scalar_lea.sflag [#allocation3], %s707_s28 }
 0x202   : > { %p833_p2 = pnand %p836_p1, %p1062_p6 }
 0x204   : > { %957 = dma.done.wait (!%p833_p2), %s708_s19, 512  }
 0x205   : > { %959 = vsyncadd (!%p833_p2), %s708_s19, 4294966784  ;;  %p17_p3 = scmp.ge.s32.totalorder %s1045_s30, 4   ;;  %s1268_s24 = smov %s966_s25 }
 0x206   : > { %s1269_s25 = smov %s970_s26  ;;  %s1270_s26 = smov %s1056_s10 }
 0x207   : > { %s1271_s27 = smov %s1045_s30  ;;  %19 = sbr.rel (!%p17_p3) target bundleno = 3 (0x3), region = 83 }
 0x20e   :  { %713 = vsyncpa [#allocation3], 1 }
 0x20f   :  { %715 = vsyncpa [#allocation3 + $0x1], 1 }

</bundles_post_ra>
